<compile_context>
chip_gen: v5e
topology: v5e:2x2
jax: 0.10.0
libtpu: 0.0.40
codegen_flags: <defaults>
</compile_context>

<pallas_src>
import functools

import jax
import jax.numpy as jnp
from jax.experimental import pallas as pl
from jax.experimental.pallas import tpu as pltpu


# --------------------------------------------------------------------------
# Kernel factory: one bidirectional LSTM layer over one sequence chunk.
#   pair_input : layer input is (y_fwd, y_bwd) from the previous layer
#   is_last    : fuse the final Linear + Sigmoid and emit (Bp, O) only
# --------------------------------------------------------------------------
def _make_layer_kernel(*, pair_input, is_last, seq_chunk, n_chunks, hidden,
                       total_t):
    Tc, H = seq_chunk, hidden

    def kernel(*refs):
        idx = 0
        if pair_input:
            xf_f, xf_b, xb_f, xb_b = refs[idx:idx + 4]; idx += 4
        else:
            x_f, x_b = refs[idx:idx + 2]; idx += 2
        (wih_f_ref, wih_b_ref, whh_ref, bf_ref, bb_ref,
         len_ref) = refs[idx:idx + 6]; idx += 6
        if is_last:
            fcw_ref, fcb_ref = refs[idx:idx + 2]; idx += 2
            o_ref = refs[idx]; idx += 1
            yf_ref = yb_ref = None
        else:
            yf_ref, yb_ref = refs[idx:idx + 2]; idx += 2
        gates_f_sc, gates_b_sc, h_sc, c_sc = refs[idx:idx + 4]

        Bp = len_ref.shape[0]
        ci = pl.program_id(0)

        # ---- hoisted input projection: one MXU pass per direction per chunk
        def proj_single(x_ref, wih_ref, b_ref, out_sc):
            in_dim = x_ref.shape[2]
            x2 = x_ref[...].reshape(Tc * Bp, in_dim).astype(jnp.bfloat16)
            out_sc[...] = (
                jnp.dot(x2, wih_ref[...], preferred_element_type=jnp.float32)
                + b_ref[...]).reshape(Tc, Bp, 4 * H)

        def proj_pair(xa_ref, xb_ref, wih_ref, b_ref, out_sc):
            hin = xa_ref.shape[2]
            a = xa_ref[...].reshape(Tc * Bp, hin).astype(jnp.bfloat16)
            b = xb_ref[...].reshape(Tc * Bp, hin).astype(jnp.bfloat16)
            w = wih_ref[...]                                  # (2*hin, 4H) bf16
            out_sc[...] = (
                jnp.dot(a, w[:hin], preferred_element_type=jnp.float32)
                + jnp.dot(b, w[hin:], preferred_element_type=jnp.float32)
                + b_ref[...]).reshape(Tc, Bp, 4 * H)

        if pair_input:
            proj_pair(xf_f, xf_b, wih_f_ref, bf_ref, gates_f_sc)
            proj_pair(xb_f, xb_b, wih_b_ref, bb_ref, gates_b_sc)
        else:
            proj_single(x_f, wih_f_ref, bf_ref, gates_f_sc)
            proj_single(x_b, wih_b_ref, bb_ref, gates_b_sc)

        # ---- state init at the first chunk (h/c persist in scratch) --------
        @pl.when(ci == 0)
        def _():
            h_sc[...] = jnp.zeros_like(h_sc)
            c_sc[...] = jnp.zeros_like(c_sc)

        lens = len_ref[...]                                    # (Bp, 1) int32
        # Only hoist W_hh into vregs when small; else stream from VMEM per step.
        hoist_whh = (2 * H) * (8 * H) * 2 <= 64 * 1024
        whh_hoisted = whh_ref[...] if hoist_whh else None
        t0 = ci * Tc

        def step(s, carry):
            h_f, c_f, h_b, c_b = carry
            t_f = t0 + s                       # global fwd timestep
            t_b = (total_t - 1) - t_f          # global bwd timestep

            rhs = whh_hoisted if hoist_whh else whh_ref[...]
            lhs = jnp.concatenate([h_f, h_b], axis=-1).astype(jnp.bfloat16)
            hh = jnp.dot(lhs, rhs, preferred_element_type=jnp.float32)  # (Bp,8H)

            g_f = gates_f_sc[s] + hh[:, :4 * H]
            g_b = gates_b_sc[Tc - 1 - s] + hh[:, 4 * H:]

            def cell(g, c):
                i_g = jax.nn.sigmoid(g[:, 0 * H:1 * H])
                f_g = jax.nn.sigmoid(g[:, 1 * H:2 * H])
                g_g = jnp.tanh(g[:, 2 * H:3 * H])
                o_g = jax.nn.sigmoid(g[:, 3 * H:4 * H])
                c_n = f_g * c + i_g * g_g
                return o_g * jnp.tanh(c_n), c_n

            hf_n, cf_n = cell(g_f, c_f)
            hb_n, cb_n = cell(g_b, c_b)

            m_f = t_f < lens                   # packed-sequence masking
            m_b = t_b < lens
            h_f = jnp.where(m_f, hf_n, h_f)
            c_f = jnp.where(m_f, cf_n, c_f)
            h_b = jnp.where(m_b, hb_n, h_b)
            c_b = jnp.where(m_b, cb_n, c_b)

            if not is_last:                    # intermediate layers emit y
                yf_ref[s] = h_f.astype(yf_ref.dtype)
                yb_ref[Tc - 1 - s] = h_b.astype(yb_ref.dtype)
            return h_f, c_f, h_b, c_b

        carry0 = (h_sc[0], c_sc[0], h_sc[1], c_sc[1])
        h_f, c_f, h_b, c_b = jax.lax.fori_loop(0, Tc, step, carry0,
                                               unroll=min(Tc, 8))
        h_sc[0] = h_f
        c_sc[0] = c_f
        h_sc[1] = h_b
        c_sc[1] = c_b

        if is_last:
            @pl.when(ci == n_chunks - 1)
            def _():
                w = fcw_ref[...]                               # (2H, O) bf16
                logits = (
                    jnp.dot(h_f.astype(jnp.bfloat16), w[:H],
                            preferred_element_type=jnp.float32)
                    + jnp.dot(h_b.astype(jnp.bfloat16), w[H:],
                              preferred_element_type=jnp.float32)
                    + fcb_ref[...])
                o_ref[...] = jax.nn.sigmoid(logits)

    return kernel


# --------------------------------------------------------------------------
# pallas_call wrapper for one layer (chunked grid over the sequence).
# --------------------------------------------------------------------------
def _bilstm_layer_call(inputs, layer, lens, *, seq_chunk, n_chunks, total_t,
                       is_last, fc):
    Tc = seq_chunk
    H = layer["whh"].shape[0] // 2
    Bp = lens.shape[0]
    pair_input = isinstance(inputs, (tuple, list))

    fwd3 = lambda ci: (ci, 0, 0)
    bwd3 = lambda ci: (n_chunks - 1 - ci, 0, 0)
    const2 = lambda ci: (0, 0)

    call_args, in_specs = [], []
    if pair_input:
        yf_prev, yb_prev = inputs
        h_prev = yf_prev.shape[-1]
        in_dim = 2 * h_prev
        for arr, m in ((yf_prev, fwd3), (yb_prev, fwd3),
                       (yf_prev, bwd3), (yb_prev, bwd3)):
            call_args.append(arr)
            in_specs.append(pl.BlockSpec((Tc, Bp, h_prev), m))
        blk_last, n_in_blocks = h_prev, 4
    else:
        x = inputs
        in_dim = x.shape[-1]
        for m in (fwd3, bwd3):
            call_args.append(x)
            in_specs.append(pl.BlockSpec((Tc, Bp, in_dim), m))
        blk_last, n_in_blocks = in_dim, 2

    resident = [layer["wih_f"], layer["wih_b"], layer["whh"],
                layer["b_f"], layer["b_b"], lens]
    if is_last:
        resident += [fc[0], fc[1]]
    for arr in resident:
        call_args.append(arr)
        in_specs.append(pl.BlockSpec(arr.shape, const2))

    if is_last:
        out_dim = fc[0].shape[1]
        out_shape = jax.ShapeDtypeStruct((Bp, out_dim), jnp.float32)
        out_specs = pl.BlockSpec((Bp, out_dim), const2)
    else:
        out_dim = 0
        # TODO(synk): at real sizes 2H >= 128 makes these stores lane-dense;
        # at toy H they are partial-lane stores (harmless).
        out_shape = (jax.ShapeDtypeStruct((total_t, Bp, H), jnp.bfloat16),
                     jax.ShapeDtypeStruct((total_t, Bp, H), jnp.bfloat16))
        out_specs = [pl.BlockSpec((Tc, Bp, H), fwd3),
                     pl.BlockSpec((Tc, Bp, H), bwd3)]

    scratch_shapes = [
        pltpu.VMEM((Tc, Bp, 4 * H), jnp.float32),   # fwd input-proj gates
        pltpu.VMEM((Tc, Bp, 4 * H), jnp.float32),   # bwd input-proj gates
        pltpu.VMEM((2, Bp, H), jnp.float32),        # h state  (fwd, bwd)
        pltpu.VMEM((2, Bp, H), jnp.float32),        # c state  (fwd, bwd)
    ]

    # ---- VMEM budget & advisory cost estimate -----------------------------
    w_bytes = sum(int(a.size) * a.dtype.itemsize for a in resident)
    in_block_bytes = n_in_blocks * 2 * Tc * Bp * blk_last * 2      # bf16, 2-buf
    if is_last:
        out_block_bytes = 2 * Bp * out_dim * 4
    else:
        out_block_bytes = 2 * 2 * Tc * Bp * H * 2
    scratch_bytes = 2 * Tc * Bp * 4 * H * 4 + 2 * 2 * Bp * H * 4
    est = in_block_bytes + 2 * w_bytes + out_block_bytes + scratch_bytes
    vmem_bytes = int(min(max(2 * est + (4 << 20), 32 << 20), 64 << 20))

    t_total = n_chunks * Tc
    flops = 4 * t_total * Bp * in_dim * 4 * H               # input projections
    flops += 2 * t_total * Bp * (2 * H) * (8 * H)           # recurrent matmuls
    if is_last:
        flops += 2 * Bp * (2 * H) * out_dim
    transcendentals = t_total * Bp * 2 * 5 * H
    bytes_accessed = (2 * t_total * Bp * in_dim * 2 + w_bytes
                      + (Bp * out_dim * 4 if is_last
                         else 2 * t_total * Bp * H * 2))
    cost = pl.CostEstimate(flops=int(flops),
                           transcendentals=int(transcendentals),
                           bytes_accessed=int(bytes_accessed))

    kernel = _make_layer_kernel(pair_input=pair_input, is_last=is_last,
                                seq_chunk=Tc, n_chunks=n_chunks, hidden=H,
                                total_t=total_t)

    return pl.pallas_call(
        kernel,
        out_shape=out_shape,
        grid_spec=pltpu.PrefetchScalarGridSpec(
            num_scalar_prefetch=0,
            grid=(n_chunks,),
            in_specs=in_specs,
            out_specs=out_specs,
            scratch_shapes=scratch_shapes),
        compiler_params=pltpu.CompilerParams(
            dimension_semantics=("arbitrary",),
            vmem_limit_bytes=vmem_bytes),
        cost_estimate=cost,
    )(*call_args)


# --------------------------------------------------------------------------
# Full forward pass (matches LSTMNet.forward, eval mode).
# --------------------------------------------------------------------------
def lstm_net_forward(embedded, text_lengths, params, *, seq_chunk=32):
    # embedded: (B, T, E) batch-first (PyTorch convention)
    B, T, _ = embedded.shape
    Bp = ((B + 7) // 8) * 8                        # pad batch to sublane multiple
    Tc = max(1, min(int(seq_chunk), T))
    n_chunks = (T + Tc - 1) // Tc
    Tp = n_chunks * Tc                             # pad T to a chunk multiple

    x = jnp.transpose(embedded, (1, 0, 2)).astype(jnp.bfloat16)   # (T, B, E)
    x = jnp.pad(x, ((0, Tp - T), (0, Bp - B), (0, 0)))
    lens_1d = jnp.minimum(text_lengths.astype(jnp.int32), T)
    lens = jnp.zeros((Bp, 1), jnp.int32).at[:B, 0].set(lens_1d)   # pad rows = 0

    layers = params["lstm"]
    n_layers = len(layers)
    inputs = x
    out = None
    for li, layer in enumerate(layers):
        is_last = (li == n_layers - 1)
        fc = (params["fc_w"], params["fc_b"]) if is_last else None
        res = _bilstm_layer_call(inputs, layer, lens, seq_chunk=Tc,
                                 n_chunks=n_chunks, total_t=Tp,
                                 is_last=is_last, fc=fc)
        if is_last:
            out = res
        else:
            inputs = tuple(res)        # (y_fwd, y_bwd) bf16, each (Tp, Bp, H)
    return out[:B]


# --------------------------------------------------------------------------
# Deterministic parameter init (PyTorch nn.LSTM / nn.Linear shapes), with
# weights pre-transposed, biases fused, and W_hh packed block-diagonally.
# --------------------------------------------------------------------------
def init_params(key, E, H, O, n_layers):
    bound = 1.0 / float(H ** 0.5)
    keys = iter(jax.random.split(key, n_layers * 8 + 2))

    def u(shape):
        return jax.random.uniform(next(keys), shape, jnp.float32, -bound, bound)

    params = {"lstm": []}
    for l in range(n_layers):
        in_dim = E if l == 0 else 2 * H
        layer = {}
        whh_fused = jnp.zeros((2 * H, 8 * H), jnp.float32)
        for d, tag in enumerate(("f", "b")):
            w_ih = u((4 * H, in_dim))        # PyTorch weight_ih_l{l}(_reverse)
            w_hh = u((4 * H, H))             # PyTorch weight_hh_l{l}(_reverse)
            b_ih = u((4 * H,))
            b_hh = u((4 * H,))
            layer[f"wih_{tag}"] = jnp.transpose(w_ih).astype(jnp.bfloat16)
            layer[f"b_{tag}"] = (b_ih + b_hh).reshape(1, 4 * H)
            whh_fused = whh_fused.at[d * H:(d + 1) * H,
                                     d * 4 * H:(d + 1) * 4 * H].set(
                jnp.transpose(w_hh))
        layer["whh"] = whh_fused.astype(jnp.bfloat16)   # (2H, 8H) block-diag
        params["lstm"].append(layer)

    fc_w = u((O, 2 * H))
    fc_b = u((O,))
    params["fc_w"] = jnp.transpose(fc_w).astype(jnp.bfloat16)      # (2H, O)
    params["fc_b"] = fc_b.reshape(1, O)
    return params


# --------------------------------------------------------------------------
# Pure-JAX reference: same math, same bf16 matmul inputs / f32 accumulation,
# same packed-sequence masking.
# --------------------------------------------------------------------------
def ref_forward(embedded, text_lengths, params):
    B, T, _ = embedded.shape
    lengths = jnp.minimum(text_lengths.astype(jnp.int32), T)

    def mm(a, w):
        return jnp.dot(a.astype(jnp.bfloat16), w.astype(jnp.bfloat16),
                       preferred_element_type=jnp.float32)

    def run_dir(x_btf, wih, whh, bias, reverse):
        H = whh.shape[0]
        pre = mm(x_btf, wih) + bias                        # hoisted projection
        h = jnp.zeros((B, H), jnp.float32)
        c = jnp.zeros((B, H), jnp.float32)
        ys = [None] * T
        order = range(T - 1, -1, -1) if reverse else range(T)
        for t in order:
            g = pre[:, t] + mm(h, whh)
            i_g = jax.nn.sigmoid(g[:, :H])
            f_g = jax.nn.sigmoid(g[:, H:2 * H])
            g_g = jnp.tanh(g[:, 2 * H:3 * H])
            o_g = jax.nn.sigmoid(g[:, 3 * H:])
            c_new = f_g * c + i_g * g_g
            h_new = o_g * jnp.tanh(c_new)
            mask = (t < lengths).reshape(-1, 1)
            h = jnp.where(mask, h_new, h)
            c = jnp.where(mask, c_new, c)
            ys[t] = h
        return jnp.stack(ys, axis=1), h

    x = embedded.astype(jnp.float32)
    h_f = h_b = None
    for layer in params["lstm"]:
        H = layer["whh"].shape[0] // 2
        whh_f = layer["whh"][:H, :4 * H].astype(jnp.float32)
        whh_b = layer["whh"][H:, 4 * H:].astype(jnp.float32)
        y_f, h_f = run_dir(x, layer["wih_f"], whh_f, layer["b_f"], False)
        y_b, h_b = run_dir(x, layer["wih_b"], whh_b, layer["b_b"], True)
        x = jnp.concatenate([y_f, y_b], axis=-1)

    fc_w = params["fc_w"]
    H = h_f.shape[-1]
    logits = mm(h_f, fc_w[:H]) + mm(h_b, fc_w[H:]) + params["fc_b"]
    return jax.nn.sigmoid(logits)


if __name__ == "__main__":
    B, T, E, H, O, L = 2, 8, 16, 32, 4, 2   # batch, seq, embed, hidden, out, layers

    key = jax.random.PRNGKey(0)
    kx, kp = jax.random.split(key)
    embedded = jax.random.normal(kx, (B, T, E), jnp.float32)
    text_lengths = jnp.array([8, 5], dtype=jnp.int32)

    params = init_params(kp, E, H, O, L)

    # seq_chunk=4 -> 2 grid steps: exercises the chunked grid + carried state.
    fwd = jax.jit(functools.partial(lstm_net_forward, seq_chunk=4))
    out = jax.block_until_ready(fwd(embedded, text_lengths, params))
    assert out.shape == (B, O), out.shape

    ref = ref_forward(embedded, text_lengths, params)
    assert bool(jnp.allclose(out, ref, atol=2e-3, rtol=2e-3)), (out, ref)

    print("KERNEL_OK")
</pallas_src>

<mosaic_0001>
module attributes {stable_mosaic.version = 11 : i64} {
  func.func @kernel(%arg0: i32, %arg1: memref<4x8x16xbf16, #tpu.memory_space<vmem>>, %arg2: memref<4x8x16xbf16, #tpu.memory_space<vmem>>, %arg3: memref<16x128xbf16, #tpu.memory_space<vmem>>, %arg4: memref<16x128xbf16, #tpu.memory_space<vmem>>, %arg5: memref<64x256xbf16, #tpu.memory_space<vmem>>, %arg6: memref<1x128xf32, #tpu.memory_space<vmem>>, %arg7: memref<1x128xf32, #tpu.memory_space<vmem>>, %arg8: memref<8x1xi32, #tpu.memory_space<vmem>>, %arg9: memref<4x8x32xbf16, #tpu.memory_space<vmem>>, %arg10: memref<4x8x32xbf16, #tpu.memory_space<vmem>>, %arg11: memref<4x8x128xf32, #tpu.memory_space<vmem>>, %arg12: memref<4x8x128xf32, #tpu.memory_space<vmem>>, %arg13: memref<2x8x32xf32, #tpu.memory_space<vmem>>, %arg14: memref<2x8x32xf32, #tpu.memory_space<vmem>>) attributes {dimension_semantics = [#tpu.dimension_semantics<arbitrary>], iteration_bounds = array<i64: 2>, scalar_prefetch = 0 : i64, scratch_operands = 4 : i64, tpu.core_type = #tpu.core_type<tc>, window_params = [{transform_indices = @transform_0, window_bounds = array<i64: 4, 8, 16>}, {transform_indices = @transform_1, window_bounds = array<i64: 4, 8, 16>}, {pipeline_mode = #tpu.pipeline_mode<synchronous>, transform_indices = @transform_2, window_bounds = array<i64: 16, 128>}, {pipeline_mode = #tpu.pipeline_mode<synchronous>, transform_indices = @transform_3, window_bounds = array<i64: 16, 128>}, {pipeline_mode = #tpu.pipeline_mode<synchronous>, transform_indices = @transform_4, window_bounds = array<i64: 64, 256>}, {pipeline_mode = #tpu.pipeline_mode<synchronous>, transform_indices = @transform_5, window_bounds = array<i64: 1, 128>}, {pipeline_mode = #tpu.pipeline_mode<synchronous>, transform_indices = @transform_6, window_bounds = array<i64: 1, 128>}, {pipeline_mode = #tpu.pipeline_mode<synchronous>, transform_indices = @transform_7, window_bounds = array<i64: 8, 1>}, {transform_indices = @transform_8, window_bounds = array<i64: 4, 8, 32>}, {transform_indices = @transform_9, window_bounds = array<i64: 4, 8, 32>}]} {
    %c0 = arith.constant 0 : index
    %c0_0 = arith.constant 0 : index
    %c0_1 = arith.constant 0 : index
    %0 = vector.load %arg1[%c0, %c0_0, %c0_1] : memref<4x8x16xbf16, #tpu.memory_space<vmem>>, vector<4x8x16xbf16>
    %1 = vector.shape_cast %0 : vector<4x8x16xbf16> to vector<32x16xbf16>
    %c0_2 = arith.constant 0 : index
    %c0_3 = arith.constant 0 : index
    %2 = vector.load %arg3[%c0_2, %c0_3] : memref<16x128xbf16, #tpu.memory_space<vmem>>, vector<16x128xbf16>
    %cst = arith.constant dense<0.000000e+00> : vector<32x128xf32>
    %3 = tpu.matmul %1, %2, %cst {dimension_numbers = #tpu.dot_dimension_numbers<[1], [0], [0], [1], [0, 0, 1, 1], [], []>} : vector<32x16xbf16>, vector<16x128xbf16>, vector<32x128xf32> -> vector<32x128xf32>
    %c0_4 = arith.constant 0 : index
    %c0_5 = arith.constant 0 : index
    %4 = vector.load %arg6[%c0_4, %c0_5] : memref<1x128xf32, #tpu.memory_space<vmem>>, vector<1x128xf32>
    %5 = vector.broadcast %4 : vector<1x128xf32> to vector<32x128xf32>
    %6 = arith.addf %3, %5 : vector<32x128xf32>
    %7 = vector.shape_cast %6 : vector<32x128xf32> to vector<4x8x128xf32>
    %c0_6 = arith.constant 0 : index
    %c0_7 = arith.constant 0 : index
    %c0_8 = arith.constant 0 : index
    %8 = vector.load %arg11[%c0_6, %c0_7, %c0_8] : memref<4x8x128xf32, #tpu.memory_space<vmem>>, vector<4x8x128xf32>
    tpu.vector_store %arg11[%c0_6, %c0_7, %c0_8], %7 {strides = array<i32>} : memref<4x8x128xf32, #tpu.memory_space<vmem>>, vector<4x8x128xf32>,
    %c0_9 = arith.constant 0 : index
    %c0_10 = arith.constant 0 : index
    %c0_11 = arith.constant 0 : index
    %9 = vector.load %arg2[%c0_9, %c0_10, %c0_11] : memref<4x8x16xbf16, #tpu.memory_space<vmem>>, vector<4x8x16xbf16>
    %10 = vector.shape_cast %9 : vector<4x8x16xbf16> to vector<32x16xbf16>
    %c0_12 = arith.constant 0 : index
    %c0_13 = arith.constant 0 : index
    %11 = vector.load %arg4[%c0_12, %c0_13] : memref<16x128xbf16, #tpu.memory_space<vmem>>, vector<16x128xbf16>
    %cst_14 = arith.constant dense<0.000000e+00> : vector<32x128xf32>
    %12 = tpu.matmul %10, %11, %cst_14 {dimension_numbers = #tpu.dot_dimension_numbers<[1], [0], [0], [1], [0, 0, 1, 1], [], []>} : vector<32x16xbf16>, vector<16x128xbf16>, vector<32x128xf32> -> vector<32x128xf32>
    %c0_15 = arith.constant 0 : index
    %c0_16 = arith.constant 0 : index
    %13 = vector.load %arg7[%c0_15, %c0_16] : memref<1x128xf32, #tpu.memory_space<vmem>>, vector<1x128xf32>
    %14 = vector.broadcast %13 : vector<1x128xf32> to vector<32x128xf32>
    %15 = arith.addf %12, %14 : vector<32x128xf32>
    %16 = vector.shape_cast %15 : vector<32x128xf32> to vector<4x8x128xf32>
    %c0_17 = arith.constant 0 : index
    %c0_18 = arith.constant 0 : index
    %c0_19 = arith.constant 0 : index
    %17 = vector.load %arg12[%c0_17, %c0_18, %c0_19] : memref<4x8x128xf32, #tpu.memory_space<vmem>>, vector<4x8x128xf32>
    tpu.vector_store %arg12[%c0_17, %c0_18, %c0_19], %16 {strides = array<i32>} : memref<4x8x128xf32, #tpu.memory_space<vmem>>, vector<4x8x128xf32>,
    %c0_i32 = arith.constant 0 : i32
    %18 = arith.cmpi eq, %arg0, %c0_i32 : i32
    %19 = arith.extui %18 : i1 to i32
    %c0_i32_20 = arith.constant 0 : i32
    %20 = arith.cmpi ne, %19, %c0_i32_20 : i32
    scf.if %20 {
      %cst_121 = arith.constant 0.000000e+00 : f32
      %416 = vector.broadcast %cst_121 : f32 to vector<2x8x32xf32>
      %c0_122 = arith.constant 0 : index
      %c0_123 = arith.constant 0 : index
      %c0_124 = arith.constant 0 : index
      %417 = vector.load %arg13[%c0_122, %c0_123, %c0_124] : memref<2x8x32xf32, #tpu.memory_space<vmem>>, vector<2x8x32xf32>
      tpu.vector_store %arg13[%c0_122, %c0_123, %c0_124], %416 {strides = array<i32>} : memref<2x8x32xf32, #tpu.memory_space<vmem>>, vector<2x8x32xf32>,
      %cst_125 = arith.constant 0.000000e+00 : f32
      %418 = vector.broadcast %cst_125 : f32 to vector<2x8x32xf32>
      %c0_126 = arith.constant 0 : index
      %c0_127 = arith.constant 0 : index
      %c0_128 = arith.constant 0 : index
      %419 = vector.load %arg14[%c0_126, %c0_127, %c0_128] : memref<2x8x32xf32, #tpu.memory_space<vmem>>, vector<2x8x32xf32>
      tpu.vector_store %arg14[%c0_126, %c0_127, %c0_128], %418 {strides = array<i32>} : memref<2x8x32xf32, #tpu.memory_space<vmem>>, vector<2x8x32xf32>,
    } else {
    }
    %c0_21 = arith.constant 0 : index
    %c0_22 = arith.constant 0 : index
    %21 = vector.load %arg8[%c0_21, %c0_22] : memref<8x1xi32, #tpu.memory_space<vmem>>, vector<8x1xi32>
    %c0_23 = arith.constant 0 : index
    %c0_24 = arith.constant 0 : index
    %22 = vector.load %arg5[%c0_23, %c0_24] : memref<64x256xbf16, #tpu.memory_space<vmem>>, vector<64x256xbf16>
    %c4_i32 = arith.constant 4 : i32
    %23 = arith.muli %arg0, %c4_i32 : i32
    %c0_25 = arith.constant 0 : index
    %c0_26 = arith.constant 0 : index
    %c0_27 = arith.constant 0 : index
    %24 = vector.load %arg13[%c0_25, %c0_26, %c0_27] : memref<2x8x32xf32, #tpu.memory_space<vmem>>, vector<1x8x32xf32>
    %25 = vector.shape_cast %24 : vector<1x8x32xf32> to vector<8x32xf32>
    %c0_28 = arith.constant 0 : index
    %c0_29 = arith.constant 0 : index
    %c0_30 = arith.constant 0 : index
    %26 = vector.load %arg14[%c0_28, %c0_29, %c0_30] : memref<2x8x32xf32, #tpu.memory_space<vmem>>, vector<1x8x32xf32>
    %27 = vector.shape_cast %26 : vector<1x8x32xf32> to vector<8x32xf32>
    %c1 = arith.constant 1 : index
    %c0_31 = arith.constant 0 : index
    %c0_32 = arith.constant 0 : index
    %28 = vector.load %arg13[%c1, %c0_31, %c0_32] : memref<2x8x32xf32, #tpu.memory_space<vmem>>, vector<1x8x32xf32>
    %29 = vector.shape_cast %28 : vector<1x8x32xf32> to vector<8x32xf32>
    %c1_33 = arith.constant 1 : index
    %c0_34 = arith.constant 0 : index
    %c0_35 = arith.constant 0 : index
    %30 = vector.load %arg14[%c1_33, %c0_34, %c0_35] : memref<2x8x32xf32, #tpu.memory_space<vmem>>, vector<1x8x32xf32>
    %31 = vector.shape_cast %30 : vector<1x8x32xf32> to vector<8x32xf32>
    %c0_i32_36 = arith.constant 0 : i32
    %32 = arith.addi %23, %c0_i32_36 : i32
    %c7_i32 = arith.constant 7 : i32
    %33 = arith.subi %c7_i32, %32 : i32
    %34 = tpu.concatenate %25, %29 in 1 : vector<8x32xf32>, vector<8x32xf32> -> vector<8x64xf32>
    %35 = arith.truncf %34 : vector<8x64xf32> to vector<8x64xbf16>
    %cst_37 = arith.constant dense<0.000000e+00> : vector<8x256xf32>
    %36 = tpu.matmul %35, %22, %cst_37 {dimension_numbers = #tpu.dot_dimension_numbers<[1], [0], [0], [1], [0, 0, 1, 1], [], []>} : vector<8x64xbf16>, vector<64x256xbf16>, vector<8x256xf32> -> vector<8x256xf32>
    %37 = arith.index_cast %c0_i32_36 : i32 to index
    %c0_38 = arith.constant 0 : index
    %c0_39 = arith.constant 0 : index
    %38 = vector.load %arg11[%37, %c0_38, %c0_39] : memref<4x8x128xf32, #tpu.memory_space<vmem>>, vector<1x8x128xf32>
    %39 = vector.shape_cast %38 : vector<1x8x128xf32> to vector<8x128xf32>
    %40 = vector.extract_strided_slice %36 {offsets = [0, 0], sizes = [8, 128], strides = [1, 1]} : vector<8x256xf32> to vector<8x128xf32>
    %41 = arith.addf %39, %40 : vector<8x128xf32>
    %c3_i32 = arith.constant 3 : i32
    %42 = arith.subi %c3_i32, %c0_i32_36 : i32
    %43 = arith.index_cast %42 : i32 to index
    %c0_40 = arith.constant 0 : index
    %c0_41 = arith.constant 0 : index
    %44 = vector.load %arg12[%43, %c0_40, %c0_41] : memref<4x8x128xf32, #tpu.memory_space<vmem>>, vector<1x8x128xf32>
    %45 = vector.shape_cast %44 : vector<1x8x128xf32> to vector<8x128xf32>
    %46 = vector.extract_strided_slice %36 {offsets = [0, 128], sizes = [8, 128], strides = [1, 1]} : vector<8x256xf32> to vector<8x128xf32>
    %47 = arith.addf %45, %46 : vector<8x128xf32>
    %48 = vector.extract_strided_slice %41 {offsets = [0, 0], sizes = [8, 32], strides = [1, 1]} : vector<8x128xf32> to vector<8x32xf32>
    %49 = arith.negf %48 : vector<8x32xf32>
    %50 = math.exp %49 : vector<8x32xf32>
    %cst_42 = arith.constant 1.000000e+00 : f32
    %51 = vector.broadcast %cst_42 : f32 to vector<8x32xf32>
    %52 = arith.addf %51, %50 : vector<8x32xf32>
    %53 = arith.divf %51, %52 : vector<8x32xf32>
    %54 = vector.extract_strided_slice %41 {offsets = [0, 32], sizes = [8, 32], strides = [1, 1]} : vector<8x128xf32> to vector<8x32xf32>
    %55 = arith.negf %54 : vector<8x32xf32>
    %56 = math.exp %55 : vector<8x32xf32>
    %cst_43 = arith.constant 1.000000e+00 : f32
    %57 = vector.broadcast %cst_43 : f32 to vector<8x32xf32>
    %58 = arith.addf %57, %56 : vector<8x32xf32>
    %59 = arith.divf %57, %58 : vector<8x32xf32>
    %60 = vector.extract_strided_slice %41 {offsets = [0, 64], sizes = [8, 32], strides = [1, 1]} : vector<8x128xf32> to vector<8x32xf32>
    %61 = math.tanh %60 : vector<8x32xf32>
    %62 = vector.extract_strided_slice %41 {offsets = [0, 96], sizes = [8, 32], strides = [1, 1]} : vector<8x128xf32> to vector<8x32xf32>
    %63 = arith.negf %62 : vector<8x32xf32>
    %64 = math.exp %63 : vector<8x32xf32>
    %cst_44 = arith.constant 1.000000e+00 : f32
    %65 = vector.broadcast %cst_44 : f32 to vector<8x32xf32>
    %66 = arith.addf %65, %64 : vector<8x32xf32>
    %67 = arith.divf %65, %66 : vector<8x32xf32>
    %68 = arith.mulf %59, %27 : vector<8x32xf32>
    %69 = arith.mulf %53, %61 : vector<8x32xf32>
    %70 = arith.addf %68, %69 : vector<8x32xf32>
    %71 = math.tanh %70 : vector<8x32xf32>
    %72 = arith.mulf %67, %71 : vector<8x32xf32>
    %73 = vector.extract_strided_slice %47 {offsets = [0, 0], sizes = [8, 32], strides = [1, 1]} : vector<8x128xf32> to vector<8x32xf32>
    %74 = arith.negf %73 : vector<8x32xf32>
    %75 = math.exp %74 : vector<8x32xf32>
    %cst_45 = arith.constant 1.000000e+00 : f32
    %76 = vector.broadcast %cst_45 : f32 to vector<8x32xf32>
    %77 = arith.addf %76, %75 : vector<8x32xf32>
    %78 = arith.divf %76, %77 : vector<8x32xf32>
    %79 = vector.extract_strided_slice %47 {offsets = [0, 32], sizes = [8, 32], strides = [1, 1]} : vector<8x128xf32> to vector<8x32xf32>
    %80 = arith.negf %79 : vector<8x32xf32>
    %81 = math.exp %80 : vector<8x32xf32>
    %cst_46 = arith.constant 1.000000e+00 : f32
    %82 = vector.broadcast %cst_46 : f32 to vector<8x32xf32>
    %83 = arith.addf %82, %81 : vector<8x32xf32>
    %84 = arith.divf %82, %83 : vector<8x32xf32>
    %85 = vector.extract_strided_slice %47 {offsets = [0, 64], sizes = [8, 32], strides = [1, 1]} : vector<8x128xf32> to vector<8x32xf32>
    %86 = math.tanh %85 : vector<8x32xf32>
    %87 = vector.extract_strided_slice %47 {offsets = [0, 96], sizes = [8, 32], strides = [1, 1]} : vector<8x128xf32> to vector<8x32xf32>
    %88 = arith.negf %87 : vector<8x32xf32>
    %89 = math.exp %88 : vector<8x32xf32>
    %cst_47 = arith.constant 1.000000e+00 : f32
    %90 = vector.broadcast %cst_47 : f32 to vector<8x32xf32>
    %91 = arith.addf %90, %89 : vector<8x32xf32>
    %92 = arith.divf %90, %91 : vector<8x32xf32>
    %93 = arith.mulf %84, %31 : vector<8x32xf32>
    %94 = arith.mulf %78, %86 : vector<8x32xf32>
    %95 = arith.addf %93, %94 : vector<8x32xf32>
    %96 = math.tanh %95 : vector<8x32xf32>
    %97 = arith.mulf %92, %96 : vector<8x32xf32>
    %98 = vector.broadcast %32 : i32 to vector<8x1xi32>
    %99 = arith.cmpi slt, %98, %21 : vector<8x1xi32>
    %100 = vector.broadcast %33 : i32 to vector<8x1xi32>
    %101 = arith.cmpi slt, %100, %21 : vector<8x1xi32>
    %102 = vector.shape_cast %99 : vector<8x1xi1> to vector<8x1xi1>
    %103 = vector.broadcast %102 : vector<8x1xi1> to vector<8x32xi1>
    %104 = arith.select %103, %72, %25 : vector<8x32xi1>, vector<8x32xf32>
    %105 = vector.shape_cast %99 : vector<8x1xi1> to vector<8x1xi1>
    %106 = vector.broadcast %105 : vector<8x1xi1> to vector<8x32xi1>
    %107 = arith.select %106, %70, %27 : vector<8x32xi1>, vector<8x32xf32>
    %108 = vector.shape_cast %101 : vector<8x1xi1> to vector<8x1xi1>
    %109 = vector.broadcast %108 : vector<8x1xi1> to vector<8x32xi1>
    %110 = arith.select %109, %97, %29 : vector<8x32xi1>, vector<8x32xf32>
    %111 = vector.shape_cast %101 : vector<8x1xi1> to vector<8x1xi1>
    %112 = vector.broadcast %111 : vector<8x1xi1> to vector<8x32xi1>
    %113 = arith.select %112, %95, %31 : vector<8x32xi1>, vector<8x32xf32>
    %114 = arith.truncf %104 : vector<8x32xf32> to vector<8x32xbf16>
    %115 = arith.index_cast %c0_i32_36 : i32 to index
    %c0_48 = arith.constant 0 : index
    %c0_49 = arith.constant 0 : index
    %116 = vector.load %arg9[%115, %c0_48, %c0_49] : memref<4x8x32xbf16, #tpu.memory_space<vmem>>, vector<1x8x32xbf16>
    %117 = vector.shape_cast %116 : vector<1x8x32xbf16> to vector<8x32xbf16>
    %118 = vector.shape_cast %114 : vector<8x32xbf16> to vector<1x8x32xbf16>
    tpu.vector_store %arg9[%115, %c0_48, %c0_49], %118 {strides = array<i32>} : memref<4x8x32xbf16, #tpu.memory_space<vmem>>, vector<1x8x32xbf16>,
    %119 = arith.truncf %110 : vector<8x32xf32> to vector<8x32xbf16>
    %c3_i32_50 = arith.constant 3 : i32
    %120 = arith.subi %c3_i32_50, %c0_i32_36 : i32
    %121 = arith.index_cast %120 : i32 to index
    %c0_51 = arith.constant 0 : index
    %c0_52 = arith.constant 0 : index
    %122 = vector.load %arg10[%121, %c0_51, %c0_52] : memref<4x8x32xbf16, #tpu.memory_space<vmem>>, vector<1x8x32xbf16>
    %123 = vector.shape_cast %122 : vector<1x8x32xbf16> to vector<8x32xbf16>
    %124 = vector.shape_cast %119 : vector<8x32xbf16> to vector<1x8x32xbf16>
    tpu.vector_store %arg10[%121, %c0_51, %c0_52], %124 {strides = array<i32>} : memref<4x8x32xbf16, #tpu.memory_space<vmem>>, vector<1x8x32xbf16>,
    %c1_i32 = arith.constant 1 : i32
    %125 = arith.addi %23, %c1_i32 : i32
    %c7_i32_53 = arith.constant 7 : i32
    %126 = arith.subi %c7_i32_53, %125 : i32
    %127 = tpu.concatenate %104, %110 in 1 : vector<8x32xf32>, vector<8x32xf32> -> vector<8x64xf32>
    %128 = arith.truncf %127 : vector<8x64xf32> to vector<8x64xbf16>
    %cst_54 = arith.constant dense<0.000000e+00> : vector<8x256xf32>
    %129 = tpu.matmul %128, %22, %cst_54 {dimension_numbers = #tpu.dot_dimension_numbers<[1], [0], [0], [1], [0, 0, 1, 1], [], []>} : vector<8x64xbf16>, vector<64x256xbf16>, vector<8x256xf32> -> vector<8x256xf32>
    %130 = arith.index_cast %c1_i32 : i32 to index
    %c0_55 = arith.constant 0 : index
    %c0_56 = arith.constant 0 : index
    %131 = vector.load %arg11[%130, %c0_55, %c0_56] : memref<4x8x128xf32, #tpu.memory_space<vmem>>, vector<1x8x128xf32>
    %132 = vector.shape_cast %131 : vector<1x8x128xf32> to vector<8x128xf32>
    %133 = vector.extract_strided_slice %129 {offsets = [0, 0], sizes = [8, 128], strides = [1, 1]} : vector<8x256xf32> to vector<8x128xf32>
    %134 = arith.addf %132, %133 : vector<8x128xf32>
    %c3_i32_57 = arith.constant 3 : i32
    %135 = arith.subi %c3_i32_57, %c1_i32 : i32
    %136 = arith.index_cast %135 : i32 to index
    %c0_58 = arith.constant 0 : index
    %c0_59 = arith.constant 0 : index
    %137 = vector.load %arg12[%136, %c0_58, %c0_59] : memref<4x8x128xf32, #tpu.memory_space<vmem>>, vector<1x8x128xf32>
    %138 = vector.shape_cast %137 : vector<1x8x128xf32> to vector<8x128xf32>
    %139 = vector.extract_strided_slice %129 {offsets = [0, 128], sizes = [8, 128], strides = [1, 1]} : vector<8x256xf32> to vector<8x128xf32>
    %140 = arith.addf %138, %139 : vector<8x128xf32>
    %141 = vector.extract_strided_slice %134 {offsets = [0, 0], sizes = [8, 32], strides = [1, 1]} : vector<8x128xf32> to vector<8x32xf32>
    %142 = arith.negf %141 : vector<8x32xf32>
    %143 = math.exp %142 : vector<8x32xf32>
    %cst_60 = arith.constant 1.000000e+00 : f32
    %144 = vector.broadcast %cst_60 : f32 to vector<8x32xf32>
    %145 = arith.addf %144, %143 : vector<8x32xf32>
    %146 = arith.divf %144, %145 : vector<8x32xf32>
    %147 = vector.extract_strided_slice %134 {offsets = [0, 32], sizes = [8, 32], strides = [1, 1]} : vector<8x128xf32> to vector<8x32xf32>
    %148 = arith.negf %147 : vector<8x32xf32>
    %149 = math.exp %148 : vector<8x32xf32>
    %cst_61 = arith.constant 1.000000e+00 : f32
    %150 = vector.broadcast %cst_61 : f32 to vector<8x32xf32>
    %151 = arith.addf %150, %149 : vector<8x32xf32>
    %152 = arith.divf %150, %151 : vector<8x32xf32>
    %153 = vector.extract_strided_slice %134 {offsets = [0, 64], sizes = [8, 32], strides = [1, 1]} : vector<8x128xf32> to vector<8x32xf32>
    %154 = math.tanh %153 : vector<8x32xf32>
    %155 = vector.extract_strided_slice %134 {offsets = [0, 96], sizes = [8, 32], strides = [1, 1]} : vector<8x128xf32> to vector<8x32xf32>
    %156 = arith.negf %155 : vector<8x32xf32>
    %157 = math.exp %156 : vector<8x32xf32>
    %cst_62 = arith.constant 1.000000e+00 : f32
    %158 = vector.broadcast %cst_62 : f32 to vector<8x32xf32>
    %159 = arith.addf %158, %157 : vector<8x32xf32>
    %160 = arith.divf %158, %159 : vector<8x32xf32>
    %161 = arith.mulf %152, %107 : vector<8x32xf32>
    %162 = arith.mulf %146, %154 : vector<8x32xf32>
    %163 = arith.addf %161, %162 : vector<8x32xf32>
    %164 = math.tanh %163 : vector<8x32xf32>
    %165 = arith.mulf %160, %164 : vector<8x32xf32>
    %166 = vector.extract_strided_slice %140 {offsets = [0, 0], sizes = [8, 32], strides = [1, 1]} : vector<8x128xf32> to vector<8x32xf32>
    %167 = arith.negf %166 : vector<8x32xf32>
    %168 = math.exp %167 : vector<8x32xf32>
    %cst_63 = arith.constant 1.000000e+00 : f32
    %169 = vector.broadcast %cst_63 : f32 to vector<8x32xf32>
    %170 = arith.addf %169, %168 : vector<8x32xf32>
    %171 = arith.divf %169, %170 : vector<8x32xf32>
    %172 = vector.extract_strided_slice %140 {offsets = [0, 32], sizes = [8, 32], strides = [1, 1]} : vector<8x128xf32> to vector<8x32xf32>
    %173 = arith.negf %172 : vector<8x32xf32>
    %174 = math.exp %173 : vector<8x32xf32>
    %cst_64 = arith.constant 1.000000e+00 : f32
    %175 = vector.broadcast %cst_64 : f32 to vector<8x32xf32>
    %176 = arith.addf %175, %174 : vector<8x32xf32>
    %177 = arith.divf %175, %176 : vector<8x32xf32>
    %178 = vector.extract_strided_slice %140 {offsets = [0, 64], sizes = [8, 32], strides = [1, 1]} : vector<8x128xf32> to vector<8x32xf32>
    %179 = math.tanh %178 : vector<8x32xf32>
    %180 = vector.extract_strided_slice %140 {offsets = [0, 96], sizes = [8, 32], strides = [1, 1]} : vector<8x128xf32> to vector<8x32xf32>
    %181 = arith.negf %180 : vector<8x32xf32>
    %182 = math.exp %181 : vector<8x32xf32>
    %cst_65 = arith.constant 1.000000e+00 : f32
    %183 = vector.broadcast %cst_65 : f32 to vector<8x32xf32>
    %184 = arith.addf %183, %182 : vector<8x32xf32>
    %185 = arith.divf %183, %184 : vector<8x32xf32>
    %186 = arith.mulf %177, %113 : vector<8x32xf32>
    %187 = arith.mulf %171, %179 : vector<8x32xf32>
    %188 = arith.addf %186, %187 : vector<8x32xf32>
    %189 = math.tanh %188 : vector<8x32xf32>
    %190 = arith.mulf %185, %189 : vector<8x32xf32>
    %191 = vector.broadcast %125 : i32 to vector<8x1xi32>
    %192 = arith.cmpi slt, %191, %21 : vector<8x1xi32>
    %193 = vector.broadcast %126 : i32 to vector<8x1xi32>
    %194 = arith.cmpi slt, %193, %21 : vector<8x1xi32>
    %195 = vector.shape_cast %192 : vector<8x1xi1> to vector<8x1xi1>
    %196 = vector.broadcast %195 : vector<8x1xi1> to vector<8x32xi1>
    %197 = arith.select %196, %165, %104 : vector<8x32xi1>, vector<8x32xf32>
    %198 = vector.shape_cast %192 : vector<8x1xi1> to vector<8x1xi1>
    %199 = vector.broadcast %198 : vector<8x1xi1> to vector<8x32xi1>
    %200 = arith.select %199, %163, %107 : vector<8x32xi1>, vector<8x32xf32>
    %201 = vector.shape_cast %194 : vector<8x1xi1> to vector<8x1xi1>
    %202 = vector.broadcast %201 : vector<8x1xi1> to vector<8x32xi1>
    %203 = arith.select %202, %190, %110 : vector<8x32xi1>, vector<8x32xf32>
    %204 = vector.shape_cast %194 : vector<8x1xi1> to vector<8x1xi1>
    %205 = vector.broadcast %204 : vector<8x1xi1> to vector<8x32xi1>
    %206 = arith.select %205, %188, %113 : vector<8x32xi1>, vector<8x32xf32>
    %207 = arith.truncf %197 : vector<8x32xf32> to vector<8x32xbf16>
    %208 = arith.index_cast %c1_i32 : i32 to index
    %c0_66 = arith.constant 0 : index
    %c0_67 = arith.constant 0 : index
    %209 = vector.load %arg9[%208, %c0_66, %c0_67] : memref<4x8x32xbf16, #tpu.memory_space<vmem>>, vector<1x8x32xbf16>
    %210 = vector.shape_cast %209 : vector<1x8x32xbf16> to vector<8x32xbf16>
    %211 = vector.shape_cast %207 : vector<8x32xbf16> to vector<1x8x32xbf16>
    tpu.vector_store %arg9[%208, %c0_66, %c0_67], %211 {strides = array<i32>} : memref<4x8x32xbf16, #tpu.memory_space<vmem>>, vector<1x8x32xbf16>,
    %212 = arith.truncf %203 : vector<8x32xf32> to vector<8x32xbf16>
    %c3_i32_68 = arith.constant 3 : i32
    %213 = arith.subi %c3_i32_68, %c1_i32 : i32
    %214 = arith.index_cast %213 : i32 to index
    %c0_69 = arith.constant 0 : index
    %c0_70 = arith.constant 0 : index
    %215 = vector.load %arg10[%214, %c0_69, %c0_70] : memref<4x8x32xbf16, #tpu.memory_space<vmem>>, vector<1x8x32xbf16>
    %216 = vector.shape_cast %215 : vector<1x8x32xbf16> to vector<8x32xbf16>
    %217 = vector.shape_cast %212 : vector<8x32xbf16> to vector<1x8x32xbf16>
    tpu.vector_store %arg10[%214, %c0_69, %c0_70], %217 {strides = array<i32>} : memref<4x8x32xbf16, #tpu.memory_space<vmem>>, vector<1x8x32xbf16>,
    %c2_i32 = arith.constant 2 : i32
    %218 = arith.addi %23, %c2_i32 : i32
    %c7_i32_71 = arith.constant 7 : i32
    %219 = arith.subi %c7_i32_71, %218 : i32
    %220 = tpu.concatenate %197, %203 in 1 : vector<8x32xf32>, vector<8x32xf32> -> vector<8x64xf32>
    %221 = arith.truncf %220 : vector<8x64xf32> to vector<8x64xbf16>
    %cst_72 = arith.constant dense<0.000000e+00> : vector<8x256xf32>
    %222 = tpu.matmul %221, %22, %cst_72 {dimension_numbers = #tpu.dot_dimension_numbers<[1], [0], [0], [1], [0, 0, 1, 1], [], []>} : vector<8x64xbf16>, vector<64x256xbf16>, vector<8x256xf32> -> vector<8x256xf32>
    %223 = arith.index_cast %c2_i32 : i32 to index
    %c0_73 = arith.constant 0 : index
    %c0_74 = arith.constant 0 : index
    %224 = vector.load %arg11[%223, %c0_73, %c0_74] : memref<4x8x128xf32, #tpu.memory_space<vmem>>, vector<1x8x128xf32>
    %225 = vector.shape_cast %224 : vector<1x8x128xf32> to vector<8x128xf32>
    %226 = vector.extract_strided_slice %222 {offsets = [0, 0], sizes = [8, 128], strides = [1, 1]} : vector<8x256xf32> to vector<8x128xf32>
    %227 = arith.addf %225, %226 : vector<8x128xf32>
    %c3_i32_75 = arith.constant 3 : i32
    %228 = arith.subi %c3_i32_75, %c2_i32 : i32
    %229 = arith.index_cast %228 : i32 to index
    %c0_76 = arith.constant 0 : index
    %c0_77 = arith.constant 0 : index
    %230 = vector.load %arg12[%229, %c0_76, %c0_77] : memref<4x8x128xf32, #tpu.memory_space<vmem>>, vector<1x8x128xf32>
    %231 = vector.shape_cast %230 : vector<1x8x128xf32> to vector<8x128xf32>
    %232 = vector.extract_strided_slice %222 {offsets = [0, 128], sizes = [8, 128], strides = [1, 1]} : vector<8x256xf32> to vector<8x128xf32>
    %233 = arith.addf %231, %232 : vector<8x128xf32>
    %234 = vector.extract_strided_slice %227 {offsets = [0, 0], sizes = [8, 32], strides = [1, 1]} : vector<8x128xf32> to vector<8x32xf32>
    %235 = arith.negf %234 : vector<8x32xf32>
    %236 = math.exp %235 : vector<8x32xf32>
    %cst_78 = arith.constant 1.000000e+00 : f32
    %237 = vector.broadcast %cst_78 : f32 to vector<8x32xf32>
    %238 = arith.addf %237, %236 : vector<8x32xf32>
    %239 = arith.divf %237, %238 : vector<8x32xf32>
    %240 = vector.extract_strided_slice %227 {offsets = [0, 32], sizes = [8, 32], strides = [1, 1]} : vector<8x128xf32> to vector<8x32xf32>
    %241 = arith.negf %240 : vector<8x32xf32>
    %242 = math.exp %241 : vector<8x32xf32>
    %cst_79 = arith.constant 1.000000e+00 : f32
    %243 = vector.broadcast %cst_79 : f32 to vector<8x32xf32>
    %244 = arith.addf %243, %242 : vector<8x32xf32>
    %245 = arith.divf %243, %244 : vector<8x32xf32>
    %246 = vector.extract_strided_slice %227 {offsets = [0, 64], sizes = [8, 32], strides = [1, 1]} : vector<8x128xf32> to vector<8x32xf32>
    %247 = math.tanh %246 : vector<8x32xf32>
    %248 = vector.extract_strided_slice %227 {offsets = [0, 96], sizes = [8, 32], strides = [1, 1]} : vector<8x128xf32> to vector<8x32xf32>
    %249 = arith.negf %248 : vector<8x32xf32>
    %250 = math.exp %249 : vector<8x32xf32>
    %cst_80 = arith.constant 1.000000e+00 : f32
    %251 = vector.broadcast %cst_80 : f32 to vector<8x32xf32>
    %252 = arith.addf %251, %250 : vector<8x32xf32>
    %253 = arith.divf %251, %252 : vector<8x32xf32>
    %254 = arith.mulf %245, %200 : vector<8x32xf32>
    %255 = arith.mulf %239, %247 : vector<8x32xf32>
    %256 = arith.addf %254, %255 : vector<8x32xf32>
    %257 = math.tanh %256 : vector<8x32xf32>
    %258 = arith.mulf %253, %257 : vector<8x32xf32>
    %259 = vector.extract_strided_slice %233 {offsets = [0, 0], sizes = [8, 32], strides = [1, 1]} : vector<8x128xf32> to vector<8x32xf32>
    %260 = arith.negf %259 : vector<8x32xf32>
    %261 = math.exp %260 : vector<8x32xf32>
    %cst_81 = arith.constant 1.000000e+00 : f32
    %262 = vector.broadcast %cst_81 : f32 to vector<8x32xf32>
    %263 = arith.addf %262, %261 : vector<8x32xf32>
    %264 = arith.divf %262, %263 : vector<8x32xf32>
    %265 = vector.extract_strided_slice %233 {offsets = [0, 32], sizes = [8, 32], strides = [1, 1]} : vector<8x128xf32> to vector<8x32xf32>
    %266 = arith.negf %265 : vector<8x32xf32>
    %267 = math.exp %266 : vector<8x32xf32>
    %cst_82 = arith.constant 1.000000e+00 : f32
    %268 = vector.broadcast %cst_82 : f32 to vector<8x32xf32>
    %269 = arith.addf %268, %267 : vector<8x32xf32>
    %270 = arith.divf %268, %269 : vector<8x32xf32>
    %271 = vector.extract_strided_slice %233 {offsets = [0, 64], sizes = [8, 32], strides = [1, 1]} : vector<8x128xf32> to vector<8x32xf32>
    %272 = math.tanh %271 : vector<8x32xf32>
    %273 = vector.extract_strided_slice %233 {offsets = [0, 96], sizes = [8, 32], strides = [1, 1]} : vector<8x128xf32> to vector<8x32xf32>
    %274 = arith.negf %273 : vector<8x32xf32>
    %275 = math.exp %274 : vector<8x32xf32>
    %cst_83 = arith.constant 1.000000e+00 : f32
    %276 = vector.broadcast %cst_83 : f32 to vector<8x32xf32>
    %277 = arith.addf %276, %275 : vector<8x32xf32>
    %278 = arith.divf %276, %277 : vector<8x32xf32>
    %279 = arith.mulf %270, %206 : vector<8x32xf32>
    %280 = arith.mulf %264, %272 : vector<8x32xf32>
    %281 = arith.addf %279, %280 : vector<8x32xf32>
    %282 = math.tanh %281 : vector<8x32xf32>
    %283 = arith.mulf %278, %282 : vector<8x32xf32>
    %284 = vector.broadcast %218 : i32 to vector<8x1xi32>
    %285 = arith.cmpi slt, %284, %21 : vector<8x1xi32>
    %286 = vector.broadcast %219 : i32 to vector<8x1xi32>
    %287 = arith.cmpi slt, %286, %21 : vector<8x1xi32>
    %288 = vector.shape_cast %285 : vector<8x1xi1> to vector<8x1xi1>
    %289 = vector.broadcast %288 : vector<8x1xi1> to vector<8x32xi1>
    %290 = arith.select %289, %258, %197 : vector<8x32xi1>, vector<8x32xf32>
    %291 = vector.shape_cast %285 : vector<8x1xi1> to vector<8x1xi1>
    %292 = vector.broadcast %291 : vector<8x1xi1> to vector<8x32xi1>
    %293 = arith.select %292, %256, %200 : vector<8x32xi1>, vector<8x32xf32>
    %294 = vector.shape_cast %287 : vector<8x1xi1> to vector<8x1xi1>
    %295 = vector.broadcast %294 : vector<8x1xi1> to vector<8x32xi1>
    %296 = arith.select %295, %283, %203 : vector<8x32xi1>, vector<8x32xf32>
    %297 = vector.shape_cast %287 : vector<8x1xi1> to vector<8x1xi1>
    %298 = vector.broadcast %297 : vector<8x1xi1> to vector<8x32xi1>
    %299 = arith.select %298, %281, %206 : vector<8x32xi1>, vector<8x32xf32>
    %300 = arith.truncf %290 : vector<8x32xf32> to vector<8x32xbf16>
    %301 = arith.index_cast %c2_i32 : i32 to index
    %c0_84 = arith.constant 0 : index
    %c0_85 = arith.constant 0 : index
    %302 = vector.load %arg9[%301, %c0_84, %c0_85] : memref<4x8x32xbf16, #tpu.memory_space<vmem>>, vector<1x8x32xbf16>
    %303 = vector.shape_cast %302 : vector<1x8x32xbf16> to vector<8x32xbf16>
    %304 = vector.shape_cast %300 : vector<8x32xbf16> to vector<1x8x32xbf16>
    tpu.vector_store %arg9[%301, %c0_84, %c0_85], %304 {strides = array<i32>} : memref<4x8x32xbf16, #tpu.memory_space<vmem>>, vector<1x8x32xbf16>,
    %305 = arith.truncf %296 : vector<8x32xf32> to vector<8x32xbf16>
    %c3_i32_86 = arith.constant 3 : i32
    %306 = arith.subi %c3_i32_86, %c2_i32 : i32
    %307 = arith.index_cast %306 : i32 to index
    %c0_87 = arith.constant 0 : index
    %c0_88 = arith.constant 0 : index
    %308 = vector.load %arg10[%307, %c0_87, %c0_88] : memref<4x8x32xbf16, #tpu.memory_space<vmem>>, vector<1x8x32xbf16>
    %309 = vector.shape_cast %308 : vector<1x8x32xbf16> to vector<8x32xbf16>
    %310 = vector.shape_cast %305 : vector<8x32xbf16> to vector<1x8x32xbf16>
    tpu.vector_store %arg10[%307, %c0_87, %c0_88], %310 {strides = array<i32>} : memref<4x8x32xbf16, #tpu.memory_space<vmem>>, vector<1x8x32xbf16>,
    %c3_i32_89 = arith.constant 3 : i32
    %311 = arith.addi %23, %c3_i32_89 : i32
    %c7_i32_90 = arith.constant 7 : i32
    %312 = arith.subi %c7_i32_90, %311 : i32
    %313 = tpu.concatenate %290, %296 in 1 : vector<8x32xf32>, vector<8x32xf32> -> vector<8x64xf32>
    %314 = arith.truncf %313 : vector<8x64xf32> to vector<8x64xbf16>
    %cst_91 = arith.constant dense<0.000000e+00> : vector<8x256xf32>
    %315 = tpu.matmul %314, %22, %cst_91 {dimension_numbers = #tpu.dot_dimension_numbers<[1], [0], [0], [1], [0, 0, 1, 1], [], []>} : vector<8x64xbf16>, vector<64x256xbf16>, vector<8x256xf32> -> vector<8x256xf32>
    %316 = arith.index_cast %c3_i32_89 : i32 to index
    %c0_92 = arith.constant 0 : index
    %c0_93 = arith.constant 0 : index
    %317 = vector.load %arg11[%316, %c0_92, %c0_93] : memref<4x8x128xf32, #tpu.memory_space<vmem>>, vector<1x8x128xf32>
    %318 = vector.shape_cast %317 : vector<1x8x128xf32> to vector<8x128xf32>
    %319 = vector.extract_strided_slice %315 {offsets = [0, 0], sizes = [8, 128], strides = [1, 1]} : vector<8x256xf32> to vector<8x128xf32>
    %320 = arith.addf %318, %319 : vector<8x128xf32>
    %c3_i32_94 = arith.constant 3 : i32
    %321 = arith.subi %c3_i32_94, %c3_i32_89 : i32
    %322 = arith.index_cast %321 : i32 to index
    %c0_95 = arith.constant 0 : index
    %c0_96 = arith.constant 0 : index
    %323 = vector.load %arg12[%322, %c0_95, %c0_96] : memref<4x8x128xf32, #tpu.memory_space<vmem>>, vector<1x8x128xf32>
    %324 = vector.shape_cast %323 : vector<1x8x128xf32> to vector<8x128xf32>
    %325 = vector.extract_strided_slice %315 {offsets = [0, 128], sizes = [8, 128], strides = [1, 1]} : vector<8x256xf32> to vector<8x128xf32>
    %326 = arith.addf %324, %325 : vector<8x128xf32>
    %327 = vector.extract_strided_slice %320 {offsets = [0, 0], sizes = [8, 32], strides = [1, 1]} : vector<8x128xf32> to vector<8x32xf32>
    %328 = arith.negf %327 : vector<8x32xf32>
    %329 = math.exp %328 : vector<8x32xf32>
    %cst_97 = arith.constant 1.000000e+00 : f32
    %330 = vector.broadcast %cst_97 : f32 to vector<8x32xf32>
    %331 = arith.addf %330, %329 : vector<8x32xf32>
    %332 = arith.divf %330, %331 : vector<8x32xf32>
    %333 = vector.extract_strided_slice %320 {offsets = [0, 32], sizes = [8, 32], strides = [1, 1]} : vector<8x128xf32> to vector<8x32xf32>
    %334 = arith.negf %333 : vector<8x32xf32>
    %335 = math.exp %334 : vector<8x32xf32>
    %cst_98 = arith.constant 1.000000e+00 : f32
    %336 = vector.broadcast %cst_98 : f32 to vector<8x32xf32>
    %337 = arith.addf %336, %335 : vector<8x32xf32>
    %338 = arith.divf %336, %337 : vector<8x32xf32>
    %339 = vector.extract_strided_slice %320 {offsets = [0, 64], sizes = [8, 32], strides = [1, 1]} : vector<8x128xf32> to vector<8x32xf32>
    %340 = math.tanh %339 : vector<8x32xf32>
    %341 = vector.extract_strided_slice %320 {offsets = [0, 96], sizes = [8, 32], strides = [1, 1]} : vector<8x128xf32> to vector<8x32xf32>
    %342 = arith.negf %341 : vector<8x32xf32>
    %343 = math.exp %342 : vector<8x32xf32>
    %cst_99 = arith.constant 1.000000e+00 : f32
    %344 = vector.broadcast %cst_99 : f32 to vector<8x32xf32>
    %345 = arith.addf %344, %343 : vector<8x32xf32>
    %346 = arith.divf %344, %345 : vector<8x32xf32>
    %347 = arith.mulf %338, %293 : vector<8x32xf32>
    %348 = arith.mulf %332, %340 : vector<8x32xf32>
    %349 = arith.addf %347, %348 : vector<8x32xf32>
    %350 = math.tanh %349 : vector<8x32xf32>
    %351 = arith.mulf %346, %350 : vector<8x32xf32>
    %352 = vector.extract_strided_slice %326 {offsets = [0, 0], sizes = [8, 32], strides = [1, 1]} : vector<8x128xf32> to vector<8x32xf32>
    %353 = arith.negf %352 : vector<8x32xf32>
    %354 = math.exp %353 : vector<8x32xf32>
    %cst_100 = arith.constant 1.000000e+00 : f32
    %355 = vector.broadcast %cst_100 : f32 to vector<8x32xf32>
    %356 = arith.addf %355, %354 : vector<8x32xf32>
    %357 = arith.divf %355, %356 : vector<8x32xf32>
    %358 = vector.extract_strided_slice %326 {offsets = [0, 32], sizes = [8, 32], strides = [1, 1]} : vector<8x128xf32> to vector<8x32xf32>
    %359 = arith.negf %358 : vector<8x32xf32>
    %360 = math.exp %359 : vector<8x32xf32>
    %cst_101 = arith.constant 1.000000e+00 : f32
    %361 = vector.broadcast %cst_101 : f32 to vector<8x32xf32>
    %362 = arith.addf %361, %360 : vector<8x32xf32>
    %363 = arith.divf %361, %362 : vector<8x32xf32>
    %364 = vector.extract_strided_slice %326 {offsets = [0, 64], sizes = [8, 32], strides = [1, 1]} : vector<8x128xf32> to vector<8x32xf32>
    %365 = math.tanh %364 : vector<8x32xf32>
    %366 = vector.extract_strided_slice %326 {offsets = [0, 96], sizes = [8, 32], strides = [1, 1]} : vector<8x128xf32> to vector<8x32xf32>
    %367 = arith.negf %366 : vector<8x32xf32>
    %368 = math.exp %367 : vector<8x32xf32>
    %cst_102 = arith.constant 1.000000e+00 : f32
    %369 = vector.broadcast %cst_102 : f32 to vector<8x32xf32>
    %370 = arith.addf %369, %368 : vector<8x32xf32>
    %371 = arith.divf %369, %370 : vector<8x32xf32>
    %372 = arith.mulf %363, %299 : vector<8x32xf32>
    %373 = arith.mulf %357, %365 : vector<8x32xf32>
    %374 = arith.addf %372, %373 : vector<8x32xf32>
    %375 = math.tanh %374 : vector<8x32xf32>
    %376 = arith.mulf %371, %375 : vector<8x32xf32>
    %377 = vector.broadcast %311 : i32 to vector<8x1xi32>
    %378 = arith.cmpi slt, %377, %21 : vector<8x1xi32>
    %379 = vector.broadcast %312 : i32 to vector<8x1xi32>
    %380 = arith.cmpi slt, %379, %21 : vector<8x1xi32>
    %381 = vector.shape_cast %378 : vector<8x1xi1> to vector<8x1xi1>
    %382 = vector.broadcast %381 : vector<8x1xi1> to vector<8x32xi1>
    %383 = arith.select %382, %351, %290 : vector<8x32xi1>, vector<8x32xf32>
    %384 = vector.shape_cast %378 : vector<8x1xi1> to vector<8x1xi1>
    %385 = vector.broadcast %384 : vector<8x1xi1> to vector<8x32xi1>
    %386 = arith.select %385, %349, %293 : vector<8x32xi1>, vector<8x32xf32>
    %387 = vector.shape_cast %380 : vector<8x1xi1> to vector<8x1xi1>
    %388 = vector.broadcast %387 : vector<8x1xi1> to vector<8x32xi1>
    %389 = arith.select %388, %376, %296 : vector<8x32xi1>, vector<8x32xf32>
    %390 = vector.shape_cast %380 : vector<8x1xi1> to vector<8x1xi1>
    %391 = vector.broadcast %390 : vector<8x1xi1> to vector<8x32xi1>
    %392 = arith.select %391, %374, %299 : vector<8x32xi1>, vector<8x32xf32>
    %393 = arith.truncf %383 : vector<8x32xf32> to vector<8x32xbf16>
    %394 = arith.index_cast %c3_i32_89 : i32 to index
    %c0_103 = arith.constant 0 : index
    %c0_104 = arith.constant 0 : index
    %395 = vector.load %arg9[%394, %c0_103, %c0_104] : memref<4x8x32xbf16, #tpu.memory_space<vmem>>, vector<1x8x32xbf16>
    %396 = vector.shape_cast %395 : vector<1x8x32xbf16> to vector<8x32xbf16>
    %397 = vector.shape_cast %393 : vector<8x32xbf16> to vector<1x8x32xbf16>
    tpu.vector_store %arg9[%394, %c0_103, %c0_104], %397 {strides = array<i32>} : memref<4x8x32xbf16, #tpu.memory_space<vmem>>, vector<1x8x32xbf16>,
    %398 = arith.truncf %389 : vector<8x32xf32> to vector<8x32xbf16>
    %c3_i32_105 = arith.constant 3 : i32
    %399 = arith.subi %c3_i32_105, %c3_i32_89 : i32
    %400 = arith.index_cast %399 : i32 to index
    %c0_106 = arith.constant 0 : index
    %c0_107 = arith.constant 0 : index
    %401 = vector.load %arg10[%400, %c0_106, %c0_107] : memref<4x8x32xbf16, #tpu.memory_space<vmem>>, vector<1x8x32xbf16>
    %402 = vector.shape_cast %401 : vector<1x8x32xbf16> to vector<8x32xbf16>
    %403 = vector.shape_cast %398 : vector<8x32xbf16> to vector<1x8x32xbf16>
    tpu.vector_store %arg10[%400, %c0_106, %c0_107], %403 {strides = array<i32>} : memref<4x8x32xbf16, #tpu.memory_space<vmem>>, vector<1x8x32xbf16>,
    %c4_i32_108 = arith.constant 4 : i32
    %c0_109 = arith.constant 0 : index
    %c0_110 = arith.constant 0 : index
    %c0_111 = arith.constant 0 : index
    %404 = vector.load %arg13[%c0_109, %c0_110, %c0_111] : memref<2x8x32xf32, #tpu.memory_space<vmem>>, vector<1x8x32xf32>
    %405 = vector.shape_cast %404 : vector<1x8x32xf32> to vector<8x32xf32>
    %406 = vector.shape_cast %383 : vector<8x32xf32> to vector<1x8x32xf32>
    tpu.vector_store %arg13[%c0_109, %c0_110, %c0_111], %406 {strides = array<i32>} : memref<2x8x32xf32, #tpu.memory_space<vmem>>, vector<1x8x32xf32>,
    %c0_112 = arith.constant 0 : index
    %c0_113 = arith.constant 0 : index
    %c0_114 = arith.constant 0 : index
    %407 = vector.load %arg14[%c0_112, %c0_113, %c0_114] : memref<2x8x32xf32, #tpu.memory_space<vmem>>, vector<1x8x32xf32>
    %408 = vector.shape_cast %407 : vector<1x8x32xf32> to vector<8x32xf32>
    %409 = vector.shape_cast %386 : vector<8x32xf32> to vector<1x8x32xf32>
    tpu.vector_store %arg14[%c0_112, %c0_113, %c0_114], %409 {strides = array<i32>} : memref<2x8x32xf32, #tpu.memory_space<vmem>>, vector<1x8x32xf32>,
    %c1_115 = arith.constant 1 : index
    %c0_116 = arith.constant 0 : index
    %c0_117 = arith.constant 0 : index
    %410 = vector.load %arg13[%c1_115, %c0_116, %c0_117] : memref<2x8x32xf32, #tpu.memory_space<vmem>>, vector<1x8x32xf32>
    %411 = vector.shape_cast %410 : vector<1x8x32xf32> to vector<8x32xf32>
    %412 = vector.shape_cast %389 : vector<8x32xf32> to vector<1x8x32xf32>
    tpu.vector_store %arg13[%c1_115, %c0_116, %c0_117], %412 {strides = array<i32>} : memref<2x8x32xf32, #tpu.memory_space<vmem>>, vector<1x8x32xf32>,
    %c1_118 = arith.constant 1 : index
    %c0_119 = arith.constant 0 : index
    %c0_120 = arith.constant 0 : index
    %413 = vector.load %arg14[%c1_118, %c0_119, %c0_120] : memref<2x8x32xf32, #tpu.memory_space<vmem>>, vector<1x8x32xf32>
    %414 = vector.shape_cast %413 : vector<1x8x32xf32> to vector<8x32xf32>
    %415 = vector.shape_cast %392 : vector<8x32xf32> to vector<1x8x32xf32>
    tpu.vector_store %arg14[%c1_118, %c0_119, %c0_120], %415 {strides = array<i32>} : memref<2x8x32xf32, #tpu.memory_space<vmem>>, vector<1x8x32xf32>,
    return
  }
  func.func @transform_0(%arg0: i32) -> (i32, i32, i32) {
    %c0_i32 = arith.constant 0 : i32
    %c0_i32_0 = arith.constant 0 : i32
    %c0_i32_1 = arith.constant 0 : i32
    return %arg0, %c0_i32, %c0_i32_0 : i32, i32, i32
  }
  func.func @transform_1(%arg0: i32) -> (i32, i32, i32) {
    %c1_i32 = arith.constant 1 : i32
    %0 = arith.subi %c1_i32, %arg0 : i32
    %c0_i32 = arith.constant 0 : i32
    %c0_i32_0 = arith.constant 0 : i32
    %c0_i32_1 = arith.constant 0 : i32
    return %0, %c0_i32, %c0_i32_0 : i32, i32, i32
  }
  func.func @transform_2(%arg0: i32) -> (i32, i32) {
    %c0_i32 = arith.constant 0 : i32
    %c0_i32_0 = arith.constant 0 : i32
    %c0_i32_1 = arith.constant 0 : i32
    return %c0_i32, %c0_i32_0 : i32, i32
  }
  func.func @transform_3(%arg0: i32) -> (i32, i32) {
    %c0_i32 = arith.constant 0 : i32
    %c0_i32_0 = arith.constant 0 : i32
    %c0_i32_1 = arith.constant 0 : i32
    return %c0_i32, %c0_i32_0 : i32, i32
  }
  func.func @transform_4(%arg0: i32) -> (i32, i32) {
    %c0_i32 = arith.constant 0 : i32
    %c0_i32_0 = arith.constant 0 : i32
    %c0_i32_1 = arith.constant 0 : i32
    return %c0_i32, %c0_i32_0 : i32, i32
  }
  func.func @transform_5(%arg0: i32) -> (i32, i32) {
    %c0_i32 = arith.constant 0 : i32
    %c0_i32_0 = arith.constant 0 : i32
    %c0_i32_1 = arith.constant 0 : i32
    return %c0_i32, %c0_i32_0 : i32, i32
  }
  func.func @transform_6(%arg0: i32) -> (i32, i32) {
    %c0_i32 = arith.constant 0 : i32
    %c0_i32_0 = arith.constant 0 : i32
    %c0_i32_1 = arith.constant 0 : i32
    return %c0_i32, %c0_i32_0 : i32, i32
  }
  func.func @transform_7(%arg0: i32) -> (i32, i32) {
    %c0_i32 = arith.constant 0 : i32
    %c0_i32_0 = arith.constant 0 : i32
    %c0_i32_1 = arith.constant 0 : i32
    return %c0_i32, %c0_i32_0 : i32, i32
  }
  func.func @transform_8(%arg0: i32) -> (i32, i32, i32) {
    %c0_i32 = arith.constant 0 : i32
    %c0_i32_0 = arith.constant 0 : i32
    %c0_i32_1 = arith.constant 0 : i32
    return %arg0, %c0_i32, %c0_i32_0 : i32, i32, i32
  }
  func.func @transform_9(%arg0: i32) -> (i32, i32, i32) {
    %c1_i32 = arith.constant 1 : i32
    %0 = arith.subi %c1_i32, %arg0 : i32
    %c0_i32 = arith.constant 0 : i32
    %c0_i32_0 = arith.constant 0 : i32
    %c0_i32_1 = arith.constant 0 : i32
    return %0, %c0_i32, %c0_i32_0 : i32, i32, i32
  }
}

module attributes {stable_mosaic.version = 11 : i64} {
  func.func @kernel(%arg0: i32, %arg1: memref<4x8x32xbf16, #tpu.memory_space<vmem>>, %arg2: memref<4x8x32xbf16, #tpu.memory_space<vmem>>, %arg3: memref<4x8x32xbf16, #tpu.memory_space<vmem>>, %arg4: memref<4x8x32xbf16, #tpu.memory_space<vmem>>, %arg5: memref<64x128xbf16, #tpu.memory_space<vmem>>, %arg6: memref<64x128xbf16, #tpu.memory_space<vmem>>, %arg7: memref<64x256xbf16, #tpu.memory_space<vmem>>, %arg8: memref<1x128xf32, #tpu.memory_space<vmem>>, %arg9: memref<1x128xf32, #tpu.memory_space<vmem>>, %arg10: memref<8x1xi32, #tpu.memory_space<vmem>>, %arg11: memref<64x4xbf16, #tpu.memory_space<vmem>>, %arg12: memref<1x4xf32, #tpu.memory_space<vmem>>, %arg13: memref<8x4xf32, #tpu.memory_space<vmem>>, %arg14: memref<4x8x128xf32, #tpu.memory_space<vmem>>, %arg15: memref<4x8x128xf32, #tpu.memory_space<vmem>>, %arg16: memref<2x8x32xf32, #tpu.memory_space<vmem>>, %arg17: memref<2x8x32xf32, #tpu.memory_space<vmem>>) attributes {dimension_semantics = [#tpu.dimension_semantics<arbitrary>], iteration_bounds = array<i64: 2>, scalar_prefetch = 0 : i64, scratch_operands = 4 : i64, tpu.core_type = #tpu.core_type<tc>, window_params = [{transform_indices = @transform_0, window_bounds = array<i64: 4, 8, 32>}, {transform_indices = @transform_1, window_bounds = array<i64: 4, 8, 32>}, {transform_indices = @transform_2, window_bounds = array<i64: 4, 8, 32>}, {transform_indices = @transform_3, window_bounds = array<i64: 4, 8, 32>}, {pipeline_mode = #tpu.pipeline_mode<synchronous>, transform_indices = @transform_4, window_bounds = array<i64: 64, 128>}, {pipeline_mode = #tpu.pipeline_mode<synchronous>, transform_indices = @transform_5, window_bounds = array<i64: 64, 128>}, {pipeline_mode = #tpu.pipeline_mode<synchronous>, transform_indices = @transform_6, window_bounds = array<i64: 64, 256>}, {pipeline_mode = #tpu.pipeline_mode<synchronous>, transform_indices = @transform_7, window_bounds = array<i64: 1, 128>}, {pipeline_mode = #tpu.pipeline_mode<synchronous>, transform_indices = @transform_8, window_bounds = array<i64: 1, 128>}, {pipeline_mode = #tpu.pipeline_mode<synchronous>, transform_indices = @transform_9, window_bounds = array<i64: 8, 1>}, {pipeline_mode = #tpu.pipeline_mode<synchronous>, transform_indices = @transform_10, window_bounds = array<i64: 64, 4>}, {pipeline_mode = #tpu.pipeline_mode<synchronous>, transform_indices = @transform_11, window_bounds = array<i64: 1, 4>}, {pipeline_mode = #tpu.pipeline_mode<synchronous>, transform_indices = @transform_12, window_bounds = array<i64: 8, 4>}]} {
    %c0 = arith.constant 0 : index
    %c0_0 = arith.constant 0 : index
    %c0_1 = arith.constant 0 : index
    %0 = vector.load %arg1[%c0, %c0_0, %c0_1] : memref<4x8x32xbf16, #tpu.memory_space<vmem>>, vector<4x8x32xbf16>
    %1 = vector.shape_cast %0 : vector<4x8x32xbf16> to vector<32x32xbf16>
    %c0_2 = arith.constant 0 : index
    %c0_3 = arith.constant 0 : index
    %c0_4 = arith.constant 0 : index
    %2 = vector.load %arg2[%c0_2, %c0_3, %c0_4] : memref<4x8x32xbf16, #tpu.memory_space<vmem>>, vector<4x8x32xbf16>
    %3 = vector.shape_cast %2 : vector<4x8x32xbf16> to vector<32x32xbf16>
    %c0_5 = arith.constant 0 : index
    %c0_6 = arith.constant 0 : index
    %4 = vector.load %arg5[%c0_5, %c0_6] : memref<64x128xbf16, #tpu.memory_space<vmem>>, vector<64x128xbf16>
    %5 = vector.extract_strided_slice %4 {offsets = [0, 0], sizes = [32, 128], strides = [1, 1]} : vector<64x128xbf16> to vector<32x128xbf16>
    %cst = arith.constant dense<0.000000e+00> : vector<32x128xf32>
    %6 = tpu.matmul %1, %5, %cst {dimension_numbers = #tpu.dot_dimension_numbers<[1], [0], [0], [1], [0, 0, 1, 1], [], []>} : vector<32x32xbf16>, vector<32x128xbf16>, vector<32x128xf32> -> vector<32x128xf32>
    %7 = vector.extract_strided_slice %4 {offsets = [32, 0], sizes = [32, 128], strides = [1, 1]} : vector<64x128xbf16> to vector<32x128xbf16>
    %cst_7 = arith.constant dense<0.000000e+00> : vector<32x128xf32>
    %8 = tpu.matmul %3, %7, %cst_7 {dimension_numbers = #tpu.dot_dimension_numbers<[1], [0], [0], [1], [0, 0, 1, 1], [], []>} : vector<32x32xbf16>, vector<32x128xbf16>, vector<32x128xf32> -> vector<32x128xf32>
    %9 = arith.addf %6, %8 : vector<32x128xf32>
    %c0_8 = arith.constant 0 : index
    %c0_9 = arith.constant 0 : index
    %10 = vector.load %arg8[%c0_8, %c0_9] : memref<1x128xf32, #tpu.memory_space<vmem>>, vector<1x128xf32>
    %11 = vector.broadcast %10 : vector<1x128xf32> to vector<32x128xf32>
    %12 = arith.addf %9, %11 : vector<32x128xf32>
    %13 = vector.shape_cast %12 : vector<32x128xf32> to vector<4x8x128xf32>
    %c0_10 = arith.constant 0 : index
    %c0_11 = arith.constant 0 : index
    %c0_12 = arith.constant 0 : index
    %14 = vector.load %arg14[%c0_10, %c0_11, %c0_12] : memref<4x8x128xf32, #tpu.memory_space<vmem>>, vector<4x8x128xf32>
    tpu.vector_store %arg14[%c0_10, %c0_11, %c0_12], %13 {strides = array<i32>} : memref<4x8x128xf32, #tpu.memory_space<vmem>>, vector<4x8x128xf32>,
    %c0_13 = arith.constant 0 : index
    %c0_14 = arith.constant 0 : index
    %c0_15 = arith.constant 0 : index
    %15 = vector.load %arg3[%c0_13, %c0_14, %c0_15] : memref<4x8x32xbf16, #tpu.memory_space<vmem>>, vector<4x8x32xbf16>
    %16 = vector.shape_cast %15 : vector<4x8x32xbf16> to vector<32x32xbf16>
    %c0_16 = arith.constant 0 : index
    %c0_17 = arith.constant 0 : index
    %c0_18 = arith.constant 0 : index
    %17 = vector.load %arg4[%c0_16, %c0_17, %c0_18] : memref<4x8x32xbf16, #tpu.memory_space<vmem>>, vector<4x8x32xbf16>
    %18 = vector.shape_cast %17 : vector<4x8x32xbf16> to vector<32x32xbf16>
    %c0_19 = arith.constant 0 : index
    %c0_20 = arith.constant 0 : index
    %19 = vector.load %arg6[%c0_19, %c0_20] : memref<64x128xbf16, #tpu.memory_space<vmem>>, vector<64x128xbf16>
    %20 = vector.extract_strided_slice %19 {offsets = [0, 0], sizes = [32, 128], strides = [1, 1]} : vector<64x128xbf16> to vector<32x128xbf16>
    %cst_21 = arith.constant dense<0.000000e+00> : vector<32x128xf32>
    %21 = tpu.matmul %16, %20, %cst_21 {dimension_numbers = #tpu.dot_dimension_numbers<[1], [0], [0], [1], [0, 0, 1, 1], [], []>} : vector<32x32xbf16>, vector<32x128xbf16>, vector<32x128xf32> -> vector<32x128xf32>
    %22 = vector.extract_strided_slice %19 {offsets = [32, 0], sizes = [32, 128], strides = [1, 1]} : vector<64x128xbf16> to vector<32x128xbf16>
    %cst_22 = arith.constant dense<0.000000e+00> : vector<32x128xf32>
    %23 = tpu.matmul %18, %22, %cst_22 {dimension_numbers = #tpu.dot_dimension_numbers<[1], [0], [0], [1], [0, 0, 1, 1], [], []>} : vector<32x32xbf16>, vector<32x128xbf16>, vector<32x128xf32> -> vector<32x128xf32>
    %24 = arith.addf %21, %23 : vector<32x128xf32>
    %c0_23 = arith.constant 0 : index
    %c0_24 = arith.constant 0 : index
    %25 = vector.load %arg9[%c0_23, %c0_24] : memref<1x128xf32, #tpu.memory_space<vmem>>, vector<1x128xf32>
    %26 = vector.broadcast %25 : vector<1x128xf32> to vector<32x128xf32>
    %27 = arith.addf %24, %26 : vector<32x128xf32>
    %28 = vector.shape_cast %27 : vector<32x128xf32> to vector<4x8x128xf32>
    %c0_25 = arith.constant 0 : index
    %c0_26 = arith.constant 0 : index
    %c0_27 = arith.constant 0 : index
    %29 = vector.load %arg15[%c0_25, %c0_26, %c0_27] : memref<4x8x128xf32, #tpu.memory_space<vmem>>, vector<4x8x128xf32>
    tpu.vector_store %arg15[%c0_25, %c0_26, %c0_27], %28 {strides = array<i32>} : memref<4x8x128xf32, #tpu.memory_space<vmem>>, vector<4x8x128xf32>,
    %c0_i32 = arith.constant 0 : i32
    %30 = arith.cmpi eq, %arg0, %c0_i32 : i32
    %31 = arith.extui %30 : i1 to i32
    %c0_i32_28 = arith.constant 0 : i32
    %32 = arith.cmpi ne, %31, %c0_i32_28 : i32
    scf.if %32 {
      %cst_111 = arith.constant 0.000000e+00 : f32
      %387 = vector.broadcast %cst_111 : f32 to vector<2x8x32xf32>
      %c0_112 = arith.constant 0 : index
      %c0_113 = arith.constant 0 : index
      %c0_114 = arith.constant 0 : index
      %388 = vector.load %arg16[%c0_112, %c0_113, %c0_114] : memref<2x8x32xf32, #tpu.memory_space<vmem>>, vector<2x8x32xf32>
      tpu.vector_store %arg16[%c0_112, %c0_113, %c0_114], %387 {strides = array<i32>} : memref<2x8x32xf32, #tpu.memory_space<vmem>>, vector<2x8x32xf32>,
      %cst_115 = arith.constant 0.000000e+00 : f32
      %389 = vector.broadcast %cst_115 : f32 to vector<2x8x32xf32>
      %c0_116 = arith.constant 0 : index
      %c0_117 = arith.constant 0 : index
      %c0_118 = arith.constant 0 : index
      %390 = vector.load %arg17[%c0_116, %c0_117, %c0_118] : memref<2x8x32xf32, #tpu.memory_space<vmem>>, vector<2x8x32xf32>
      tpu.vector_store %arg17[%c0_116, %c0_117, %c0_118], %389 {strides = array<i32>} : memref<2x8x32xf32, #tpu.memory_space<vmem>>, vector<2x8x32xf32>,
    } else {
    }
    %c0_29 = arith.constant 0 : index
    %c0_30 = arith.constant 0 : index
    %33 = vector.load %arg10[%c0_29, %c0_30] : memref<8x1xi32, #tpu.memory_space<vmem>>, vector<8x1xi32>
    %c0_31 = arith.constant 0 : index
    %c0_32 = arith.constant 0 : index
    %34 = vector.load %arg7[%c0_31, %c0_32] : memref<64x256xbf16, #tpu.memory_space<vmem>>, vector<64x256xbf16>
    %c4_i32 = arith.constant 4 : i32
    %35 = arith.muli %arg0, %c4_i32 : i32
    %c0_33 = arith.constant 0 : index
    %c0_34 = arith.constant 0 : index
    %c0_35 = arith.constant 0 : index
    %36 = vector.load %arg16[%c0_33, %c0_34, %c0_35] : memref<2x8x32xf32, #tpu.memory_space<vmem>>, vector<1x8x32xf32>
    %37 = vector.shape_cast %36 : vector<1x8x32xf32> to vector<8x32xf32>
    %c0_36 = arith.constant 0 : index
    %c0_37 = arith.constant 0 : index
    %c0_38 = arith.constant 0 : index
    %38 = vector.load %arg17[%c0_36, %c0_37, %c0_38] : memref<2x8x32xf32, #tpu.memory_space<vmem>>, vector<1x8x32xf32>
    %39 = vector.shape_cast %38 : vector<1x8x32xf32> to vector<8x32xf32>
    %c1 = arith.constant 1 : index
    %c0_39 = arith.constant 0 : index
    %c0_40 = arith.constant 0 : index
    %40 = vector.load %arg16[%c1, %c0_39, %c0_40] : memref<2x8x32xf32, #tpu.memory_space<vmem>>, vector<1x8x32xf32>
    %41 = vector.shape_cast %40 : vector<1x8x32xf32> to vector<8x32xf32>
    %c1_41 = arith.constant 1 : index
    %c0_42 = arith.constant 0 : index
    %c0_43 = arith.constant 0 : index
    %42 = vector.load %arg17[%c1_41, %c0_42, %c0_43] : memref<2x8x32xf32, #tpu.memory_space<vmem>>, vector<1x8x32xf32>
    %43 = vector.shape_cast %42 : vector<1x8x32xf32> to vector<8x32xf32>
    %c0_i32_44 = arith.constant 0 : i32
    %44 = arith.addi %35, %c0_i32_44 : i32
    %c7_i32 = arith.constant 7 : i32
    %45 = arith.subi %c7_i32, %44 : i32
    %46 = tpu.concatenate %37, %41 in 1 : vector<8x32xf32>, vector<8x32xf32> -> vector<8x64xf32>
    %47 = arith.truncf %46 : vector<8x64xf32> to vector<8x64xbf16>
    %cst_45 = arith.constant dense<0.000000e+00> : vector<8x256xf32>
    %48 = tpu.matmul %47, %34, %cst_45 {dimension_numbers = #tpu.dot_dimension_numbers<[1], [0], [0], [1], [0, 0, 1, 1], [], []>} : vector<8x64xbf16>, vector<64x256xbf16>, vector<8x256xf32> -> vector<8x256xf32>
    %49 = arith.index_cast %c0_i32_44 : i32 to index
    %c0_46 = arith.constant 0 : index
    %c0_47 = arith.constant 0 : index
    %50 = vector.load %arg14[%49, %c0_46, %c0_47] : memref<4x8x128xf32, #tpu.memory_space<vmem>>, vector<1x8x128xf32>
    %51 = vector.shape_cast %50 : vector<1x8x128xf32> to vector<8x128xf32>
    %52 = vector.extract_strided_slice %48 {offsets = [0, 0], sizes = [8, 128], strides = [1, 1]} : vector<8x256xf32> to vector<8x128xf32>
    %53 = arith.addf %51, %52 : vector<8x128xf32>
    %c3_i32 = arith.constant 3 : i32
    %54 = arith.subi %c3_i32, %c0_i32_44 : i32
    %55 = arith.index_cast %54 : i32 to index
    %c0_48 = arith.constant 0 : index
    %c0_49 = arith.constant 0 : index
    %56 = vector.load %arg15[%55, %c0_48, %c0_49] : memref<4x8x128xf32, #tpu.memory_space<vmem>>, vector<1x8x128xf32>
    %57 = vector.shape_cast %56 : vector<1x8x128xf32> to vector<8x128xf32>
    %58 = vector.extract_strided_slice %48 {offsets = [0, 128], sizes = [8, 128], strides = [1, 1]} : vector<8x256xf32> to vector<8x128xf32>
    %59 = arith.addf %57, %58 : vector<8x128xf32>
    %60 = vector.extract_strided_slice %53 {offsets = [0, 0], sizes = [8, 32], strides = [1, 1]} : vector<8x128xf32> to vector<8x32xf32>
    %61 = arith.negf %60 : vector<8x32xf32>
    %62 = math.exp %61 : vector<8x32xf32>
    %cst_50 = arith.constant 1.000000e+00 : f32
    %63 = vector.broadcast %cst_50 : f32 to vector<8x32xf32>
    %64 = arith.addf %63, %62 : vector<8x32xf32>
    %65 = arith.divf %63, %64 : vector<8x32xf32>
    %66 = vector.extract_strided_slice %53 {offsets = [0, 32], sizes = [8, 32], strides = [1, 1]} : vector<8x128xf32> to vector<8x32xf32>
    %67 = arith.negf %66 : vector<8x32xf32>
    %68 = math.exp %67 : vector<8x32xf32>
    %cst_51 = arith.constant 1.000000e+00 : f32
    %69 = vector.broadcast %cst_51 : f32 to vector<8x32xf32>
    %70 = arith.addf %69, %68 : vector<8x32xf32>
    %71 = arith.divf %69, %70 : vector<8x32xf32>
    %72 = vector.extract_strided_slice %53 {offsets = [0, 64], sizes = [8, 32], strides = [1, 1]} : vector<8x128xf32> to vector<8x32xf32>
    %73 = math.tanh %72 : vector<8x32xf32>
    %74 = vector.extract_strided_slice %53 {offsets = [0, 96], sizes = [8, 32], strides = [1, 1]} : vector<8x128xf32> to vector<8x32xf32>
    %75 = arith.negf %74 : vector<8x32xf32>
    %76 = math.exp %75 : vector<8x32xf32>
    %cst_52 = arith.constant 1.000000e+00 : f32
    %77 = vector.broadcast %cst_52 : f32 to vector<8x32xf32>
    %78 = arith.addf %77, %76 : vector<8x32xf32>
    %79 = arith.divf %77, %78 : vector<8x32xf32>
    %80 = arith.mulf %71, %39 : vector<8x32xf32>
    %81 = arith.mulf %65, %73 : vector<8x32xf32>
    %82 = arith.addf %80, %81 : vector<8x32xf32>
    %83 = math.tanh %82 : vector<8x32xf32>
    %84 = arith.mulf %79, %83 : vector<8x32xf32>
    %85 = vector.extract_strided_slice %59 {offsets = [0, 0], sizes = [8, 32], strides = [1, 1]} : vector<8x128xf32> to vector<8x32xf32>
    %86 = arith.negf %85 : vector<8x32xf32>
    %87 = math.exp %86 : vector<8x32xf32>
    %cst_53 = arith.constant 1.000000e+00 : f32
    %88 = vector.broadcast %cst_53 : f32 to vector<8x32xf32>
    %89 = arith.addf %88, %87 : vector<8x32xf32>
    %90 = arith.divf %88, %89 : vector<8x32xf32>
    %91 = vector.extract_strided_slice %59 {offsets = [0, 32], sizes = [8, 32], strides = [1, 1]} : vector<8x128xf32> to vector<8x32xf32>
    %92 = arith.negf %91 : vector<8x32xf32>
    %93 = math.exp %92 : vector<8x32xf32>
    %cst_54 = arith.constant 1.000000e+00 : f32
    %94 = vector.broadcast %cst_54 : f32 to vector<8x32xf32>
    %95 = arith.addf %94, %93 : vector<8x32xf32>
    %96 = arith.divf %94, %95 : vector<8x32xf32>
    %97 = vector.extract_strided_slice %59 {offsets = [0, 64], sizes = [8, 32], strides = [1, 1]} : vector<8x128xf32> to vector<8x32xf32>
    %98 = math.tanh %97 : vector<8x32xf32>
    %99 = vector.extract_strided_slice %59 {offsets = [0, 96], sizes = [8, 32], strides = [1, 1]} : vector<8x128xf32> to vector<8x32xf32>
    %100 = arith.negf %99 : vector<8x32xf32>
    %101 = math.exp %100 : vector<8x32xf32>
    %cst_55 = arith.constant 1.000000e+00 : f32
    %102 = vector.broadcast %cst_55 : f32 to vector<8x32xf32>
    %103 = arith.addf %102, %101 : vector<8x32xf32>
    %104 = arith.divf %102, %103 : vector<8x32xf32>
    %105 = arith.mulf %96, %43 : vector<8x32xf32>
    %106 = arith.mulf %90, %98 : vector<8x32xf32>
    %107 = arith.addf %105, %106 : vector<8x32xf32>
    %108 = math.tanh %107 : vector<8x32xf32>
    %109 = arith.mulf %104, %108 : vector<8x32xf32>
    %110 = vector.broadcast %44 : i32 to vector<8x1xi32>
    %111 = arith.cmpi slt, %110, %33 : vector<8x1xi32>
    %112 = vector.broadcast %45 : i32 to vector<8x1xi32>
    %113 = arith.cmpi slt, %112, %33 : vector<8x1xi32>
    %114 = vector.shape_cast %111 : vector<8x1xi1> to vector<8x1xi1>
    %115 = vector.broadcast %114 : vector<8x1xi1> to vector<8x32xi1>
    %116 = arith.select %115, %84, %37 : vector<8x32xi1>, vector<8x32xf32>
    %117 = vector.shape_cast %111 : vector<8x1xi1> to vector<8x1xi1>
    %118 = vector.broadcast %117 : vector<8x1xi1> to vector<8x32xi1>
    %119 = arith.select %118, %82, %39 : vector<8x32xi1>, vector<8x32xf32>
    %120 = vector.shape_cast %113 : vector<8x1xi1> to vector<8x1xi1>
    %121 = vector.broadcast %120 : vector<8x1xi1> to vector<8x32xi1>
    %122 = arith.select %121, %109, %41 : vector<8x32xi1>, vector<8x32xf32>
    %123 = vector.shape_cast %113 : vector<8x1xi1> to vector<8x1xi1>
    %124 = vector.broadcast %123 : vector<8x1xi1> to vector<8x32xi1>
    %125 = arith.select %124, %107, %43 : vector<8x32xi1>, vector<8x32xf32>
    %c1_i32 = arith.constant 1 : i32
    %126 = arith.addi %35, %c1_i32 : i32
    %c7_i32_56 = arith.constant 7 : i32
    %127 = arith.subi %c7_i32_56, %126 : i32
    %128 = tpu.concatenate %116, %122 in 1 : vector<8x32xf32>, vector<8x32xf32> -> vector<8x64xf32>
    %129 = arith.truncf %128 : vector<8x64xf32> to vector<8x64xbf16>
    %cst_57 = arith.constant dense<0.000000e+00> : vector<8x256xf32>
    %130 = tpu.matmul %129, %34, %cst_57 {dimension_numbers = #tpu.dot_dimension_numbers<[1], [0], [0], [1], [0, 0, 1, 1], [], []>} : vector<8x64xbf16>, vector<64x256xbf16>, vector<8x256xf32> -> vector<8x256xf32>
    %131 = arith.index_cast %c1_i32 : i32 to index
    %c0_58 = arith.constant 0 : index
    %c0_59 = arith.constant 0 : index
    %132 = vector.load %arg14[%131, %c0_58, %c0_59] : memref<4x8x128xf32, #tpu.memory_space<vmem>>, vector<1x8x128xf32>
    %133 = vector.shape_cast %132 : vector<1x8x128xf32> to vector<8x128xf32>
    %134 = vector.extract_strided_slice %130 {offsets = [0, 0], sizes = [8, 128], strides = [1, 1]} : vector<8x256xf32> to vector<8x128xf32>
    %135 = arith.addf %133, %134 : vector<8x128xf32>
    %c3_i32_60 = arith.constant 3 : i32
    %136 = arith.subi %c3_i32_60, %c1_i32 : i32
    %137 = arith.index_cast %136 : i32 to index
    %c0_61 = arith.constant 0 : index
    %c0_62 = arith.constant 0 : index
    %138 = vector.load %arg15[%137, %c0_61, %c0_62] : memref<4x8x128xf32, #tpu.memory_space<vmem>>, vector<1x8x128xf32>
    %139 = vector.shape_cast %138 : vector<1x8x128xf32> to vector<8x128xf32>
    %140 = vector.extract_strided_slice %130 {offsets = [0, 128], sizes = [8, 128], strides = [1, 1]} : vector<8x256xf32> to vector<8x128xf32>
    %141 = arith.addf %139, %140 : vector<8x128xf32>
    %142 = vector.extract_strided_slice %135 {offsets = [0, 0], sizes = [8, 32], strides = [1, 1]} : vector<8x128xf32> to vector<8x32xf32>
    %143 = arith.negf %142 : vector<8x32xf32>
    %144 = math.exp %143 : vector<8x32xf32>
    %cst_63 = arith.constant 1.000000e+00 : f32
    %145 = vector.broadcast %cst_63 : f32 to vector<8x32xf32>
    %146 = arith.addf %145, %144 : vector<8x32xf32>
    %147 = arith.divf %145, %146 : vector<8x32xf32>
    %148 = vector.extract_strided_slice %135 {offsets = [0, 32], sizes = [8, 32], strides = [1, 1]} : vector<8x128xf32> to vector<8x32xf32>
    %149 = arith.negf %148 : vector<8x32xf32>
    %150 = math.exp %149 : vector<8x32xf32>
    %cst_64 = arith.constant 1.000000e+00 : f32
    %151 = vector.broadcast %cst_64 : f32 to vector<8x32xf32>
    %152 = arith.addf %151, %150 : vector<8x32xf32>
    %153 = arith.divf %151, %152 : vector<8x32xf32>
    %154 = vector.extract_strided_slice %135 {offsets = [0, 64], sizes = [8, 32], strides = [1, 1]} : vector<8x128xf32> to vector<8x32xf32>
    %155 = math.tanh %154 : vector<8x32xf32>
    %156 = vector.extract_strided_slice %135 {offsets = [0, 96], sizes = [8, 32], strides = [1, 1]} : vector<8x128xf32> to vector<8x32xf32>
    %157 = arith.negf %156 : vector<8x32xf32>
    %158 = math.exp %157 : vector<8x32xf32>
    %cst_65 = arith.constant 1.000000e+00 : f32
    %159 = vector.broadcast %cst_65 : f32 to vector<8x32xf32>
    %160 = arith.addf %159, %158 : vector<8x32xf32>
    %161 = arith.divf %159, %160 : vector<8x32xf32>
    %162 = arith.mulf %153, %119 : vector<8x32xf32>
    %163 = arith.mulf %147, %155 : vector<8x32xf32>
    %164 = arith.addf %162, %163 : vector<8x32xf32>
    %165 = math.tanh %164 : vector<8x32xf32>
    %166 = arith.mulf %161, %165 : vector<8x32xf32>
    %167 = vector.extract_strided_slice %141 {offsets = [0, 0], sizes = [8, 32], strides = [1, 1]} : vector<8x128xf32> to vector<8x32xf32>
    %168 = arith.negf %167 : vector<8x32xf32>
    %169 = math.exp %168 : vector<8x32xf32>
    %cst_66 = arith.constant 1.000000e+00 : f32
    %170 = vector.broadcast %cst_66 : f32 to vector<8x32xf32>
    %171 = arith.addf %170, %169 : vector<8x32xf32>
    %172 = arith.divf %170, %171 : vector<8x32xf32>
    %173 = vector.extract_strided_slice %141 {offsets = [0, 32], sizes = [8, 32], strides = [1, 1]} : vector<8x128xf32> to vector<8x32xf32>
    %174 = arith.negf %173 : vector<8x32xf32>
    %175 = math.exp %174 : vector<8x32xf32>
    %cst_67 = arith.constant 1.000000e+00 : f32
    %176 = vector.broadcast %cst_67 : f32 to vector<8x32xf32>
    %177 = arith.addf %176, %175 : vector<8x32xf32>
    %178 = arith.divf %176, %177 : vector<8x32xf32>
    %179 = vector.extract_strided_slice %141 {offsets = [0, 64], sizes = [8, 32], strides = [1, 1]} : vector<8x128xf32> to vector<8x32xf32>
    %180 = math.tanh %179 : vector<8x32xf32>
    %181 = vector.extract_strided_slice %141 {offsets = [0, 96], sizes = [8, 32], strides = [1, 1]} : vector<8x128xf32> to vector<8x32xf32>
    %182 = arith.negf %181 : vector<8x32xf32>
    %183 = math.exp %182 : vector<8x32xf32>
    %cst_68 = arith.constant 1.000000e+00 : f32
    %184 = vector.broadcast %cst_68 : f32 to vector<8x32xf32>
    %185 = arith.addf %184, %183 : vector<8x32xf32>
    %186 = arith.divf %184, %185 : vector<8x32xf32>
    %187 = arith.mulf %178, %125 : vector<8x32xf32>
    %188 = arith.mulf %172, %180 : vector<8x32xf32>
    %189 = arith.addf %187, %188 : vector<8x32xf32>
    %190 = math.tanh %189 : vector<8x32xf32>
    %191 = arith.mulf %186, %190 : vector<8x32xf32>
    %192 = vector.broadcast %126 : i32 to vector<8x1xi32>
    %193 = arith.cmpi slt, %192, %33 : vector<8x1xi32>
    %194 = vector.broadcast %127 : i32 to vector<8x1xi32>
    %195 = arith.cmpi slt, %194, %33 : vector<8x1xi32>
    %196 = vector.shape_cast %193 : vector<8x1xi1> to vector<8x1xi1>
    %197 = vector.broadcast %196 : vector<8x1xi1> to vector<8x32xi1>
    %198 = arith.select %197, %166, %116 : vector<8x32xi1>, vector<8x32xf32>
    %199 = vector.shape_cast %193 : vector<8x1xi1> to vector<8x1xi1>
    %200 = vector.broadcast %199 : vector<8x1xi1> to vector<8x32xi1>
    %201 = arith.select %200, %164, %119 : vector<8x32xi1>, vector<8x32xf32>
    %202 = vector.shape_cast %195 : vector<8x1xi1> to vector<8x1xi1>
    %203 = vector.broadcast %202 : vector<8x1xi1> to vector<8x32xi1>
    %204 = arith.select %203, %191, %122 : vector<8x32xi1>, vector<8x32xf32>
    %205 = vector.shape_cast %195 : vector<8x1xi1> to vector<8x1xi1>
    %206 = vector.broadcast %205 : vector<8x1xi1> to vector<8x32xi1>
    %207 = arith.select %206, %189, %125 : vector<8x32xi1>, vector<8x32xf32>
    %c2_i32 = arith.constant 2 : i32
    %208 = arith.addi %35, %c2_i32 : i32
    %c7_i32_69 = arith.constant 7 : i32
    %209 = arith.subi %c7_i32_69, %208 : i32
    %210 = tpu.concatenate %198, %204 in 1 : vector<8x32xf32>, vector<8x32xf32> -> vector<8x64xf32>
    %211 = arith.truncf %210 : vector<8x64xf32> to vector<8x64xbf16>
    %cst_70 = arith.constant dense<0.000000e+00> : vector<8x256xf32>
    %212 = tpu.matmul %211, %34, %cst_70 {dimension_numbers = #tpu.dot_dimension_numbers<[1], [0], [0], [1], [0, 0, 1, 1], [], []>} : vector<8x64xbf16>, vector<64x256xbf16>, vector<8x256xf32> -> vector<8x256xf32>
    %213 = arith.index_cast %c2_i32 : i32 to index
    %c0_71 = arith.constant 0 : index
    %c0_72 = arith.constant 0 : index
    %214 = vector.load %arg14[%213, %c0_71, %c0_72] : memref<4x8x128xf32, #tpu.memory_space<vmem>>, vector<1x8x128xf32>
    %215 = vector.shape_cast %214 : vector<1x8x128xf32> to vector<8x128xf32>
    %216 = vector.extract_strided_slice %212 {offsets = [0, 0], sizes = [8, 128], strides = [1, 1]} : vector<8x256xf32> to vector<8x128xf32>
    %217 = arith.addf %215, %216 : vector<8x128xf32>
    %c3_i32_73 = arith.constant 3 : i32
    %218 = arith.subi %c3_i32_73, %c2_i32 : i32
    %219 = arith.index_cast %218 : i32 to index
    %c0_74 = arith.constant 0 : index
    %c0_75 = arith.constant 0 : index
    %220 = vector.load %arg15[%219, %c0_74, %c0_75] : memref<4x8x128xf32, #tpu.memory_space<vmem>>, vector<1x8x128xf32>
    %221 = vector.shape_cast %220 : vector<1x8x128xf32> to vector<8x128xf32>
    %222 = vector.extract_strided_slice %212 {offsets = [0, 128], sizes = [8, 128], strides = [1, 1]} : vector<8x256xf32> to vector<8x128xf32>
    %223 = arith.addf %221, %222 : vector<8x128xf32>
    %224 = vector.extract_strided_slice %217 {offsets = [0, 0], sizes = [8, 32], strides = [1, 1]} : vector<8x128xf32> to vector<8x32xf32>
    %225 = arith.negf %224 : vector<8x32xf32>
    %226 = math.exp %225 : vector<8x32xf32>
    %cst_76 = arith.constant 1.000000e+00 : f32
    %227 = vector.broadcast %cst_76 : f32 to vector<8x32xf32>
    %228 = arith.addf %227, %226 : vector<8x32xf32>
    %229 = arith.divf %227, %228 : vector<8x32xf32>
    %230 = vector.extract_strided_slice %217 {offsets = [0, 32], sizes = [8, 32], strides = [1, 1]} : vector<8x128xf32> to vector<8x32xf32>
    %231 = arith.negf %230 : vector<8x32xf32>
    %232 = math.exp %231 : vector<8x32xf32>
    %cst_77 = arith.constant 1.000000e+00 : f32
    %233 = vector.broadcast %cst_77 : f32 to vector<8x32xf32>
    %234 = arith.addf %233, %232 : vector<8x32xf32>
    %235 = arith.divf %233, %234 : vector<8x32xf32>
    %236 = vector.extract_strided_slice %217 {offsets = [0, 64], sizes = [8, 32], strides = [1, 1]} : vector<8x128xf32> to vector<8x32xf32>
    %237 = math.tanh %236 : vector<8x32xf32>
    %238 = vector.extract_strided_slice %217 {offsets = [0, 96], sizes = [8, 32], strides = [1, 1]} : vector<8x128xf32> to vector<8x32xf32>
    %239 = arith.negf %238 : vector<8x32xf32>
    %240 = math.exp %239 : vector<8x32xf32>
    %cst_78 = arith.constant 1.000000e+00 : f32
    %241 = vector.broadcast %cst_78 : f32 to vector<8x32xf32>
    %242 = arith.addf %241, %240 : vector<8x32xf32>
    %243 = arith.divf %241, %242 : vector<8x32xf32>
    %244 = arith.mulf %235, %201 : vector<8x32xf32>
    %245 = arith.mulf %229, %237 : vector<8x32xf32>
    %246 = arith.addf %244, %245 : vector<8x32xf32>
    %247 = math.tanh %246 : vector<8x32xf32>
    %248 = arith.mulf %243, %247 : vector<8x32xf32>
    %249 = vector.extract_strided_slice %223 {offsets = [0, 0], sizes = [8, 32], strides = [1, 1]} : vector<8x128xf32> to vector<8x32xf32>
    %250 = arith.negf %249 : vector<8x32xf32>
    %251 = math.exp %250 : vector<8x32xf32>
    %cst_79 = arith.constant 1.000000e+00 : f32
    %252 = vector.broadcast %cst_79 : f32 to vector<8x32xf32>
    %253 = arith.addf %252, %251 : vector<8x32xf32>
    %254 = arith.divf %252, %253 : vector<8x32xf32>
    %255 = vector.extract_strided_slice %223 {offsets = [0, 32], sizes = [8, 32], strides = [1, 1]} : vector<8x128xf32> to vector<8x32xf32>
    %256 = arith.negf %255 : vector<8x32xf32>
    %257 = math.exp %256 : vector<8x32xf32>
    %cst_80 = arith.constant 1.000000e+00 : f32
    %258 = vector.broadcast %cst_80 : f32 to vector<8x32xf32>
    %259 = arith.addf %258, %257 : vector<8x32xf32>
    %260 = arith.divf %258, %259 : vector<8x32xf32>
    %261 = vector.extract_strided_slice %223 {offsets = [0, 64], sizes = [8, 32], strides = [1, 1]} : vector<8x128xf32> to vector<8x32xf32>
    %262 = math.tanh %261 : vector<8x32xf32>
    %263 = vector.extract_strided_slice %223 {offsets = [0, 96], sizes = [8, 32], strides = [1, 1]} : vector<8x128xf32> to vector<8x32xf32>
    %264 = arith.negf %263 : vector<8x32xf32>
    %265 = math.exp %264 : vector<8x32xf32>
    %cst_81 = arith.constant 1.000000e+00 : f32
    %266 = vector.broadcast %cst_81 : f32 to vector<8x32xf32>
    %267 = arith.addf %266, %265 : vector<8x32xf32>
    %268 = arith.divf %266, %267 : vector<8x32xf32>
    %269 = arith.mulf %260, %207 : vector<8x32xf32>
    %270 = arith.mulf %254, %262 : vector<8x32xf32>
    %271 = arith.addf %269, %270 : vector<8x32xf32>
    %272 = math.tanh %271 : vector<8x32xf32>
    %273 = arith.mulf %268, %272 : vector<8x32xf32>
    %274 = vector.broadcast %208 : i32 to vector<8x1xi32>
    %275 = arith.cmpi slt, %274, %33 : vector<8x1xi32>
    %276 = vector.broadcast %209 : i32 to vector<8x1xi32>
    %277 = arith.cmpi slt, %276, %33 : vector<8x1xi32>
    %278 = vector.shape_cast %275 : vector<8x1xi1> to vector<8x1xi1>
    %279 = vector.broadcast %278 : vector<8x1xi1> to vector<8x32xi1>
    %280 = arith.select %279, %248, %198 : vector<8x32xi1>, vector<8x32xf32>
    %281 = vector.shape_cast %275 : vector<8x1xi1> to vector<8x1xi1>
    %282 = vector.broadcast %281 : vector<8x1xi1> to vector<8x32xi1>
    %283 = arith.select %282, %246, %201 : vector<8x32xi1>, vector<8x32xf32>
    %284 = vector.shape_cast %277 : vector<8x1xi1> to vector<8x1xi1>
    %285 = vector.broadcast %284 : vector<8x1xi1> to vector<8x32xi1>
    %286 = arith.select %285, %273, %204 : vector<8x32xi1>, vector<8x32xf32>
    %287 = vector.shape_cast %277 : vector<8x1xi1> to vector<8x1xi1>
    %288 = vector.broadcast %287 : vector<8x1xi1> to vector<8x32xi1>
    %289 = arith.select %288, %271, %207 : vector<8x32xi1>, vector<8x32xf32>
    %c3_i32_82 = arith.constant 3 : i32
    %290 = arith.addi %35, %c3_i32_82 : i32
    %c7_i32_83 = arith.constant 7 : i32
    %291 = arith.subi %c7_i32_83, %290 : i32
    %292 = tpu.concatenate %280, %286 in 1 : vector<8x32xf32>, vector<8x32xf32> -> vector<8x64xf32>
    %293 = arith.truncf %292 : vector<8x64xf32> to vector<8x64xbf16>
    %cst_84 = arith.constant dense<0.000000e+00> : vector<8x256xf32>
    %294 = tpu.matmul %293, %34, %cst_84 {dimension_numbers = #tpu.dot_dimension_numbers<[1], [0], [0], [1], [0, 0, 1, 1], [], []>} : vector<8x64xbf16>, vector<64x256xbf16>, vector<8x256xf32> -> vector<8x256xf32>
    %295 = arith.index_cast %c3_i32_82 : i32 to index
    %c0_85 = arith.constant 0 : index
    %c0_86 = arith.constant 0 : index
    %296 = vector.load %arg14[%295, %c0_85, %c0_86] : memref<4x8x128xf32, #tpu.memory_space<vmem>>, vector<1x8x128xf32>
    %297 = vector.shape_cast %296 : vector<1x8x128xf32> to vector<8x128xf32>
    %298 = vector.extract_strided_slice %294 {offsets = [0, 0], sizes = [8, 128], strides = [1, 1]} : vector<8x256xf32> to vector<8x128xf32>
    %299 = arith.addf %297, %298 : vector<8x128xf32>
    %c3_i32_87 = arith.constant 3 : i32
    %300 = arith.subi %c3_i32_87, %c3_i32_82 : i32
    %301 = arith.index_cast %300 : i32 to index
    %c0_88 = arith.constant 0 : index
    %c0_89 = arith.constant 0 : index
    %302 = vector.load %arg15[%301, %c0_88, %c0_89] : memref<4x8x128xf32, #tpu.memory_space<vmem>>, vector<1x8x128xf32>
    %303 = vector.shape_cast %302 : vector<1x8x128xf32> to vector<8x128xf32>
    %304 = vector.extract_strided_slice %294 {offsets = [0, 128], sizes = [8, 128], strides = [1, 1]} : vector<8x256xf32> to vector<8x128xf32>
    %305 = arith.addf %303, %304 : vector<8x128xf32>
    %306 = vector.extract_strided_slice %299 {offsets = [0, 0], sizes = [8, 32], strides = [1, 1]} : vector<8x128xf32> to vector<8x32xf32>
    %307 = arith.negf %306 : vector<8x32xf32>
    %308 = math.exp %307 : vector<8x32xf32>
    %cst_90 = arith.constant 1.000000e+00 : f32
    %309 = vector.broadcast %cst_90 : f32 to vector<8x32xf32>
    %310 = arith.addf %309, %308 : vector<8x32xf32>
    %311 = arith.divf %309, %310 : vector<8x32xf32>
    %312 = vector.extract_strided_slice %299 {offsets = [0, 32], sizes = [8, 32], strides = [1, 1]} : vector<8x128xf32> to vector<8x32xf32>
    %313 = arith.negf %312 : vector<8x32xf32>
    %314 = math.exp %313 : vector<8x32xf32>
    %cst_91 = arith.constant 1.000000e+00 : f32
    %315 = vector.broadcast %cst_91 : f32 to vector<8x32xf32>
    %316 = arith.addf %315, %314 : vector<8x32xf32>
    %317 = arith.divf %315, %316 : vector<8x32xf32>
    %318 = vector.extract_strided_slice %299 {offsets = [0, 64], sizes = [8, 32], strides = [1, 1]} : vector<8x128xf32> to vector<8x32xf32>
    %319 = math.tanh %318 : vector<8x32xf32>
    %320 = vector.extract_strided_slice %299 {offsets = [0, 96], sizes = [8, 32], strides = [1, 1]} : vector<8x128xf32> to vector<8x32xf32>
    %321 = arith.negf %320 : vector<8x32xf32>
    %322 = math.exp %321 : vector<8x32xf32>
    %cst_92 = arith.constant 1.000000e+00 : f32
    %323 = vector.broadcast %cst_92 : f32 to vector<8x32xf32>
    %324 = arith.addf %323, %322 : vector<8x32xf32>
    %325 = arith.divf %323, %324 : vector<8x32xf32>
    %326 = arith.mulf %317, %283 : vector<8x32xf32>
    %327 = arith.mulf %311, %319 : vector<8x32xf32>
    %328 = arith.addf %326, %327 : vector<8x32xf32>
    %329 = math.tanh %328 : vector<8x32xf32>
    %330 = arith.mulf %325, %329 : vector<8x32xf32>
    %331 = vector.extract_strided_slice %305 {offsets = [0, 0], sizes = [8, 32], strides = [1, 1]} : vector<8x128xf32> to vector<8x32xf32>
    %332 = arith.negf %331 : vector<8x32xf32>
    %333 = math.exp %332 : vector<8x32xf32>
    %cst_93 = arith.constant 1.000000e+00 : f32
    %334 = vector.broadcast %cst_93 : f32 to vector<8x32xf32>
    %335 = arith.addf %334, %333 : vector<8x32xf32>
    %336 = arith.divf %334, %335 : vector<8x32xf32>
    %337 = vector.extract_strided_slice %305 {offsets = [0, 32], sizes = [8, 32], strides = [1, 1]} : vector<8x128xf32> to vector<8x32xf32>
    %338 = arith.negf %337 : vector<8x32xf32>
    %339 = math.exp %338 : vector<8x32xf32>
    %cst_94 = arith.constant 1.000000e+00 : f32
    %340 = vector.broadcast %cst_94 : f32 to vector<8x32xf32>
    %341 = arith.addf %340, %339 : vector<8x32xf32>
    %342 = arith.divf %340, %341 : vector<8x32xf32>
    %343 = vector.extract_strided_slice %305 {offsets = [0, 64], sizes = [8, 32], strides = [1, 1]} : vector<8x128xf32> to vector<8x32xf32>
    %344 = math.tanh %343 : vector<8x32xf32>
    %345 = vector.extract_strided_slice %305 {offsets = [0, 96], sizes = [8, 32], strides = [1, 1]} : vector<8x128xf32> to vector<8x32xf32>
    %346 = arith.negf %345 : vector<8x32xf32>
    %347 = math.exp %346 : vector<8x32xf32>
    %cst_95 = arith.constant 1.000000e+00 : f32
    %348 = vector.broadcast %cst_95 : f32 to vector<8x32xf32>
    %349 = arith.addf %348, %347 : vector<8x32xf32>
    %350 = arith.divf %348, %349 : vector<8x32xf32>
    %351 = arith.mulf %342, %289 : vector<8x32xf32>
    %352 = arith.mulf %336, %344 : vector<8x32xf32>
    %353 = arith.addf %351, %352 : vector<8x32xf32>
    %354 = math.tanh %353 : vector<8x32xf32>
    %355 = arith.mulf %350, %354 : vector<8x32xf32>
    %356 = vector.broadcast %290 : i32 to vector<8x1xi32>
    %357 = arith.cmpi slt, %356, %33 : vector<8x1xi32>
    %358 = vector.broadcast %291 : i32 to vector<8x1xi32>
    %359 = arith.cmpi slt, %358, %33 : vector<8x1xi32>
    %360 = vector.shape_cast %357 : vector<8x1xi1> to vector<8x1xi1>
    %361 = vector.broadcast %360 : vector<8x1xi1> to vector<8x32xi1>
    %362 = arith.select %361, %330, %280 : vector<8x32xi1>, vector<8x32xf32>
    %363 = vector.shape_cast %357 : vector<8x1xi1> to vector<8x1xi1>
    %364 = vector.broadcast %363 : vector<8x1xi1> to vector<8x32xi1>
    %365 = arith.select %364, %328, %283 : vector<8x32xi1>, vector<8x32xf32>
    %366 = vector.shape_cast %359 : vector<8x1xi1> to vector<8x1xi1>
    %367 = vector.broadcast %366 : vector<8x1xi1> to vector<8x32xi1>
    %368 = arith.select %367, %355, %286 : vector<8x32xi1>, vector<8x32xf32>
    %369 = vector.shape_cast %359 : vector<8x1xi1> to vector<8x1xi1>
    %370 = vector.broadcast %369 : vector<8x1xi1> to vector<8x32xi1>
    %371 = arith.select %370, %353, %289 : vector<8x32xi1>, vector<8x32xf32>
    %c4_i32_96 = arith.constant 4 : i32
    %c0_97 = arith.constant 0 : index
    %c0_98 = arith.constant 0 : index
    %c0_99 = arith.constant 0 : index
    %372 = vector.load %arg16[%c0_97, %c0_98, %c0_99] : memref<2x8x32xf32, #tpu.memory_space<vmem>>, vector<1x8x32xf32>
    %373 = vector.shape_cast %372 : vector<1x8x32xf32> to vector<8x32xf32>
    %374 = vector.shape_cast %362 : vector<8x32xf32> to vector<1x8x32xf32>
    tpu.vector_store %arg16[%c0_97, %c0_98, %c0_99], %374 {strides = array<i32>} : memref<2x8x32xf32, #tpu.memory_space<vmem>>, vector<1x8x32xf32>,
    %c0_100 = arith.constant 0 : index
    %c0_101 = arith.constant 0 : index
    %c0_102 = arith.constant 0 : index
    %375 = vector.load %arg17[%c0_100, %c0_101, %c0_102] : memref<2x8x32xf32, #tpu.memory_space<vmem>>, vector<1x8x32xf32>
    %376 = vector.shape_cast %375 : vector<1x8x32xf32> to vector<8x32xf32>
    %377 = vector.shape_cast %365 : vector<8x32xf32> to vector<1x8x32xf32>
    tpu.vector_store %arg17[%c0_100, %c0_101, %c0_102], %377 {strides = array<i32>} : memref<2x8x32xf32, #tpu.memory_space<vmem>>, vector<1x8x32xf32>,
    %c1_103 = arith.constant 1 : index
    %c0_104 = arith.constant 0 : index
    %c0_105 = arith.constant 0 : index
    %378 = vector.load %arg16[%c1_103, %c0_104, %c0_105] : memref<2x8x32xf32, #tpu.memory_space<vmem>>, vector<1x8x32xf32>
    %379 = vector.shape_cast %378 : vector<1x8x32xf32> to vector<8x32xf32>
    %380 = vector.shape_cast %368 : vector<8x32xf32> to vector<1x8x32xf32>
    tpu.vector_store %arg16[%c1_103, %c0_104, %c0_105], %380 {strides = array<i32>} : memref<2x8x32xf32, #tpu.memory_space<vmem>>, vector<1x8x32xf32>,
    %c1_106 = arith.constant 1 : index
    %c0_107 = arith.constant 0 : index
    %c0_108 = arith.constant 0 : index
    %381 = vector.load %arg17[%c1_106, %c0_107, %c0_108] : memref<2x8x32xf32, #tpu.memory_space<vmem>>, vector<1x8x32xf32>
    %382 = vector.shape_cast %381 : vector<1x8x32xf32> to vector<8x32xf32>
    %383 = vector.shape_cast %371 : vector<8x32xf32> to vector<1x8x32xf32>
    tpu.vector_store %arg17[%c1_106, %c0_107, %c0_108], %383 {strides = array<i32>} : memref<2x8x32xf32, #tpu.memory_space<vmem>>, vector<1x8x32xf32>,
    %c1_i32_109 = arith.constant 1 : i32
    %384 = arith.cmpi eq, %arg0, %c1_i32_109 : i32
    %385 = arith.extui %384 : i1 to i32
    %c0_i32_110 = arith.constant 0 : i32
    %386 = arith.cmpi ne, %385, %c0_i32_110 : i32
    scf.if %386 {
      %c0_111 = arith.constant 0 : index
      %c0_112 = arith.constant 0 : index
      %387 = vector.load %arg11[%c0_111, %c0_112] : memref<64x4xbf16, #tpu.memory_space<vmem>>, vector<64x4xbf16>
      %388 = arith.truncf %362 : vector<8x32xf32> to vector<8x32xbf16>
      %389 = vector.extract_strided_slice %387 {offsets = [0, 0], sizes = [32, 4], strides = [1, 1]} : vector<64x4xbf16> to vector<32x4xbf16>
      %cst_113 = arith.constant dense<0.000000e+00> : vector<8x4xf32>
      %390 = tpu.matmul %388, %389, %cst_113 {dimension_numbers = #tpu.dot_dimension_numbers<[1], [0], [0], [1], [0, 0, 1, 1], [], []>} : vector<8x32xbf16>, vector<32x4xbf16>, vector<8x4xf32> -> vector<8x4xf32>
      %391 = arith.truncf %368 : vector<8x32xf32> to vector<8x32xbf16>
      %392 = vector.extract_strided_slice %387 {offsets = [32, 0], sizes = [32, 4], strides = [1, 1]} : vector<64x4xbf16> to vector<32x4xbf16>
      %cst_114 = arith.constant dense<0.000000e+00> : vector<8x4xf32>
      %393 = tpu.matmul %391, %392, %cst_114 {dimension_numbers = #tpu.dot_dimension_numbers<[1], [0], [0], [1], [0, 0, 1, 1], [], []>} : vector<8x32xbf16>, vector<32x4xbf16>, vector<8x4xf32> -> vector<8x4xf32>
      %394 = arith.addf %390, %393 : vector<8x4xf32>
      %c0_115 = arith.constant 0 : index
      %c0_116 = arith.constant 0 : index
      %395 = vector.load %arg12[%c0_115, %c0_116] : memref<1x4xf32, #tpu.memory_space<vmem>>, vector<1x4xf32>
      %396 = vector.broadcast %395 : vector<1x4xf32> to vector<8x4xf32>
      %397 = arith.addf %394, %396 : vector<8x4xf32>
      %398 = arith.negf %397 : vector<8x4xf32>
      %399 = math.exp %398 : vector<8x4xf32>
      %cst_117 = arith.constant 1.000000e+00 : f32
      %400 = vector.broadcast %cst_117 : f32 to vector<8x4xf32>
      %401 = arith.addf %400, %399 : vector<8x4xf32>
      %402 = arith.divf %400, %401 : vector<8x4xf32>
      %c0_118 = arith.constant 0 : index
      %c0_119 = arith.constant 0 : index
      %403 = vector.load %arg13[%c0_118, %c0_119] : memref<8x4xf32, #tpu.memory_space<vmem>>, vector<8x4xf32>
      tpu.vector_store %arg13[%c0_118, %c0_119], %402 {strides = array<i32>} : memref<8x4xf32, #tpu.memory_space<vmem>>, vector<8x4xf32>,
    } else {
    }
    return
  }
  func.func @transform_0(%arg0: i32) -> (i32, i32, i32) {
    %c0_i32 = arith.constant 0 : i32
    %c0_i32_0 = arith.constant 0 : i32
    %c0_i32_1 = arith.constant 0 : i32
    return %arg0, %c0_i32, %c0_i32_0 : i32, i32, i32
  }
  func.func @transform_1(%arg0: i32) -> (i32, i32, i32) {
    %c0_i32 = arith.constant 0 : i32
    %c0_i32_0 = arith.constant 0 : i32
    %c0_i32_1 = arith.constant 0 : i32
    return %arg0, %c0_i32, %c0_i32_0 : i32, i32, i32
  }
  func.func @transform_2(%arg0: i32) -> (i32, i32, i32) {
    %c1_i32 = arith.constant 1 : i32
    %0 = arith.subi %c1_i32, %arg0 : i32
    %c0_i32 = arith.constant 0 : i32
    %c0_i32_0 = arith.constant 0 : i32
    %c0_i32_1 = arith.constant 0 : i32
    return %0, %c0_i32, %c0_i32_0 : i32, i32, i32
  }
  func.func @transform_3(%arg0: i32) -> (i32, i32, i32) {
    %c1_i32 = arith.constant 1 : i32
    %0 = arith.subi %c1_i32, %arg0 : i32
    %c0_i32 = arith.constant 0 : i32
    %c0_i32_0 = arith.constant 0 : i32
    %c0_i32_1 = arith.constant 0 : i32
    return %0, %c0_i32, %c0_i32_0 : i32, i32, i32
  }
  func.func @transform_4(%arg0: i32) -> (i32, i32) {
    %c0_i32 = arith.constant 0 : i32
    %c0_i32_0 = arith.constant 0 : i32
    %c0_i32_1 = arith.constant 0 : i32
    return %c0_i32, %c0_i32_0 : i32, i32
  }
  func.func @transform_5(%arg0: i32) -> (i32, i32) {
    %c0_i32 = arith.constant 0 : i32
    %c0_i32_0 = arith.constant 0 : i32
    %c0_i32_1 = arith.constant 0 : i32
    return %c0_i32, %c0_i32_0 : i32, i32
  }
  func.func @transform_6(%arg0: i32) -> (i32, i32) {
    %c0_i32 = arith.constant 0 : i32
    %c0_i32_0 = arith.constant 0 : i32
    %c0_i32_1 = arith.constant 0 : i32
    return %c0_i32, %c0_i32_0 : i32, i32
  }
  func.func @transform_7(%arg0: i32) -> (i32, i32) {
    %c0_i32 = arith.constant 0 : i32
    %c0_i32_0 = arith.constant 0 : i32
    %c0_i32_1 = arith.constant 0 : i32
    return %c0_i32, %c0_i32_0 : i32, i32
  }
  func.func @transform_8(%arg0: i32) -> (i32, i32) {
    %c0_i32 = arith.constant 0 : i32
    %c0_i32_0 = arith.constant 0 : i32
    %c0_i32_1 = arith.constant 0 : i32
    return %c0_i32, %c0_i32_0 : i32, i32
  }
  func.func @transform_9(%arg0: i32) -> (i32, i32) {
    %c0_i32 = arith.constant 0 : i32
    %c0_i32_0 = arith.constant 0 : i32
    %c0_i32_1 = arith.constant 0 : i32
    return %c0_i32, %c0_i32_0 : i32, i32
  }
  func.func @transform_10(%arg0: i32) -> (i32, i32) {
    %c0_i32 = arith.constant 0 : i32
    %c0_i32_0 = arith.constant 0 : i32
    %c0_i32_1 = arith.constant 0 : i32
    return %c0_i32, %c0_i32_0 : i32, i32
  }
  func.func @transform_11(%arg0: i32) -> (i32, i32) {
    %c0_i32 = arith.constant 0 : i32
    %c0_i32_0 = arith.constant 0 : i32
    %c0_i32_1 = arith.constant 0 : i32
    return %c0_i32, %c0_i32_0 : i32, i32
  }
  func.func @transform_12(%arg0: i32) -> (i32, i32) {
    %c0_i32 = arith.constant 0 : i32
    %c0_i32_0 = arith.constant 0 : i32
    %c0_i32_1 = arith.constant 0 : i32
    return %c0_i32, %c0_i32_0 : i32, i32
  }
}

</mosaic_0001>

<bundles_post_ra>
// kernel: lstm_net_forward.2
= control target key start
LH: loop header
LB: loop body
LE: loop exit
PB: predicated region body
PF: predicated region fallthrough
CT: control target
= control target key end

     0   :  { %15 = vsyncpa [#allocation7], 0  ;;  %s1646_s30 = smov 0   ;;  %s1990_s0 = inlined_call_operand.vmem [shape: bf16[8,8,16], index: 0, kind: input, shape index: {}, may-alias: {0,1}]   ;;  %s1991_s1 = inlined_call_operand.vmem [shape: bf16[8,8,16], index: 1, kind: input, shape index: {}, may-alias: {0,1}]   ;;  %s1992_s2 = inlined_call_operand.vmem [shape: bf16[16,128], index: 2, kind: input, shape index: {}]   ;;  %s1993_s3 = inlined_call_operand.hbm [shape: bf16[16,128], index: 3, kind: input, shape index: {}]   ;;  %s1994_s4 = inlined_call_operand.vmem [shape: bf16[64,256], index: 4, kind: input, shape index: {}]   ;;  %s1995_s5 = inlined_call_operand.vmem [shape: f32[1,128], index: 5, kind: input, shape index: {}]   ;;  %s1996_s6 = inlined_call_operand.vmem [shape: f32[1,128], index: 6, kind: input, shape index: {}]   ;;  %s1997_s7 = inlined_call_operand.vmem [shape: s32[8,1], index: 7, kind: input, shape index: {}]   ;;  %s1998_s8 = inlined_call_operand.vmem [shape: bf16[8,8,32], index: 8, kind: output, shape index: {0}]   ;;  %s1999_s9 = inlined_call_operand.vmem [shape: bf16[8,8,32], index: 9, kind: output, shape index: {1}]  }
   0x1 LB: > { %s274_s12 = sshll.u32 %s1993_s3, 4  ;;  %s1655_s13 = sadd.s32 4294967295, %s1586_s30   ;;  %s1586_s30 = sphi %s1646_s30, %s21_s30   ;;  %s275_s12 = int_to_ptr.hbm [resolvable:$true] %s274_s12 }
   0x2   : > { %p1338_p0 = scmp.ge.s32.totalorder %s1586_s30, 1  ;;  %p260_p1 = scmp.lt.s32.totalorder %s1586_s30, 3 }
   0x3   : > { %p1339_p2 = scmp.ne.s32.totalorder %s1655_s13, 0  ;;  %p1459_p3 = scmp.eq.s32.totalorder %s1655_s13, 0 }
   0x4   : > { %p261_p4 = pnand %p1338_p0, %p260_p1  ;;  %s1588_s14 = smov [#allocation6]  }
   0x5   : > { %s276_s15 = sshll.u32 %s1588_s14, 4  ;;  %s1589_s16 = smov 64   ;;  %s277_s15 = int_to_ptr.vmem [resolvable:$true] %s276_s15 }
   0x6   : > { %p1455_p5 = pneg %p261_p4  ;;  %s1590_s17 = smov 4  }
   0x7   : > { %324 = sbr.rel (%p261_p4) target bundleno = 2701 (0xa8d), region = 52 }
   0x8   : > { %p1456_p6 = pnand %p1459_p3, %p1455_p5 }
   0xa   : > { %1458 = dma.hbm_to_vmem [thread:$0]  (!%p1456_p6), %s275_s12, 128, %s277_s15, [#allocation7], %s1589_s16, %s1589_s16, %s1590_s17  }
   0xc   : > { %1581 = dma.done.wait (%p1459_p3), [#allocation7], 128  }
   0xd   : > { %1583 = vsyncadd (%p1459_p3), [#allocation7], 4294967168  ;;  %s1662_s18 = sshll.u32 %s1655_s13, 2  ;;  %s379_s19 = ssub.s32 1, %s1655_s13  ;;  %v1439_v0 = vld [vmem:[%s1992_s2] sm:$0xff]  ;;  %vm428_vm0 = vcmask 130048  }
   0xe   : > { %p374_p7 = scmp.lt.s32.totalorder %s1662_s18, 7  ;;  %s1345_s20 = sshll.u32 %s379_s19, 2  ;;  %v1442_v1 = vld [vmem:[#allocation6] sm:$0xff]  ;;  %442 = vmatpush.bf16.msra.mxu0 %v1439_v0 }
   0xf   : > { %p381_p8 = scmp.lt.s32.totalorder %s1345_s20, 7  ;;  %497 = vmatpush.bf16.msra.mxu1 %v1442_v1  ;;  %v1477_v6 = vld [vmem:[%s1995_s5] ss:$0 sm:$0xff] }
  0x10   : > { %s375_s21 = scalar_select %p374_p7, %s1662_s18, 7  ;;  %v1478_v7 = vld [vmem:[%s1996_s6] ss:$0 sm:$0xff] }
  0x11   : > { %s2001_s20 = smov (!%p381_p8, %s1345_s20), 7 }
  0x12   : > { %s1344_s22 = sshll.u32 %s375_s21, 2  ;;  %s1346_s11 = sshll.u32 %s2001_s20, 2 }
  0x13   : > { %s377_s25 = scalar_lea.vmem %s1990_s0, %s1344_s22  ;;  %s1673_s28 = scalar_lea.vmem %s1998_s8, %s1344_s22 }
  0x14   : > { %v1437_v2 = vld [vmem:[%s377_s25] sm:$0xff]  ;;  %s384_s15 = scalar_lea.vmem %s1991_s1, %s1346_s11  ;;  %s1684_s19 = scalar_lea.vmem %s1999_s9, %s1346_s11  ;;  %v1438_v4 = vld [vmem:[%s377_s25 + $0x8] sm:$0xff] }
  0x15   : > { %v1440_v3 = vld [vmem:[%s384_s15] sm:$0xff]  ;;  %1363 = vmatmul.msk.bf16.vlgmr.msra.gmra.mxu0 %vm428_vm0, %v1437_v2  ;;  %v1441_v5 = vld [vmem:[%s384_s15 + $0x8] sm:$0xff] }
  0x16   : > { %1377 = vmatmul.msk.bf16.vlgmr.msra.gmra.mxu1 %vm428_vm0, %v1440_v3 }
  0x25   : > { %1364 = vmatmul.msk.bf16.gmra.mxu0 %vm428_vm0, %v1438_v4 }
  0x26   : > { %1378 = vmatmul.msk.bf16.gmra.mxu1 %vm428_vm0, %v1441_v5 }
  0x92   : > { %v444_v8 = vpop.f32.mrf.mxu0 }
  0x93   : > { %v499_v9 = vpop.f32.mrf.mxu1  ;;  %v445_v10 = vadd.f32 %v1477_v6, %v444_v8 }
  0x94   : > { %v500_v11 = vadd.f32 %v1478_v7, %v499_v9 }
  0x95   : > { %454 = vst [vmem:[#allocation2 + $0x10] sm:$0xff] %v445_v10 }
  0x96   : > { %509 = vst [vmem:[#allocation3] sm:$0xff] %v500_v11 }
  0x9a   : > { %v446_v12 = vpop.f32.mrf.mxu0 }
  0x9b   : > { %v501_v13 = vpop.f32.mrf.mxu1  ;;  %v447_v14 = vadd.f32 %v1477_v6, %v446_v12 }
  0x9c   : > { %v502_v15 = vadd.f32 %v1478_v7, %v501_v13 }
  0x9d   : > { %455 = vst [vmem:[#allocation2] sm:$0xff] %v447_v14 }
  0x9e   : > { %510 = vst [vmem:[#allocation3 + $0x18] sm:$0xff] %v502_v15 }
  0xa2   : > { %v449_v16 = vpop.f32.mrf.mxu0 }
  0xa3   : > { %v504_v17 = vpop.f32.mrf.mxu1  ;;  %v450_v18 = vadd.f32 %v1477_v6, %v449_v16 }
  0xa4   : > { %v505_v19 = vadd.f32 %v1478_v7, %v504_v17 }
  0xa5   : > { %456 = vst [vmem:[#allocation2 + $0x18] sm:$0xff] %v450_v18 }
  0xa6   : > { %511 = vst [vmem:[#allocation3 + $0x8] sm:$0xff] %v505_v19 }
  0xaa   : > { %v451_v20 = vpop.f32.mrf.mxu0  ;;  %516 = sbr.rel (%p1339_p2) target bundleno = 180 (0xb4), region = 60 }
  0xab   : > { %v506_v21 = vpop.f32.mrf.mxu1  ;;  %v452_v22 = vadd.f32 %v1477_v6, %v451_v20 }
  0xac   : > { %v507_v23 = vadd.f32 %v1478_v7, %v506_v21 }
  0xad   : > { %457 = vst [vmem:[#allocation2 + $0x8] sm:$0xff] %v452_v22 }
  0xae   : > { %512 = vst [vmem:[#allocation3 + $0x10] sm:$0xff] %v507_v23 }
  0xaf   : > { %vm517_vm1 = vcmask 261120   ;;  %v1591_v24 = vmov 0.0  }
  0xb0   : > { %518 = vst.msk [vmem:[#allocation4] sm:$0xff] %vm517_vm1, %v1591_v24 }
  0xb1   : > { %519 = vst.msk [vmem:[#allocation4 + $0x8] sm:$0xff] %vm517_vm1, %v1591_v24 }
  0xb2   : > { %520 = vst.msk [vmem:[#allocation5] sm:$0xff] %vm517_vm1, %v1591_v24 }
  0xb3   : > { %521 = vst.msk [vmem:[#allocation5 + $0x8] sm:$0xff] %vm517_vm1, %v1591_v24 }
  0xb4 PF: > { %v1407_v26 = vld [vmem:[%s1994_s4 + $0x30] sm:$0xf]  ;;  %v1450_v27 = vld [vmem:[%s1994_s4 + $0x34] sm:$0xf0]  ;;  %s1592_s29 = smov 32   ;;  %vm543_vm2 = vcmask 261120  }
  0xb5   : > { %v1408_v28 = vor.u32 %v1450_v27, %v1407_v26  ;;  %v1449_v29 = vld [vmem:[%s1994_s4 + $0x34] sm:$0xf]  ;;  %v1409_v30 = vld [vmem:[%s1994_s4 + $0x38] sm:$0xf0]  ;;  %v1399_v31 = vld [vmem:[%s1994_s4 + $0x20] sm:$0xf] }
  0xb6   : > { %v1412_v32 = vor.u32 %v1449_v29, %v1409_v30  ;;  %v1448_v33 = vld [vmem:[%s1994_s4 + $0x24] sm:$0xf0]  ;;  %v1447_v34 = vld [vmem:[%s1994_s4 + $0x24] sm:$0xf]  ;;  %v1401_v35 = vld [vmem:[%s1994_s4 + $0x28] sm:$0xf0] }
  0xb7   : > { %594 = vmatpush.bf16.msra.mxu2 %v1408_v28  ;;  %v1400_v36 = vor.u32 %v1448_v33, %v1399_v31  ;;  %914 = vmatpush.bf16.msrb.mxu0 %v1408_v28  ;;  %v1404_v37 = vor.u32 %v1447_v34, %v1401_v35  ;;  %v1391_v38 = vld [vmem:[%s1994_s4 + $0x10] sm:$0xf]  ;;  %v1446_v39 = vld [vmem:[%s1994_s4 + $0x14] sm:$0xf0]  ;;  %v1445_v40 = vld [vmem:[%s1994_s4 + $0x14] sm:$0xf] }
  0xb8   : > { %v1694_v25 = vld [vmem:[#allocation4 + $0x8] sm:$0xff]  ;;  %607 = vmatpush.bf16.msra.mxu3 %v1412_v32  ;;  %927 = vmatpush.bf16.msrb.mxu1 %v1412_v32  ;;  %v1393_v41 = vld [vmem:[%s1994_s4 + $0x18] sm:$0xf0]  ;;  %v1392_v42 = vor.u32 %v1446_v39, %v1391_v38  ;;  %v1383_v44 = vld [vmem:[%s1994_s4] sm:$0xf]  ;;  %vm586_vm3 = vcmask 523264  }
  0xb9   : > { %540 = vrot.lane.b32.xlu0 %v1694_v25, %s1592_s29  ;;  %v1396_v43 = vor.u32 %v1445_v40, %v1393_v41  ;;  %v1444_v45 = vld [vmem:[%s1994_s4 + $0x4] sm:$0xf0]  ;;  %v1443_v46 = vld [vmem:[%s1994_s4 + $0x4] sm:$0xf]  ;;  %v1385_v48 = vld [vmem:[%s1994_s4 + $0x8] sm:$0xf0] }
  0xba   : > { %v1384_v47 = vor.u32 %v1444_v45, %v1383_v44  ;;  %v1388_v49 = vor.u32 %v1443_v46, %v1385_v48  ;;  %v537_v50 = vld [vmem:[#allocation5 + $0x8] sm:$0xff]  ;;  %v1747_v51 = vld [vmem:[#allocation4] sm:$0xff]  ;;  %v616_v55 = vld [vmem:[#allocation2 + $0x10] sm:$0xff]  ;;  %s1593_s24 = smov 64   ;;  %s538_s25 = ssub.s32 7, %s1662_s18  ;;  %v1594_v10 = vmov 0  }
  0xbb   : > { %595 = vmatpush.bf16.msra.mxu2 %v1400_v36  ;;  %915 = vmatpush.bf16.msrb.mxu0 %v1400_v36  ;;  %v619_v56 = vld [vmem:[#allocation3 + $0x10] sm:$0xff]  ;;  %v1760_v8 = vld [vmem:[%s1997_s7] sm:$0xff]  ;;  %v705_v9 = vstv %s538_s25  ;;  %s1595_s13 = smov 96   ;;  %s742_s10 = sadd.s32 1, %s1662_s18 }
  0xbc   : > { %608 = vmatpush.bf16.msra.mxu3 %v1404_v37  ;;  %928 = vmatpush.bf16.msrb.mxu1 %v1404_v37  ;;  %v533_v1 = vld [vmem:[#allocation5] sm:$0xff]  ;;  %vm706_vm4 = vcmp.lt.s32.totalorder %v705_v9, %v1760_v8  ;;  %s743_s11 = ssub.s32 6, %s1662_s18  ;;  %s895_s12 = sadd.s32 2, %s1662_s18 }
  0xbd   : > { %683 = vrot.lane.b32.xlu2 %v537_v50, %s1592_s29  ;;  %1480 = vset.pattern.permute.xlu1 %v1594_v10  ;;  %v718_v11 = vsel %vm706_vm4, 1, %v1594_v10  ;;  %s896_s14 = ssub.s32 5, %s1662_s18  ;;  %s1048_s15 = sadd.s32 3, %s1662_s18 }
  0xbe   : > { %1479 = vset.pattern.permute.xlu0 %v1594_v10  ;;  %1481 = vset.pattern.permute.xlu2 %v1594_v10  ;;  %s1049_s16 = ssub.s32 4, %s1662_s18 }
  0xbf   : > { %596 = vmatpush.bf16.msra.mxu2 %v1392_v42  ;;  %916 = vmatpush.bf16.msrb.mxu0 %v1392_v42 }
  0xc0   : > { %609 = vmatpush.bf16.msra.mxu3 %v1396_v43  ;;  %929 = vmatpush.bf16.msrb.mxu1 %v1396_v43 }
  0xc3   : > { %597 = vmatpush.bf16.msra.mxu2 %v1384_v47  ;;  %917 = vmatpush.bf16.msrb.mxu0 %v1384_v47 }
  0xc4   : > { %610 = vmatpush.bf16.msra.mxu3 %v1388_v49  ;;  %930 = vmatpush.bf16.msrb.mxu1 %v1388_v49 }
  0xc7   : > { %761 = vmatpush.bf16.msrb.mxu2 %v1408_v28 }
  0xc8   : > { %774 = vmatpush.bf16.msrb.mxu3 %v1412_v32 }
  0xcb   : > { %762 = vmatpush.bf16.msrb.mxu2 %v1400_v36 }
  0xcc   : > { %775 = vmatpush.bf16.msrb.mxu3 %v1404_v37 }
  0xcf   : > { %763 = vmatpush.bf16.msrb.mxu2 %v1392_v42 }
  0xd0   : > { %776 = vmatpush.bf16.msrb.mxu3 %v1396_v43 }
  0xd3   : > { %764 = vmatpush.bf16.msrb.mxu2 %v1384_v47 }
  0xd4   : > { %777 = vmatpush.bf16.msrb.mxu3 %v1388_v49 }
 0x117   : > { %v1772_v39 = vpop.permute.xlu2 %683 }
 0x12b   : > { %v541_v52 = vpop.permute.xlu0 %540 }
 0x12c   : > { %v544_v53 = vsel %vm543_vm2, %v1747_v51, %v541_v52 }
 0x12d   : > { %v545_v54 = vpack.c.bf16 %v544_v53, %v544_v53 }
 0x12f   : > { %1413 = vmatmul.msk.bf16.vlgmr.msra.gmra.mxu2 %vm586_vm3, %v545_v54  ;;  %1414 = vmatmul.msk.bf16.vlgmr.msra.gmra.mxu3 %vm586_vm3, %v545_v54 }
 0x130   : > { %1067 = vmatpush.bf16.msra.mxu2 %v1408_v28  ;;  %1080 = vmatpush.bf16.msra.mxu3 %v1412_v32 }
 0x134   : > { %1068 = vmatpush.bf16.msra.mxu2 %v1400_v36  ;;  %1081 = vmatpush.bf16.msra.mxu3 %v1404_v37  ;;  %v703_v37 = vstv %s1662_s18 }
 0x135   : > { %vm704_vm13 = vcmp.lt.s32.totalorder %v703_v37, %v1760_v8 }
 0x136   : > { %v707_v38 = vsel %vm704_vm13, 1, %v1594_v10 }
 0x138   : > { %1069 = vmatpush.bf16.msra.mxu2 %v1392_v42  ;;  %1082 = vmatpush.bf16.msra.mxu3 %v1396_v43 }
 0x13c   : > { %1070 = vmatpush.bf16.msra.mxu2 %v1384_v47  ;;  %1083 = vmatpush.bf16.msra.mxu3 %v1388_v49 }
 0x1b2   : > { %v599_v57 = vpop.f32.mrf.mxu2  ;;  %v612_v58 = vpop.f32.mrf.mxu3 }
 0x1b3   : > { %v617_v59 = vadd.f32 %v616_v55, %v599_v57  ;;  %v620_v60 = vadd.f32 %v619_v56, %v612_v58 }
 0x1b5   : > { %1482 = vtanh.f32 %v617_v59  ;;  %v1415_v2 = vmul.f32 -1.442695, %v617_v59  ;;  %v1416_v3 = vmul.f32 -1.442695, %v620_v60 }
 0x1b6   : > { %1484 = vtanh.f32 %v620_v60 }
 0x1b7   : > { %1486 = vpow2.f32 %v1415_v2 }
 0x1b8   : > { %1488 = vpow2.f32 %v1416_v3 }
 0x1ba   : > { %v601_v61 = vpop.f32.mrf.mxu2  ;;  %v614_v62 = vpop.f32.mrf.mxu3 }
 0x1bb   : > { %v1483_v63 = vpop.eup %1482  ;;  %v784_v62 = vld [vmem:[#allocation2] sm:$0xff] }
 0x1bc   : > { %v1485_v0 = vpop.eup %1484  ;;  %647 = vrot.lane.b32.xlu0 %v1483_v63, %s1593_s24  ;;  %v787_v63 = vld [vmem:[#allocation3 + $0x8] sm:$0xff] }
 0x1bd   : > { %688 = vrot.lane.b32.xlu1 %v1485_v0, %s1593_s24  ;;  %v1487_v4 = vpop.eup %1486 }
 0x1be   : > { %v1489_v5 = vpop.eup %1488  ;;  %v624_v6 = vadd.f32 1.0, %v1487_v4 }
 0x1bf   : > { %v665_v7 = vadd.f32 1.0, %v1489_v5 }
 0x1c0   : > { %1490 = vrcp.f32 %v624_v6  ;;  %v636_v22 = vand.u32 2147483648, %v624_v6  ;;  %vm630_vm7 = vweird.f32 %v624_v6  ;;  %v634_v24 = vand.u32 2147483647, %v624_v6 }
 0x1c1   : > { %1492 = vrcp.f32 %v665_v7  ;;  %v677_v23 = vand.u32 2147483648, %v665_v7  ;;  %vm671_vm8 = vweird.f32 %v665_v7  ;;  %v675_v26 = vand.u32 2147483647, %v665_v7 }
 0x1c2   : > { %v637_v29 = vor.u32 1.1754944e-38, %v636_v22  ;;  %vm635_vm11 = vcmp.eq.f32.partialorder %v634_v24, 8.507059e+37 }
 0x1c3   : > { %v678_v30 = vor.u32 1.1754944e-38, %v677_v23  ;;  %vm676_vm12 = vcmp.eq.f32.partialorder %v675_v26, 8.507059e+37 }
 0x1c5   : > { %642 = vrot.lane.b32.xlu1 %v533_v1, %s1592_s29 }
 0x1c6   : > { %v1491_v12 = vpop.eup %1490 }
 0x1c7   : > { %v1493_v13 = vpop.eup %1492  ;;  %v626_v14 = vmul.f32 %v1491_v12, %v624_v6  ;;  %vm631_vm5 = vweird.f32 %v1491_v12 }
 0x1c8   : > { %v667_v15 = vmul.f32 %v1493_v13, %v665_v7  ;;  %vm672_vm6 = vweird.f32 %v1493_v13  ;;  %vm632_vm9 = vmor %vm630_vm7, %vm631_vm5 }
 0x1c9   : > { %v627_v16 = vsub.f32 1.0, %v626_v14  ;;  %vm673_vm10 = vmor %vm671_vm8, %vm672_vm6 }
 0x1ca   : > { %v668_v17 = vsub.f32 1.0, %v667_v15 }
 0x1cb   : > { %v628_v18 = vmul.f32 %v1491_v12, %v627_v16 }
 0x1cc   : > { %v669_v19 = vmul.f32 %v1493_v13, %v668_v17 }
 0x1cd   : > { %720 = vperm.xlu1 %1480, %v718_v11   ;;  %v629_v20 = vadd.f32 %v1491_v12, %v628_v18 }
 0x1ce   : > { %v670_v21 = vadd.f32 %v1493_v13, %v669_v19 }
 0x1cf   : > { %v633_v27 = vsel %vm632_vm9, %v1491_v12, %v629_v20 }
 0x1d0   : > { %v674_v28 = vsel %vm673_vm10, %v1493_v13, %v670_v21  ;;  %v638_v32 = vsel %vm635_vm11, %v637_v29, %v633_v27 }
 0x1d1   : > { %v679_v33 = vsel %vm676_vm12, %v678_v30, %v674_v28  ;;  %v863_v30 = vstv %s742_s10 }
 0x1d2   : > { %v686_v45 = vmul.f32 %v1772_v39, %v679_v33  ;;  %vm864_vm6 = vcmp.lt.s32.totalorder %v863_v30, %v1760_v8 }
 0x22e   : > { %v648_v31 = vpop.permute.xlu0 %647 }
 0x22f   : > { %v650_v34 = vmul.f32 %v648_v31, %v638_v32  ;;  %v689_v35 = vpop.permute.xlu1 %688 }
 0x230   : > { %v691_v36 = vmul.f32 %v689_v35, %v679_v33 }
 0x231   : > { %652 = vrot.lane.b32.xlu2 %v650_v34, %s1592_s29 }
 0x232   : > { %693 = vrot.lane.b32.xlu0 %v691_v36, %s1592_s29 }
 0x237   : > { %v1774_v40 = vpop.permute.xlu1 %642 }
 0x238   : > { %v645_v41 = vmul.f32 %v1774_v40, %v638_v32 }
 0x23a   : > { %709 = vperm.xlu0 %1479, %v707_v38  }
 0x23f   : > { %v1790_v49 = vpop.permute.xlu1 %720 }
 0x240   : > { %vm722_vm14 = vcmp.eq.s32.totalorder %v1790_v49, 1 }
 0x28b   : > { %v653_v42 = vpop.permute.xlu2 %652 }
 0x28c   : > { %v1777_v43 = vadd.f32 %v653_v42, %v645_v41 }
 0x28e   : > { %1494 = vtanh.f32 %v1777_v43 }
 0x294   : > { %v1495_v44 = vpop.eup %1494 }
 0x295   : > { %658 = vrot.lane.b32.xlu1 %v1495_v44, %s1593_s24 }
 0x29d   : > { %723 = vrot.lane.b32.xlu1 %v1694_v25, %s1595_s13 }
 0x2a4   : > { %v694_v46 = vpop.permute.xlu0 %693 }
 0x2a5   : > { %v1784_v47 = vadd.f32 %v694_v46, %v686_v45 }
 0x2a7   : > { %1496 = vtanh.f32 %v1784_v47  ;;  %v1822_v46 = vsel %vm722_vm14, %v1784_v47, %v1772_v39 }
 0x2ac   : > { %v1792_v53 = vpop.permute.xlu0 %709 }
 0x2ad   : > { %v1497_v48 = vpop.eup %1496  ;;  %vm711_vm15 = vcmp.eq.s32.totalorder %v1792_v53, 1 }
 0x2ae   : > { %699 = vrot.lane.b32.xlu2 %v1497_v48, %s1593_s24 }
 0x2b6   : > { %713 = vrot.lane.b32.xlu2 %v1747_v51, %s1595_s13 }
 0x307   : > { %v659_v50 = vpop.permute.xlu1 %658 }
 0x308   : > { %v700_v52 = vpop.permute.xlu2 %699  ;;  %v661_v54 = vmul.f32 %v659_v50, %v638_v32  ;;  %v867_v32 = vsel %vm864_vm6, 1, %v1594_v10 }
 0x309   : > { %v702_v25 = vmul.f32 %v700_v52, %v679_v33 }
 0x30f   : > { %v724_v55 = vpop.permute.xlu1 %723 }
 0x310   : > { %v714_v56 = vpop.permute.xlu2 %713  ;;  %v1798_v57 = vsel %vm722_vm14, %v702_v25, %v724_v55 }
 0x311   : > { %749 = vrot.lane.b32.xlu0 %v1798_v57, %s1593_s24  ;;  %v1804_v51 = vsel %vm711_vm15, %v661_v54, %v714_v56  ;;  %v1833_v54 = vsel %vm711_vm15, %v1777_v43, %v1774_v40  ;;  %v865_v56 = vstv %s743_s11 }
 0x312   : > { %745 = vrot.lane.b32.xlu2 %v1804_v51, %s1592_s29  ;;  %vm866_vm11 = vcmp.lt.s32.totalorder %v865_v56, %v1760_v8 }
 0x36c   : > { %v746_v58 = vpop.permute.xlu2 %745 }
 0x383   : > { %v750_v59 = vpop.permute.xlu0 %749 }
 0x384   : > { %v752_v60 = vsel %vm543_vm2, %v746_v58, %v750_v59  ;;  %v874_v58 = vsel %vm866_vm11, 1, %v1594_v10 }
 0x385   : > { %v753_v61 = vpack.c.bf16 %v752_v60, %v752_v60 }
 0x387   : > { %1418 = vmatmul.msk.bf16.vlgmr.msrb.gmra.mxu2 %vm586_vm3, %v753_v61  ;;  %1419 = vmatmul.msk.bf16.vlgmr.msrb.gmra.mxu3 %vm586_vm3, %v753_v61 }
 0x40a   : > { %v766_v0 = vpop.f32.mrf.mxu2  ;;  %v779_v1 = vpop.f32.mrf.mxu3 }
 0x40b   : > { %v785_v2 = vadd.f32 %v784_v62, %v766_v0  ;;  %v788_v3 = vadd.f32 %v787_v63, %v779_v1 }
 0x40d   : > { %1498 = vtanh.f32 %v785_v2  ;;  %v1421_v9 = vmul.f32 -1.442695, %v788_v3  ;;  %v1420_v14 = vmul.f32 -1.442695, %v785_v2 }
 0x40e   : > { %1500 = vtanh.f32 %v788_v3 }
 0x40f   : > { %1502 = vpow2.f32 %v1421_v9 }
 0x412   : > { %v768_v4 = vpop.f32.mrf.mxu2  ;;  %v781_v5 = vpop.f32.mrf.mxu3 }
 0x413   : > { %v1499_v6 = vpop.eup %1498  ;;  %v937_v4 = vld [vmem:[#allocation2 + $0x18] sm:$0xff] }
 0x414   : > { %v1501_v7 = vpop.eup %1500  ;;  %811 = vrot.lane.b32.xlu1 %v1499_v6, %s1593_s24  ;;  %v940_v5 = vld [vmem:[#allocation3 + $0x18] sm:$0xff] }
 0x415   : > { %848 = vrot.lane.b32.xlu2 %v1501_v7, %s1593_s24  ;;  %v1503_v11 = vpop.eup %1502 }
 0x416   : > { %v829_v12 = vadd.f32 1.0, %v1503_v11 }
 0x418   : > { %1504 = vrcp.f32 %v829_v12  ;;  %v841_v21 = vand.u32 2147483648, %v829_v12  ;;  %vm835_vm1 = vweird.f32 %v829_v12  ;;  %v839_v22 = vand.u32 2147483647, %v829_v12 }
 0x419   : > { %1506 = vpow2.f32 %v1420_v14 }
 0x41a   : > { %v842_v24 = vor.u32 1.1754944e-38, %v841_v21  ;;  %vm840_vm5 = vcmp.eq.f32.partialorder %v839_v22, 8.507059e+37 }
 0x41e   : > { %v1505_v13 = vpop.eup %1504 }
 0x41f   : > { %v831_v15 = vmul.f32 %v1505_v13, %v829_v12  ;;  %v1507_v17 = vpop.eup %1506  ;;  %vm836_vm0 = vweird.f32 %v1505_v13 }
 0x420   : > { %v792_v19 = vadd.f32 1.0, %v1507_v17  ;;  %vm837_vm4 = vmor %vm835_vm1, %vm836_vm0 }
 0x421   : > { %v832_v16 = vsub.f32 1.0, %v831_v15 }
 0x422   : > { %1508 = vrcp.f32 %v792_v19  ;;  %v804_v36 = vand.u32 2147483648, %v792_v19  ;;  %vm798_vm8 = vweird.f32 %v792_v19  ;;  %v802_v37 = vand.u32 2147483647, %v792_v19 }
 0x423   : > { %v833_v18 = vmul.f32 %v1505_v13, %v832_v16 }
 0x424   : > { %v805_v41 = vor.u32 1.1754944e-38, %v804_v36  ;;  %vm803_vm10 = vcmp.eq.f32.partialorder %v802_v37, 8.507059e+37 }
 0x425   : > { %v834_v20 = vadd.f32 %v1505_v13, %v833_v18 }
 0x427   : > { %v838_v23 = vsel %vm837_vm4, %v1505_v13, %v834_v20 }
 0x428   : > { %v843_v27 = vsel %vm840_vm5, %v842_v24, %v838_v23  ;;  %v1509_v28 = vpop.eup %1508 }
 0x429   : > { %v794_v31 = vmul.f32 %v1509_v28, %v792_v19  ;;  %vm799_vm7 = vweird.f32 %v1509_v28  ;;  %v846_v48 = vmul.f32 %v843_v27, %v1822_v46 }
 0x42a   : > { %vm800_vm9 = vmor %vm798_vm8, %vm799_vm7 }
 0x42b   : > { %v795_v33 = vsub.f32 1.0, %v794_v31 }
 0x42d   : > { %v796_v34 = vmul.f32 %v1509_v28, %v795_v33 }
 0x42f   : > { %v797_v35 = vadd.f32 %v1509_v28, %v796_v34 }
 0x431   : > { %v801_v38 = vsel %vm800_vm9, %v1509_v28, %v797_v35 }
 0x432   : > { %v806_v44 = vsel %vm803_vm10, %v805_v41, %v801_v38 }
 0x433   : > { %v809_v49 = vmul.f32 %v806_v44, %v1833_v54 }
 0x46f   : > { %v849_v26 = vpop.permute.xlu2 %848 }
 0x470   : > { %v851_v29 = vmul.f32 %v849_v26, %v843_v27 }
 0x472   : > { %853 = vrot.lane.b32.xlu1 %v851_v29, %s1592_s29 }
 0x47a   : > { %869 = vperm.xlu1 %1480, %v867_v32  }
 0x486   : > { %v812_v42 = vpop.permute.xlu1 %811 }
 0x487   : > { %v814_v45 = vmul.f32 %v812_v42, %v806_v44 }
 0x489   : > { %816 = vrot.lane.b32.xlu0 %v814_v45, %s1592_s29 }
 0x4e4   : > { %v854_v50 = vpop.permute.xlu1 %853 }
 0x4e5   : > { %v1825_v52 = vadd.f32 %v854_v50, %v846_v48 }
 0x4e7   : > { %1510 = vtanh.f32 %v1825_v52 }
 0x4ec   : > { %v1843_v53 = vpop.permute.xlu1 %869 }
 0x4ed   : > { %v1511_v25 = vpop.eup %1510  ;;  %vm871_vm12 = vcmp.eq.s32.totalorder %v1843_v53, 1 }
 0x4ee   : > { %859 = vrot.lane.b32.xlu0 %v1511_v25, %s1593_s24 }
 0x4fb   : > { %v817_v39 = vpop.permute.xlu0 %816 }
 0x4fc   : > { %v1836_v47 = vadd.f32 %v817_v39, %v809_v49  ;;  %v1016_v39 = vstv %s895_s12 }
 0x4fd   : > { %vm1017_vm8 = vcmp.lt.s32.totalorder %v1016_v39, %v1760_v8 }
 0x4fe   : > { %1512 = vtanh.f32 %v1836_v47  ;;  %v1877_v56 = vsel %vm871_vm12, %v1836_v47, %v1833_v54  ;;  %v1018_v47 = vstv %s896_s14 }
 0x4ff   : > { %vm1019_vm9 = vcmp.lt.s32.totalorder %v1018_v47, %v1760_v8 }
 0x504   : > { %v1513_v55 = vpop.eup %1512 }
 0x505   : > { %822 = vrot.lane.b32.xlu2 %v1513_v55, %s1593_s24  ;;  %v1020_v55 = vsel %vm1017_vm8, 1, %v1594_v10  ;;  %vm733_vm8 = vcmask 257024  }
 0x50d   : > { %876 = vperm.xlu2 %1481, %v874_v58  }
 0x55f   : > { %v823_v40 = vpop.permute.xlu2 %822 }
 0x560   : > { %v825_v43 = vmul.f32 %v823_v40, %v806_v44  ;;  %v860_v60 = vpop.permute.xlu0 %859 }
 0x561   : > { %v862_v61 = vmul.f32 %v860_v60, %v843_v27 }
 0x562   : > { %v1849_v59 = vsel %vm871_vm12, %v825_v43, %v1804_v51 }
 0x563   : > { %898 = vrot.lane.b32.xlu0 %v1849_v59, %s1592_s29 }
 0x567   : > { %v1853_v62 = vpop.permute.xlu2 %876 }
 0x568   : > { %vm878_vm13 = vcmp.eq.s32.totalorder %v1853_v62, 1 }
 0x569   : > { %v1859_v63 = vsel %vm878_vm13, %v862_v61, %v1798_v57  ;;  %v1883_v58 = vsel %vm878_vm13, %v1825_v52, %v1822_v46  ;;  %v1027_v46 = vsel %vm1019_vm9, 1, %v1594_v10 }
 0x56a   : > { %902 = vrot.lane.b32.xlu1 %v1859_v63, %s1593_s24 }
 0x5d5   : > { %v899_v0 = vpop.permute.xlu0 %898 }
 0x5dc   : > { %v903_v1 = vpop.permute.xlu1 %902 }
 0x5dd   : > { %v905_v2 = vsel %vm543_vm2, %v899_v0, %v903_v1 }
 0x5de   : > { %v906_v3 = vpack.c.bf16 %v905_v2, %v905_v2 }
 0x5e0   : > { %1424 = vmatmul.msk.bf16.vlgmr.msrb.gmra.mxu0 %vm586_vm3, %v906_v3  ;;  %1425 = vmatmul.msk.bf16.vlgmr.msrb.gmra.mxu1 %vm586_vm3, %v906_v3 }
 0x65d   : > { %v919_v6 = vpop.f32.mrf.mxu0  ;;  %v932_v7 = vpop.f32.mrf.mxu1 }
 0x65e   : > { %v938_v9 = vadd.f32 %v937_v4, %v919_v6  ;;  %v941_v11 = vadd.f32 %v940_v5, %v932_v7 }
 0x660   : > { %1514 = vtanh.f32 %v938_v9  ;;  %v1426_v16 = vmul.f32 -1.442695, %v938_v9  ;;  %v1427_v20 = vmul.f32 -1.442695, %v941_v11 }
 0x661   : > { %1516 = vtanh.f32 %v941_v11 }
 0x662   : > { %1518 = vpow2.f32 %v1426_v16 }
 0x665   : > { %v921_v12 = vpop.f32.mrf.mxu0  ;;  %v934_v13 = vpop.f32.mrf.mxu1 }
 0x666   : > { %v1515_v14 = vpop.eup %1514 }
 0x667   : > { %v1517_v15 = vpop.eup %1516  ;;  %964 = vrot.lane.b32.xlu2 %v1515_v14, %s1593_s24  ;;  %v1090_v14 = vld [vmem:[#allocation2 + $0x8] sm:$0xff] }
 0x668   : > { %1001 = vrot.lane.b32.xlu0 %v1517_v15, %s1593_s24  ;;  %v1519_v17 = vpop.eup %1518  ;;  %v1092_v15 = vld [vmem:[#allocation3] sm:$0xff] }
 0x669   : > { %v945_v18 = vadd.f32 1.0, %v1519_v17 }
 0x66b   : > { %1520 = vrcp.f32 %v945_v18  ;;  %v957_v28 = vand.u32 2147483648, %v945_v18  ;;  %vm951_vm15 = vweird.f32 %v945_v18  ;;  %v955_v29 = vand.u32 2147483647, %v945_v18 }
 0x66c   : > { %1522 = vpow2.f32 %v1427_v20 }
 0x66d   : > { %v958_v31 = vor.u32 1.1754944e-38, %v957_v28  ;;  %vm956_vm1 = vcmp.eq.f32.partialorder %v955_v29, 8.507059e+37 }
 0x671   : > { %v1521_v19 = vpop.eup %1520 }
 0x672   : > { %v947_v21 = vmul.f32 %v1521_v19, %v945_v18  ;;  %v1523_v24 = vpop.eup %1522  ;;  %vm952_vm14 = vweird.f32 %v1521_v19 }
 0x673   : > { %v982_v26 = vadd.f32 1.0, %v1523_v24  ;;  %vm953_vm0 = vmor %vm951_vm15, %vm952_vm14 }
 0x674   : > { %v948_v22 = vsub.f32 1.0, %v947_v21 }
 0x675   : > { %1524 = vrcp.f32 %v982_v26  ;;  %v994_v42 = vand.u32 2147483648, %v982_v26  ;;  %vm988_vm5 = vweird.f32 %v982_v26  ;;  %v992_v44 = vand.u32 2147483647, %v982_v26 }
 0x676   : > { %v949_v23 = vmul.f32 %v1521_v19, %v948_v22 }
 0x677   : > { %v995_v48 = vor.u32 1.1754944e-38, %v994_v42  ;;  %vm993_vm7 = vcmp.eq.f32.partialorder %v992_v44, 8.507059e+37 }
 0x678   : > { %v950_v27 = vadd.f32 %v1521_v19, %v949_v23 }
 0x67a   : > { %v954_v30 = vsel %vm953_vm0, %v1521_v19, %v950_v27 }
 0x67b   : > { %v959_v33 = vsel %vm956_vm1, %v958_v31, %v954_v30  ;;  %v1525_v35 = vpop.eup %1524 }
 0x67c   : > { %v984_v36 = vmul.f32 %v1525_v35, %v982_v26  ;;  %vm989_vm4 = vweird.f32 %v1525_v35  ;;  %v962_v40 = vmul.f32 %v959_v33, %v1877_v56 }
 0x67d   : > { %vm990_vm6 = vmor %vm988_vm5, %vm989_vm4 }
 0x67e   : > { %v985_v37 = vsub.f32 1.0, %v984_v36 }
 0x680   : > { %v986_v38 = vmul.f32 %v1525_v35, %v985_v37 }
 0x682   : > { %v987_v41 = vadd.f32 %v1525_v35, %v986_v38 }
 0x684   : > { %v991_v45 = vsel %vm990_vm6, %v1525_v35, %v987_v41 }
 0x685   : > { %v996_v25 = vsel %vm993_vm7, %v995_v48, %v991_v45 }
 0x686   : > { %v999_v43 = vmul.f32 %v996_v25, %v1883_v58 }
 0x6c1   : > { %v965_v32 = vpop.permute.xlu2 %964 }
 0x6c2   : > { %v967_v34 = vmul.f32 %v965_v32, %v959_v33 }
 0x6c4   : > { %969 = vrot.lane.b32.xlu1 %v967_v34, %s1592_s29 }
 0x6da   : > { %v1002_v50 = vpop.permute.xlu0 %1001 }
 0x6db   : > { %v1004_v49 = vmul.f32 %v1002_v50, %v996_v25 }
 0x6dd   : > { %1006 = vrot.lane.b32.xlu2 %v1004_v49, %s1592_s29 }
 0x6e5   : > { %1022 = vperm.xlu2 %1481, %v1020_v55  }
 0x736   : > { %v970_v60 = vpop.permute.xlu1 %969 }
 0x737   : > { %v1007_v61 = vpop.permute.xlu2 %1006  ;;  %v1887_v0 = vadd.f32 %v970_v60, %v962_v40 }
 0x738   : > { %v1889_v1 = vadd.f32 %v1007_v61, %v999_v43 }
 0x739   : > { %1526 = vtanh.f32 %v1887_v0 }
 0x73a   : > { %1528 = vtanh.f32 %v1889_v1 }
 0x73f   : > { %v1527_v54 = vpop.eup %1526  ;;  %v1898_v52 = vpop.permute.xlu2 %1022 }
 0x740   : > { %v1529_v53 = vpop.eup %1528  ;;  %975 = vrot.lane.b32.xlu0 %v1527_v54, %s1593_s24  ;;  %vm1024_vm10 = vcmp.eq.s32.totalorder %v1898_v52, 1 }
 0x741   : > { %1012 = vrot.lane.b32.xlu1 %v1529_v53, %s1593_s24  ;;  %v1168_v53 = vstv %s1048_s15 }
 0x742   : > { %vm1169_vm5 = vcmp.lt.s32.totalorder %v1168_v53, %v1760_v8 }
 0x748   : > { %1029 = vperm.xlu0 %1479, %v1027_v46   ;;  %v1172_v46 = vsel %vm1169_vm5, 1, %v1594_v10 }
 0x7b2   : > { %v976_v62 = vpop.permute.xlu0 %975 }
 0x7b3   : > { %v978_v2 = vmul.f32 %v976_v62, %v959_v33  ;;  %v1013_v4 = vpop.permute.xlu1 %1012  ;;  %v735_v62 = vpack.c.bf16 %v1798_v57, %v1798_v57 }
 0x7b4   : > { %v1015_v5 = vmul.f32 %v1013_v4, %v996_v25  ;;  %v1026_v4 = vsel %vm1024_vm10, %v1887_v0, %v1877_v56  ;;  %v881_v0 = vpack.c.bf16 %v1849_v59, %v1849_v59 }
 0x7b5   : > { %v1904_v3 = vsel %vm1024_vm10, %v978_v2, %v1849_v59  ;;  %v728_v59 = vpack.c.bf16 %v1804_v51, %v1804_v51 }
 0x7b6   : > { %1051 = vrot.lane.b32.xlu1 %v1904_v3, %s1592_s29  ;;  %v1034_v2 = vpack.c.bf16 %v1904_v3, %v1904_v3 }
 0x7ba   : > { %v1908_v6 = vpop.permute.xlu0 %1029 }
 0x7bb   : > { %vm1031_vm11 = vcmp.eq.s32.totalorder %v1908_v6, 1  ;;  %v888_v6 = vpack.c.bf16 %v1859_v63, %v1859_v63 }
 0x7bc   : > { %v1914_v7 = vsel %vm1031_vm11, %v1015_v5, %v1859_v63  ;;  %v1033_v52 = vsel %vm1031_vm11, %v1889_v1, %v1883_v58 }
 0x7bd   : > { %1055 = vrot.lane.b32.xlu2 %v1914_v7, %s1593_s24 }
 0x817   : > { %v1056_v9 = vpop.permute.xlu2 %1055 }
 0x828   : > { %v1052_v11 = vpop.permute.xlu1 %1051 }
 0x829   : > { %v1058_v12 = vsel %vm543_vm2, %v1052_v11, %v1056_v9 }
 0x82a   : > { %v1059_v13 = vpack.c.bf16 %v1058_v12, %v1058_v12 }
 0x82c   : > { %1430 = vmatmul.msk.bf16.vlgmr.msra.gmra.mxu2 %vm586_vm3, %v1059_v13  ;;  %1431 = vmatmul.msk.bf16.vlgmr.msra.gmra.mxu3 %vm586_vm3, %v1059_v13  ;;  %v1170_v13 = vstv %s1049_s16 }
 0x82d   : > { %vm1171_vm6 = vcmp.lt.s32.totalorder %v1170_v13, %v1760_v8  ;;  %v1041_v8 = vpack.c.bf16 %v1914_v7, %v1914_v7 }
 0x82e   : > { %v1179_v57 = vsel %vm1171_vm6, 1, %v1594_v10 }
 0x8af   : > { %v1072_v16 = vpop.f32.mrf.mxu2  ;;  %v1085_v17 = vpop.f32.mrf.mxu3 }
 0x8b0   : > { %v1091_v18 = vadd.f32 %v1090_v14, %v1072_v16  ;;  %v1093_v19 = vadd.f32 %v1092_v15, %v1085_v17 }
 0x8b2   : > { %1530 = vtanh.f32 %v1091_v18  ;;  %v1432_v24 = vmul.f32 -1.442695, %v1091_v18  ;;  %v1433_v26 = vmul.f32 -1.442695, %v1093_v19 }
 0x8b3   : > { %1532 = vtanh.f32 %v1093_v19 }
 0x8b4   : > { %1534 = vpow2.f32 %v1432_v24 }
 0x8b5   : > { %1536 = vpow2.f32 %v1433_v26 }
 0x8b7   : > { %v1074_v20 = vpop.f32.mrf.mxu2  ;;  %v1087_v21 = vpop.f32.mrf.mxu3 }
 0x8b8   : > { %v1531_v22 = vpop.eup %1530 }
 0x8b9   : > { %v1533_v23 = vpop.eup %1532  ;;  %1116 = vrot.lane.b32.xlu0 %v1531_v22, %s1593_s24 }
 0x8ba   : > { %1153 = vrot.lane.b32.xlu1 %v1533_v23, %s1593_s24  ;;  %v1535_v27 = vpop.eup %1534 }
 0x8bb   : > { %v1537_v28 = vpop.eup %1536  ;;  %v1097_v29 = vadd.f32 1.0, %v1535_v27 }
 0x8bc   : > { %v1134_v30 = vadd.f32 1.0, %v1537_v28 }
 0x8bd   : > { %1538 = vrcp.f32 %v1097_v29  ;;  %v1109_v44 = vand.u32 2147483648, %v1097_v29  ;;  %vm1103_vm13 = vweird.f32 %v1097_v29  ;;  %v1107_v48 = vand.u32 2147483647, %v1097_v29 }
 0x8be   : > { %1540 = vrcp.f32 %v1134_v30  ;;  %v1146_v45 = vand.u32 2147483648, %v1134_v30  ;;  %vm1140_vm14 = vweird.f32 %v1134_v30  ;;  %v1144_v50 = vand.u32 2147483647, %v1134_v30 }
 0x8bf   : > { %v1110_v39 = vor.u32 1.1754944e-38, %v1109_v44  ;;  %vm1108_vm1 = vcmp.eq.f32.partialorder %v1107_v48, 8.507059e+37 }
 0x8c0   : > { %v1147_v55 = vor.u32 1.1754944e-38, %v1146_v45  ;;  %vm1145_vm4 = vcmp.eq.f32.partialorder %v1144_v50, 8.507059e+37 }
 0x8c3   : > { %v1539_v31 = vpop.eup %1538 }
 0x8c4   : > { %v1541_v32 = vpop.eup %1540  ;;  %v1099_v33 = vmul.f32 %v1539_v31, %v1097_v29  ;;  %vm1104_vm3 = vweird.f32 %v1539_v31 }
 0x8c5   : > { %v1136_v34 = vmul.f32 %v1541_v32, %v1134_v30  ;;  %vm1141_vm12 = vweird.f32 %v1541_v32  ;;  %vm1105_vm15 = vmor %vm1103_vm13, %vm1104_vm3 }
 0x8c6   : > { %v1100_v35 = vsub.f32 1.0, %v1099_v33  ;;  %vm1142_vm0 = vmor %vm1140_vm14, %vm1141_vm12 }
 0x8c7   : > { %v1137_v36 = vsub.f32 1.0, %v1136_v34 }
 0x8c8   : > { %v1101_v37 = vmul.f32 %v1539_v31, %v1100_v35 }
 0x8c9   : > { %v1138_v38 = vmul.f32 %v1541_v32, %v1137_v36 }
 0x8ca   : > { %v1102_v41 = vadd.f32 %v1539_v31, %v1101_v37 }
 0x8cb   : > { %v1139_v42 = vadd.f32 %v1541_v32, %v1138_v38 }
 0x8cc   : > { %v1106_v25 = vsel %vm1105_vm15, %v1539_v31, %v1102_v41 }
 0x8cd   : > { %v1143_v49 = vsel %vm1142_vm0, %v1541_v32, %v1139_v42  ;;  %v1111_v43 = vsel %vm1108_vm1, %v1110_v39, %v1106_v25 }
 0x8ce   : > { %v1148_v61 = vsel %vm1145_vm4, %v1147_v55, %v1143_v49  ;;  %v1114_v5 = vmul.f32 %v1111_v43, %v1026_v4 }
 0x8cf   : > { %v1151_v56 = vmul.f32 %v1148_v61, %v1033_v52 }
 0x92b   : > { %v1117_v40 = vpop.permute.xlu0 %1116 }
 0x92c   : > { %v1154_v60 = vpop.permute.xlu1 %1153  ;;  %v1119_v54 = vmul.f32 %v1117_v40, %v1111_v43 }
 0x92d   : > { %v1156_v47 = vmul.f32 %v1154_v60, %v1148_v61 }
 0x92e   : > { %1121 = vrot.lane.b32.xlu2 %v1119_v54, %s1592_s29 }
 0x92f   : > { %1158 = vrot.lane.b32.xlu0 %v1156_v47, %s1592_s29 }
 0x937   : > { %1174 = vperm.xlu0 %1479, %v1172_v46  }
 0x93f   : > { %737 = vrot.lane.b32.xlu0 %v735_v62, %s1592_s29 }
 0x947   : > { %1036 = vrot.lane.b32.xlu0 %v1034_v2, %s1592_s29 }
 0x988   : > { %v1122_v9 = vpop.permute.xlu2 %1121 }
 0x989   : > { %v1124_v11 = vadd.f32 %v1122_v9, %v1114_v5 }
 0x98b   : > { %1542 = vtanh.f32 %v1124_v11 }
 0x991   : > { %v1543_v12 = vpop.eup %1542 }
 0x992   : > { %1127 = vrot.lane.b32.xlu1 %v1543_v12, %s1593_s24 }
 0x99a   : > { %1181 = vperm.xlu1 %1480, %v1179_v57  }
 0x9a1   : > { %v1159_v14 = vpop.permute.xlu0 %1158 }
 0x9a2   : > { %v1161_v15 = vadd.f32 %v1159_v14, %v1151_v56  ;;  %883 = vrot.lane.b32.xlu1 %v881_v0, %s1592_s29 }
 0x9a4   : > { %1544 = vtanh.f32 %v1161_v15 }
 0x9a9   : > { %v1175_v10 = vpop.permute.xlu0 %1174 }
 0x9aa   : > { %v1545_v16 = vpop.eup %1544  ;;  %vm1176_vm7 = vcmp.eq.s32.totalorder %v1175_v10, 1  ;;  %1043 = vrot.lane.b32.xlu1 %v1041_v8, %s1592_s29 }
 0x9ab   : > { %1164 = vrot.lane.b32.xlu2 %v1545_v16, %s1593_s24  ;;  %v1178_v58 = vsel %vm1176_vm7, %v1124_v11, %v1026_v4 }
 0x9b1   : > { %v738_v1 = vpop.permute.xlu0 %737 }
 0x9b2   : > { %1417 = vst.msk [vmem:[%s1684_s19 + $0xc] sm:$0xf] %vm733_vm8, %v738_v1 }
 0x9b3   : > { %730 = vrot.lane.b32.xlu2 %v728_v59, %s1592_s29 }
 0x9b9   : > { %v1037_v28 = vpop.permute.xlu0 %1036 }
 0x9ba   : > { %1428 = vst.msk [vmem:[%s1673_s28 + $0x8] sm:$0xf] %vm733_vm8, %v1037_v28 }
 0x9bb   : > { %890 = vrot.lane.b32.xlu2 %v888_v6, %s1592_s29 }
 0xa04   : > { %v1128_v17 = vpop.permute.xlu1 %1127 }
 0xa05   : > { %v1165_v18 = vpop.permute.xlu2 %1164  ;;  %v1130_v19 = vmul.f32 %v1128_v17, %v1111_v43 }
 0xa06   : > { %v1167_v51 = vmul.f32 %v1165_v18, %v1148_v61 }
 0xa07   : > { %v1177_v20 = vsel %vm1176_vm7, %v1130_v19, %v1904_v3 }
 0xa08   : > { %1200 = vrot.lane.b32.xlu1 %v1177_v20, %s1592_s29  ;;  %v1186_v21 = vpack.c.bf16 %v1177_v20, %v1177_v20 }
 0xa0a   : > { %1188 = vrot.lane.b32.xlu2 %v1186_v21, %s1592_s29 }
 0xa0c   : > { %v1182_v22 = vpop.permute.xlu1 %1181 }
 0xa0d   : > { %v731_v23 = vpop.permute.xlu2 %730  ;;  %vm1183_vm9 = vcmp.eq.s32.totalorder %v1182_v22, 1 }
 0xa0e   : > { %734 = vst.msk [vmem:[%s1673_s28] sm:$0xf] %vm733_vm8, %v731_v23  ;;  %v1184_v63 = vsel %vm1183_vm9, %v1167_v51, %v1914_v7  ;;  %v1185_v24 = vsel %vm1183_vm9, %v1161_v15, %v1033_v52 }
 0xa0f   : > { %v1193_v3 = vpack.c.bf16 %v1184_v63, %v1184_v63 }
 0xa10   : > { %1215 = vrot.lane.b32.xlu1 %v1185_v24, %s1595_s13 }
 0xa11   : > { %1195 = vrot.lane.b32.xlu0 %v1193_v3, %s1592_s29 }
 0xa12   : > { %1205 = vrot.lane.b32.xlu2 %v1178_v58, %s1595_s13 }
 0xa14   : > { %v884_v26 = vpop.permute.xlu1 %883 }
 0xa15   : > { %v891_v27 = vpop.permute.xlu2 %890  ;;  %1422 = vst.msk [vmem:[%s1673_s28 + $0x4] sm:$0xf] %vm733_vm8, %v884_v26 }
 0xa16   : > { %1423 = vst.msk [vmem:[%s1684_s19 + $0x8] sm:$0xf] %vm733_vm8, %v891_v27 }
 0xa19   : > { %1210 = vrot.lane.b32.xlu0 %v1184_v63, %s1592_s29 }
 0xa1c   : > { %v1044_v7 = vpop.permute.xlu1 %1043 }
 0xa1d   : > { %1429 = vst.msk [vmem:[%s1684_s19 + $0x4] sm:$0xf] %vm733_vm8, %v1044_v7 }
 0xa64   : > { %v1189_v29 = vpop.permute.xlu2 %1188 }
 0xa65   : > { %1434 = vst.msk [vmem:[%s1673_s28 + $0xc] sm:$0xf] %vm733_vm8, %v1189_v29 }
 0xa6c   : > { %v1206_v30 = vpop.permute.xlu2 %1205 }
 0xa6d   : > { %1208 = vst.msk [vmem:[#allocation5] sm:$0xff] %vm543_vm2, %v1206_v30 }
 0xa7a   : > { %v1201_v31 = vpop.permute.xlu1 %1200 }
 0xa7b   : > { %1203 = vst.msk [vmem:[#allocation4] sm:$0xff] %vm543_vm2, %v1201_v31 }
 0xa82   : > { %v1216_v32 = vpop.permute.xlu1 %1215 }
 0xa83   : > { %1218 = vst.msk [vmem:[#allocation5 + $0x8] sm:$0xff] %vm543_vm2, %v1216_v32  ;;  %v1196_v33 = vpop.permute.xlu0 %1195 }
 0xa84   : > { %1198 = vst.msk [vmem:[%s1684_s19] sm:$0xf] %vm733_vm8, %v1196_v33 }
 0xa8b   : > { %v1211_v34 = vpop.permute.xlu0 %1210 }
 0xa8c   : > { %1213 = vst.msk [vmem:[#allocation4 + $0x8] sm:$0xff] %vm543_vm2, %v1211_v34 }
 0xa8d PF: > { %s21_s30 = sadd.s32 1, %s1586_s30  }
 0xa8e   : > { %p18_p9 = scmp.ge.s32.totalorder %s21_s30, 4  }
 0xa90   :  { %20 = sbr.rel (!%p18_p9) target bundleno = 1 (0x1), region = 120 }
 0xa95   :  { %1261 = vsyncpa [#allocation7], 1 }
 0xa96   :  { %1263 = vsyncpa [#allocation7 + $0x1], 1 }

// kernel: lstm_net_forward.3
= control target key start
LH: loop header
LB: loop body
LE: loop exit
PB: predicated region body
PF: predicated region fallthrough
CT: control target
= control target key end

     0   :  { %s1893_s21 = smov 0   ;;  %s2245_s0 = inlined_call_operand.vmem [shape: bf16[8,8,32], index: 0, kind: input, shape index: {}, may-alias: {0,2}]   ;;  %s2246_s1 = inlined_call_operand.vmem [shape: bf16[8,8,32], index: 1, kind: input, shape index: {}, may-alias: {1,3}]   ;;  %s2247_s2 = inlined_call_operand.vmem [shape: bf16[8,8,32], index: 2, kind: input, shape index: {}, may-alias: {0,2}]   ;;  %s2248_s3 = inlined_call_operand.vmem [shape: bf16[8,8,32], index: 3, kind: input, shape index: {}, may-alias: {1,3}]   ;;  %s2249_s4 = inlined_call_operand.vmem [shape: bf16[64,128], index: 4, kind: input, shape index: {}]   ;;  %s2250_s5 = inlined_call_operand.vmem [shape: bf16[64,128], index: 5, kind: input, shape index: {}]   ;;  %s2251_s6 = inlined_call_operand.vmem [shape: bf16[64,256], index: 6, kind: input, shape index: {}]   ;;  %s2252_s7 = inlined_call_operand.vmem [shape: f32[1,128], index: 7, kind: input, shape index: {}]   ;;  %s2253_s8 = inlined_call_operand.vmem [shape: f32[1,128], index: 8, kind: input, shape index: {}]   ;;  %s2254_s9 = inlined_call_operand.vmem [shape: s32[8,1], index: 9, kind: input, shape index: {}]   ;;  %s2255_s10 = inlined_call_operand.vmem [shape: bf16[64,4], index: 10, kind: input, shape index: {}]   ;;  %s2256_s11 = inlined_call_operand.vmem [shape: f32[1,4], index: 11, kind: input, shape index: {}]   ;;  %s2257_s12 = inlined_call_operand.vmem [shape: f32[8,4], index: 12, kind: output, shape index: {}]  }
   0x1 LB: > { %s1899_s22 = sadd.s32 4294967295, %s1820_s21   ;;  %p1545_p0 = scmp.ge.s32.totalorder %s1820_s21, 1  ;;  %s1820_s21 = sphi %s1893_s21, %s22_s21  }
   0x2   : > { %p399_p1 = scmp.lt.s32.totalorder %s1820_s21, 3 }
   0x4   : > { %p400_p2 = pnand %p1545_p0, %p399_p1 }
   0x5   : > { %s1913_s29 = sshll.u32 (!%p400_p2), %s1899_s22, 2  ;;  %s465_s30 = ssub.s32 (!%p400_p2), 1, %s1899_s22 }
   0x6   : > { %403 = sbr.rel (%p400_p2) target bundleno = 2975 (0xb9f), region = 68  ;;  %p454_p3 = scmp.lt.s32.totalorder (!%p400_p2), %s1913_s29, 7 }
   0x7   : > { %s1550_s15 = sshll.u32 (!%p400_p2), %s465_s30, 2  ;;  %p1626_p5 = scmp.ne.s32.totalorder (!%p400_p2), %s1899_s22, 0 }
   0x8   : > { %p467_p4 = scmp.lt.s32.totalorder (!%p400_p2), %s1550_s15, 7 }
   0xb   : > { %v1705_v0 = vld [vmem:[%s2249_s4 + $0x18] sm:$0xff]  ;;  %v1703_v1 = vld [vmem:[%s2249_s4 + $0x8] sm:$0xff]  ;;  %v1704_v4 = vld [vmem:[%s2249_s4 + $0x10] sm:$0xff]  ;;  %s455_s26 = scalar_select %p454_p3, %s1913_s29, 7  ;;  %vm520_vm0 = vcmask 261120  }
   0xc   : > { %v1713_v2 = vld [vmem:[%s2250_s5 + $0x18] sm:$0xff]  ;;  %v1711_v3 = vld [vmem:[%s2250_s5 + $0x8] sm:$0xff]  ;;  %533 = vmatpush.bf16.msra.mxu0 %v1705_v0  ;;  %580 = vmatpush.bf16.msra.mxu1 %v1703_v1  ;;  %v1702_v5 = vld [vmem:[%s2249_s4] sm:$0xff]  ;;  %s2259_s15 = smov (!%p467_p4, %s1550_s15), 7 }
   0xd   : > { %655 = vmatpush.bf16.msra.mxu2 %v1713_v2  ;;  %702 = vmatpush.bf16.msra.mxu3 %v1711_v3  ;;  %v1712_v6 = vld [vmem:[%s2250_s5 + $0x10] sm:$0xff]  ;;  %v1710_v7 = vld [vmem:[%s2250_s5] sm:$0xff]  ;;  %s1547_s27 = sshll.u32 %s455_s26, 2  ;;  %s1551_s18 = sshll.u32 %s2259_s15, 2 }
   0xe   : > { %s463_s13 = scalar_lea.vmem %s2246_s1, %s1547_s27  ;;  %s457_s17 = scalar_lea.vmem %s2245_s0, %s1547_s27  ;;  %v1740_v16 = vld [vmem:[%s2252_s7] ss:$0 sm:$0xff] }
   0xf   : > { %v1700_v8 = vld [vmem:[%s463_s13] sm:$0xff]  ;;  %s478_s23 = scalar_lea.vmem %s2248_s3, %s1551_s18  ;;  %s470_s26 = scalar_lea.vmem %s2247_s2, %s1551_s18  ;;  %v1701_v12 = vld [vmem:[%s463_s13 + $0x8] sm:$0xff] }
  0x10   : > { %534 = vmatpush.bf16.msra.mxu0 %v1704_v4  ;;  %581 = vmatpush.bf16.msra.mxu1 %v1702_v5  ;;  %v1698_v9 = vld [vmem:[%s457_s17] sm:$0xff]  ;;  %v1699_v13 = vld [vmem:[%s457_s17 + $0x8] sm:$0xff] }
  0x11   : > { %656 = vmatpush.bf16.msra.mxu2 %v1712_v6  ;;  %703 = vmatpush.bf16.msra.mxu3 %v1710_v7  ;;  %v1708_v10 = vld [vmem:[%s478_s23] sm:$0xff]  ;;  %v1709_v14 = vld [vmem:[%s478_s23 + $0x8] sm:$0xff] }
  0x12   : > { %v1706_v11 = vld [vmem:[%s470_s26] sm:$0xff]  ;;  %v1707_v15 = vld [vmem:[%s470_s26 + $0x8] sm:$0xff] }
  0x13   : > { %1570 = vmatmul.msk.bf16.vlgmr.msra.gmra.mxu0 %vm520_vm0, %v1700_v8  ;;  %1588 = vmatmul.msk.bf16.vlgmr.msra.gmra.mxu1 %vm520_vm0, %v1698_v9  ;;  %v1741_v21 = vld [vmem:[%s2253_s8] ss:$0 sm:$0xff] }
  0x14   : > { %1606 = vmatmul.msk.bf16.vlgmr.msra.gmra.mxu2 %vm520_vm0, %v1708_v10  ;;  %1624 = vmatmul.msk.bf16.vlgmr.msra.gmra.mxu3 %vm520_vm0, %v1706_v11 }
  0x23   : > { %1571 = vmatmul.msk.bf16.gmra.mxu0 %vm520_vm0, %v1701_v12  ;;  %1589 = vmatmul.msk.bf16.gmra.mxu1 %vm520_vm0, %v1699_v13 }
  0x24   : > { %1607 = vmatmul.msk.bf16.gmra.mxu2 %vm520_vm0, %v1709_v14  ;;  %1625 = vmatmul.msk.bf16.gmra.mxu3 %vm520_vm0, %v1707_v15 }
  0x90   : > { %v536_v17 = vpop.f32.mrf.mxu0  ;;  %v583_v18 = vpop.f32.mrf.mxu1 }
  0x91   : > { %v584_v19 = vadd.f32 %v583_v18, %v536_v17 }
  0x93   : > { %v597_v20 = vadd.f32 %v1740_v16, %v584_v19 }
  0x95   : > { %601 = vst [vmem:[#allocation2 + $0x10] sm:$0xff] %v597_v20 }
  0x97   : > { %v658_v22 = vpop.f32.mrf.mxu2  ;;  %v705_v23 = vpop.f32.mrf.mxu3 }
  0x98   : > { %v706_v24 = vadd.f32 %v705_v23, %v658_v22  ;;  %v538_v25 = vpop.f32.mrf.mxu0  ;;  %v585_v26 = vpop.f32.mrf.mxu1 }
  0x99   : > { %v586_v27 = vadd.f32 %v585_v26, %v538_v25 }
  0x9a   : > { %v719_v28 = vadd.f32 %v1741_v21, %v706_v24 }
  0x9b   : > { %v598_v29 = vadd.f32 %v1740_v16, %v586_v27 }
  0x9c   : > { %723 = vst [vmem:[#allocation3] sm:$0xff] %v719_v28 }
  0x9d   : > { %602 = vst [vmem:[#allocation2] sm:$0xff] %v598_v29 }
  0x9f   : > { %v660_v30 = vpop.f32.mrf.mxu2  ;;  %v707_v31 = vpop.f32.mrf.mxu3 }
  0xa0   : > { %v708_v32 = vadd.f32 %v707_v31, %v660_v30  ;;  %v541_v33 = vpop.f32.mrf.mxu0  ;;  %v588_v34 = vpop.f32.mrf.mxu1 }
  0xa1   : > { %v589_v35 = vadd.f32 %v588_v34, %v541_v33 }
  0xa2   : > { %v720_v36 = vadd.f32 %v1741_v21, %v708_v32 }
  0xa3   : > { %v599_v37 = vadd.f32 %v1740_v16, %v589_v35 }
  0xa4   : > { %724 = vst [vmem:[#allocation3 + $0x18] sm:$0xff] %v720_v36 }
  0xa5   : > { %603 = vst [vmem:[#allocation2 + $0x18] sm:$0xff] %v599_v37 }
  0xa7   : > { %v663_v38 = vpop.f32.mrf.mxu2  ;;  %v710_v39 = vpop.f32.mrf.mxu3 }
  0xa8   : > { %v711_v40 = vadd.f32 %v710_v39, %v663_v38  ;;  %v543_v41 = vpop.f32.mrf.mxu0  ;;  %v590_v42 = vpop.f32.mrf.mxu1 }
  0xa9   : > { %v591_v43 = vadd.f32 %v590_v42, %v543_v41 }
  0xaa   : > { %v721_v44 = vadd.f32 %v1741_v21, %v711_v40 }
  0xab   : > { %v600_v45 = vadd.f32 %v1740_v16, %v591_v43 }
  0xac   : > { %725 = vst [vmem:[#allocation3 + $0x8] sm:$0xff] %v721_v44 }
  0xad   : > { %604 = vst [vmem:[#allocation2 + $0x8] sm:$0xff] %v600_v45 }
  0xaf   : > { %v665_v46 = vpop.f32.mrf.mxu2  ;;  %v712_v47 = vpop.f32.mrf.mxu3 }
  0xb0   : > { %v713_v48 = vadd.f32 %v712_v47, %v665_v46  ;;  %730 = sbr.rel (%p1626_p5) target bundleno = 186 (0xba), region = 72 }
  0xb2   : > { %v722_v49 = vadd.f32 %v1741_v21, %v713_v48 }
  0xb4   : > { %726 = vst [vmem:[#allocation3 + $0x10] sm:$0xff] %v722_v49 }
  0xb5   : > { %v1822_v50 = vmov 0.0  }
  0xb6   : > { %731 = vst.msk [vmem:[#allocation4] sm:$0xff] %vm520_vm0, %v1822_v50 }
  0xb7   : > { %732 = vst.msk [vmem:[#allocation4 + $0x8] sm:$0xff] %vm520_vm0, %v1822_v50 }
  0xb8   : > { %733 = vst.msk [vmem:[#allocation5] sm:$0xff] %vm520_vm0, %v1822_v50 }
  0xb9   : > { %734 = vst.msk [vmem:[#allocation5 + $0x8] sm:$0xff] %vm520_vm0, %v1822_v50 }
  0xba PF: > { %v1654_v52 = vld [vmem:[%s2251_s6 + $0x30] sm:$0xf]  ;;  %v1721_v53 = vld [vmem:[%s2251_s6 + $0x34] sm:$0xf0]  ;;  %s1823_s18 = smov 32   ;;  %vm798_vm1 = vcmask 523264  }
  0xbb   : > { %v1655_v54 = vor.u32 %v1721_v53, %v1654_v52  ;;  %v1720_v55 = vld [vmem:[%s2251_s6 + $0x34] sm:$0xf]  ;;  %v1656_v56 = vld [vmem:[%s2251_s6 + $0x38] sm:$0xf0]  ;;  %v1646_v57 = vld [vmem:[%s2251_s6 + $0x20] sm:$0xf] }
  0xbc   : > { %v1659_v58 = vor.u32 %v1720_v55, %v1656_v56  ;;  %v1719_v59 = vld [vmem:[%s2251_s6 + $0x24] sm:$0xf0]  ;;  %v1718_v60 = vld [vmem:[%s2251_s6 + $0x24] sm:$0xf]  ;;  %v1648_v61 = vld [vmem:[%s2251_s6 + $0x28] sm:$0xf0] }
  0xbd   : > { %806 = vmatpush.bf16.msrb.mxu0 %v1655_v54  ;;  %v1647_v62 = vor.u32 %v1719_v59, %v1646_v57  ;;  %959 = vmatpush.bf16.msrb.mxu2 %v1655_v54  ;;  %v1651_v63 = vor.u32 %v1718_v60, %v1648_v61  ;;  %v1638_v0 = vld [vmem:[%s2251_s6 + $0x10] sm:$0xf]  ;;  %v1717_v1 = vld [vmem:[%s2251_s6 + $0x14] sm:$0xf0]  ;;  %v1716_v2 = vld [vmem:[%s2251_s6 + $0x14] sm:$0xf] }
  0xbe   : > { %v1964_v51 = vld [vmem:[#allocation4 + $0x8] sm:$0xff]  ;;  %819 = vmatpush.bf16.msrb.mxu1 %v1659_v58  ;;  %972 = vmatpush.bf16.msrb.mxu3 %v1659_v58  ;;  %v1640_v3 = vld [vmem:[%s2251_s6 + $0x18] sm:$0xf0]  ;;  %v1639_v4 = vor.u32 %v1717_v1, %v1638_v0  ;;  %v1630_v6 = vld [vmem:[%s2251_s6] sm:$0xf]  ;;  %s1824_s19 = smov 64  }
  0xbf   : > { %753 = vrot.lane.b32.xlu0 %v1964_v51, %s1823_s18  ;;  %v1643_v5 = vor.u32 %v1716_v2, %v1640_v3  ;;  %v1715_v7 = vld [vmem:[%s2251_s6 + $0x4] sm:$0xf0]  ;;  %v1714_v8 = vld [vmem:[%s2251_s6 + $0x4] sm:$0xf]  ;;  %v1632_v10 = vld [vmem:[%s2251_s6 + $0x8] sm:$0xf0] }
  0xc0   : > { %v1631_v9 = vor.u32 %v1715_v7, %v1630_v6  ;;  %v1635_v11 = vor.u32 %v1714_v8, %v1632_v10  ;;  %v750_v12 = vld [vmem:[#allocation5 + $0x8] sm:$0xff]  ;;  %v2017_v13 = vld [vmem:[#allocation4] sm:$0xff]  ;;  %v828_v17 = vld [vmem:[#allocation2 + $0x10] sm:$0xff]  ;;  %s751_s20 = ssub.s32 7, %s1913_s29  ;;  %v1825_v36 = vmov 0   ;;  %s1826_s25 = smov 96  }
  0xc1   : > { %807 = vmatpush.bf16.msrb.mxu0 %v1647_v62  ;;  %960 = vmatpush.bf16.msrb.mxu2 %v1647_v62  ;;  %v831_v18 = vld [vmem:[#allocation3 + $0x10] sm:$0xff]  ;;  %v2030_v34 = vld [vmem:[%s2254_s9] sm:$0xff]  ;;  %v917_v35 = vstv %s751_s20  ;;  %s940_s26 = sadd.s32 1, %s1913_s29  ;;  %s941_s15 = ssub.s32 6, %s1913_s29 }
  0xc2   : > { %820 = vmatpush.bf16.msrb.mxu1 %v1651_v63  ;;  %973 = vmatpush.bf16.msrb.mxu3 %v1651_v63  ;;  %v746_v27 = vld [vmem:[#allocation5] sm:$0xff]  ;;  %vm918_vm2 = vcmp.lt.s32.totalorder %v917_v35, %v2030_v34  ;;  %s1079_s27 = sadd.s32 2, %s1913_s29  ;;  %s1080_s28 = ssub.s32 5, %s1913_s29 }
  0xc3   : > { %895 = vrot.lane.b32.xlu2 %v750_v12, %s1823_s18  ;;  %1743 = vset.pattern.permute.xlu1 %v1825_v36  ;;  %v930_v37 = vsel %vm918_vm2, 1, %v1825_v36  ;;  %s1218_s30 = sadd.s32 3, %s1913_s29  ;;  %s1219_s13 = ssub.s32 4, %s1913_s29 }
  0xc4   : > { %1742 = vset.pattern.permute.xlu0 %v1825_v36  ;;  %1744 = vset.pattern.permute.xlu2 %v1825_v36  ;;  %p1676_p6 = scmp.ne.s32.totalorder %s1899_s22, 1 }
  0xc5   : > { %808 = vmatpush.bf16.msrb.mxu0 %v1639_v4  ;;  %961 = vmatpush.bf16.msrb.mxu2 %v1639_v4  ;;  %s1827_s14 = smov (!%p1676_p6), 32  }
  0xc6   : > { %821 = vmatpush.bf16.msrb.mxu1 %v1643_v5  ;;  %974 = vmatpush.bf16.msrb.mxu3 %v1643_v5 }
  0xc9   : > { %809 = vmatpush.bf16.msrb.mxu0 %v1631_v9  ;;  %962 = vmatpush.bf16.msrb.mxu2 %v1631_v9 }
  0xca   : > { %822 = vmatpush.bf16.msrb.mxu1 %v1635_v11  ;;  %975 = vmatpush.bf16.msrb.mxu3 %v1635_v11 }
  0xcd   : > { %1098 = vmatpush.bf16.msra.mxu0 %v1655_v54  ;;  %1237 = vmatpush.bf16.msra.mxu2 %v1655_v54 }
  0xce   : > { %1111 = vmatpush.bf16.msra.mxu1 %v1659_v58  ;;  %1250 = vmatpush.bf16.msra.mxu3 %v1659_v58 }
  0xd1   : > { %1099 = vmatpush.bf16.msra.mxu0 %v1647_v62  ;;  %1238 = vmatpush.bf16.msra.mxu2 %v1647_v62 }
  0xd2   : > { %1112 = vmatpush.bf16.msra.mxu1 %v1651_v63  ;;  %1251 = vmatpush.bf16.msra.mxu3 %v1651_v63  ;;  %v915_v63 = vstv %s1913_s29 }
  0xd3   : > { %vm916_vm11 = vcmp.lt.s32.totalorder %v915_v63, %v2030_v34 }
  0xd4   : > { %v919_v0 = vsel %vm916_vm11, 1, %v1825_v36 }
  0xd5   : > { %1100 = vmatpush.bf16.msra.mxu0 %v1639_v4  ;;  %1239 = vmatpush.bf16.msra.mxu2 %v1639_v4 }
  0xd6   : > { %1113 = vmatpush.bf16.msra.mxu1 %v1643_v5  ;;  %1252 = vmatpush.bf16.msra.mxu3 %v1643_v5 }
  0xd9   : > { %1101 = vmatpush.bf16.msra.mxu0 %v1631_v9  ;;  %1240 = vmatpush.bf16.msra.mxu2 %v1631_v9 }
  0xda   : > { %1114 = vmatpush.bf16.msra.mxu1 %v1635_v11  ;;  %1253 = vmatpush.bf16.msra.mxu3 %v1635_v11 }
 0x11d   : > { %v2042_v1 = vpop.permute.xlu2 %895 }
 0x131   : > { %v754_v14 = vpop.permute.xlu0 %753 }
 0x132   : > { %v756_v15 = vsel %vm520_vm0, %v2017_v13, %v754_v14 }
 0x133   : > { %v757_v16 = vpack.c.bf16 %v756_v15, %v756_v15 }
 0x135   : > { %1660 = vmatmul.msk.bf16.vlgmr.msrb.gmra.mxu0 %vm798_vm1, %v757_v16  ;;  %1661 = vmatmul.msk.bf16.vlgmr.msrb.gmra.mxu1 %vm798_vm1, %v757_v16 }
 0x1b2   : > { %v811_v19 = vpop.f32.mrf.mxu0  ;;  %v824_v20 = vpop.f32.mrf.mxu1 }
 0x1b3   : > { %v829_v21 = vadd.f32 %v828_v17, %v811_v19  ;;  %v832_v22 = vadd.f32 %v831_v18, %v824_v20 }
 0x1b5   : > { %1745 = vtanh.f32 %v829_v21  ;;  %v1662_v28 = vmul.f32 -1.442695, %v829_v21  ;;  %v1663_v29 = vmul.f32 -1.442695, %v832_v22 }
 0x1b6   : > { %1747 = vtanh.f32 %v832_v22 }
 0x1b7   : > { %1749 = vpow2.f32 %v1662_v28 }
 0x1b8   : > { %1751 = vpow2.f32 %v1663_v29 }
 0x1ba   : > { %v813_v23 = vpop.f32.mrf.mxu0  ;;  %v826_v24 = vpop.f32.mrf.mxu1 }
 0x1bb   : > { %v1746_v25 = vpop.eup %1745  ;;  %v982_v24 = vld [vmem:[#allocation2] sm:$0xff] }
 0x1bc   : > { %v1748_v26 = vpop.eup %1747  ;;  %859 = vrot.lane.b32.xlu0 %v1746_v25, %s1824_s19  ;;  %v985_v25 = vld [vmem:[#allocation3 + $0x8] sm:$0xff] }
 0x1bd   : > { %900 = vrot.lane.b32.xlu1 %v1748_v26, %s1824_s19  ;;  %v1750_v30 = vpop.eup %1749 }
 0x1be   : > { %v1752_v31 = vpop.eup %1751  ;;  %v836_v32 = vadd.f32 1.0, %v1750_v30 }
 0x1bf   : > { %v877_v33 = vadd.f32 1.0, %v1752_v31 }
 0x1c0   : > { %1753 = vrcp.f32 %v836_v32  ;;  %v848_v48 = vand.u32 2147483648, %v836_v32  ;;  %vm842_vm5 = vweird.f32 %v836_v32  ;;  %v846_v50 = vand.u32 2147483647, %v836_v32 }
 0x1c1   : > { %1755 = vrcp.f32 %v877_v33  ;;  %v889_v49 = vand.u32 2147483648, %v877_v33  ;;  %vm883_vm6 = vweird.f32 %v877_v33  ;;  %v887_v52 = vand.u32 2147483647, %v877_v33 }
 0x1c2   : > { %v849_v55 = vor.u32 1.1754944e-38, %v848_v48  ;;  %vm847_vm9 = vcmp.eq.f32.partialorder %v846_v50, 8.507059e+37 }
 0x1c3   : > { %v890_v56 = vor.u32 1.1754944e-38, %v889_v49  ;;  %vm888_vm10 = vcmp.eq.f32.partialorder %v887_v52, 8.507059e+37 }
 0x1c5   : > { %854 = vrot.lane.b32.xlu1 %v746_v27, %s1823_s18 }
 0x1c6   : > { %v1754_v38 = vpop.eup %1753 }
 0x1c7   : > { %v1756_v39 = vpop.eup %1755  ;;  %v838_v40 = vmul.f32 %v1754_v38, %v836_v32  ;;  %vm843_vm3 = vweird.f32 %v1754_v38 }
 0x1c8   : > { %v879_v41 = vmul.f32 %v1756_v39, %v877_v33  ;;  %vm884_vm4 = vweird.f32 %v1756_v39  ;;  %vm844_vm7 = vmor %vm842_vm5, %vm843_vm3 }
 0x1c9   : > { %v839_v42 = vsub.f32 1.0, %v838_v40  ;;  %vm885_vm8 = vmor %vm883_vm6, %vm884_vm4 }
 0x1ca   : > { %v880_v43 = vsub.f32 1.0, %v879_v41 }
 0x1cb   : > { %v840_v44 = vmul.f32 %v1754_v38, %v839_v42 }
 0x1cc   : > { %v881_v45 = vmul.f32 %v1756_v39, %v880_v43 }
 0x1cd   : > { %932 = vperm.xlu1 %1743, %v930_v37   ;;  %v841_v46 = vadd.f32 %v1754_v38, %v840_v44 }
 0x1ce   : > { %v882_v47 = vadd.f32 %v1756_v39, %v881_v45 }
 0x1cf   : > { %v845_v53 = vsel %vm844_vm7, %v1754_v38, %v841_v46 }
 0x1d0   : > { %v886_v54 = vsel %vm885_vm8, %v1756_v39, %v882_v47  ;;  %v850_v58 = vsel %vm847_vm9, %v849_v55, %v845_v53 }
 0x1d1   : > { %v891_v59 = vsel %vm888_vm10, %v890_v56, %v886_v54  ;;  %v1061_v56 = vstv %s940_s26 }
 0x1d2   : > { %v898_v7 = vmul.f32 %v2042_v1, %v891_v59  ;;  %vm1062_vm4 = vcmp.lt.s32.totalorder %v1061_v56, %v2030_v34 }
 0x22e   : > { %v860_v57 = vpop.permute.xlu0 %859 }
 0x22f   : > { %v862_v60 = vmul.f32 %v860_v57, %v850_v58  ;;  %v901_v61 = vpop.permute.xlu1 %900 }
 0x230   : > { %v903_v62 = vmul.f32 %v901_v61, %v891_v59 }
 0x231   : > { %864 = vrot.lane.b32.xlu2 %v862_v60, %s1823_s18 }
 0x232   : > { %905 = vrot.lane.b32.xlu0 %v903_v62, %s1823_s18 }
 0x237   : > { %v2044_v2 = vpop.permute.xlu1 %854 }
 0x238   : > { %v857_v3 = vmul.f32 %v2044_v2, %v850_v58 }
 0x23a   : > { %921 = vperm.xlu0 %1742, %v919_v0  }
 0x23f   : > { %v2060_v11 = vpop.permute.xlu1 %932 }
 0x240   : > { %vm934_vm12 = vcmp.eq.s32.totalorder %v2060_v11, 1 }
 0x28b   : > { %v865_v4 = vpop.permute.xlu2 %864 }
 0x28c   : > { %v2047_v5 = vadd.f32 %v865_v4, %v857_v3 }
 0x28e   : > { %1757 = vtanh.f32 %v2047_v5 }
 0x294   : > { %v1758_v6 = vpop.eup %1757 }
 0x295   : > { %870 = vrot.lane.b32.xlu1 %v1758_v6, %s1824_s19 }
 0x29d   : > { %935 = vrot.lane.b32.xlu1 %v1964_v51, %s1826_s25 }
 0x2a4   : > { %v906_v8 = vpop.permute.xlu0 %905 }
 0x2a5   : > { %v2054_v9 = vadd.f32 %v906_v8, %v898_v7 }
 0x2a7   : > { %1759 = vtanh.f32 %v2054_v9  ;;  %v2092_v8 = vsel %vm934_vm12, %v2054_v9, %v2042_v1 }
 0x2ac   : > { %v2062_v15 = vpop.permute.xlu0 %921 }
 0x2ad   : > { %v1760_v10 = vpop.eup %1759  ;;  %vm923_vm13 = vcmp.eq.s32.totalorder %v2062_v15, 1 }
 0x2ae   : > { %911 = vrot.lane.b32.xlu2 %v1760_v10, %s1824_s19 }
 0x2b6   : > { %925 = vrot.lane.b32.xlu2 %v2017_v13, %s1826_s25 }
 0x307   : > { %v871_v12 = vpop.permute.xlu1 %870 }
 0x308   : > { %v912_v14 = vpop.permute.xlu2 %911  ;;  %v873_v16 = vmul.f32 %v871_v12, %v850_v58  ;;  %v1065_v58 = vsel %vm1062_vm4, 1, %v1825_v36 }
 0x309   : > { %v914_v51 = vmul.f32 %v912_v14, %v891_v59 }
 0x30f   : > { %v936_v17 = vpop.permute.xlu1 %935 }
 0x310   : > { %v926_v18 = vpop.permute.xlu2 %925  ;;  %v2068_v19 = vsel %vm934_vm12, %v914_v51, %v936_v17 }
 0x311   : > { %947 = vrot.lane.b32.xlu0 %v2068_v19, %s1824_s19  ;;  %v2074_v13 = vsel %vm923_vm13, %v873_v16, %v926_v18  ;;  %v2103_v16 = vsel %vm923_vm13, %v2047_v5, %v2044_v2  ;;  %v1063_v18 = vstv %s941_s15 }
 0x312   : > { %943 = vrot.lane.b32.xlu2 %v2074_v13, %s1823_s18  ;;  %vm1064_vm9 = vcmp.lt.s32.totalorder %v1063_v18, %v2030_v34 }
 0x36c   : > { %v944_v20 = vpop.permute.xlu2 %943 }
 0x383   : > { %v948_v21 = vpop.permute.xlu0 %947 }
 0x384   : > { %v950_v22 = vsel %vm520_vm0, %v944_v20, %v948_v21  ;;  %v1072_v20 = vsel %vm1064_vm9, 1, %v1825_v36 }
 0x385   : > { %v951_v23 = vpack.c.bf16 %v950_v22, %v950_v22 }
 0x387   : > { %1664 = vmatmul.msk.bf16.vlgmr.msrb.gmra.mxu2 %vm798_vm1, %v951_v23  ;;  %1665 = vmatmul.msk.bf16.vlgmr.msrb.gmra.mxu3 %vm798_vm1, %v951_v23 }
 0x40a   : > { %v964_v26 = vpop.f32.mrf.mxu2  ;;  %v977_v27 = vpop.f32.mrf.mxu3 }
 0x40b   : > { %v983_v28 = vadd.f32 %v982_v24, %v964_v26  ;;  %v986_v29 = vadd.f32 %v985_v25, %v977_v27 }
 0x40d   : > { %1761 = vtanh.f32 %v983_v28  ;;  %v1667_v35 = vmul.f32 -1.442695, %v986_v29  ;;  %v1666_v40 = vmul.f32 -1.442695, %v983_v28 }
 0x40e   : > { %1763 = vtanh.f32 %v986_v29  ;;  %v1121_v29 = vld [vmem:[#allocation2 + $0x18] sm:$0xff] }
 0x40f   : > { %1765 = vpow2.f32 %v1667_v35 }
 0x412   : > { %v966_v30 = vpop.f32.mrf.mxu2  ;;  %v979_v31 = vpop.f32.mrf.mxu3 }
 0x413   : > { %v1762_v32 = vpop.eup %1761  ;;  %v1124_v30 = vld [vmem:[#allocation3 + $0x18] sm:$0xff] }
 0x414   : > { %v1764_v33 = vpop.eup %1763  ;;  %1009 = vrot.lane.b32.xlu1 %v1762_v32, %s1824_s19 }
 0x415   : > { %1046 = vrot.lane.b32.xlu2 %v1764_v33, %s1824_s19  ;;  %v1766_v37 = vpop.eup %1765 }
 0x416   : > { %v1027_v38 = vadd.f32 1.0, %v1766_v37 }
 0x418   : > { %1767 = vrcp.f32 %v1027_v38  ;;  %v1039_v47 = vand.u32 2147483648, %v1027_v38  ;;  %vm1033_vm15 = vweird.f32 %v1027_v38  ;;  %v1037_v48 = vand.u32 2147483647, %v1027_v38 }
 0x419   : > { %1769 = vpow2.f32 %v1666_v40 }
 0x41a   : > { %v1040_v50 = vor.u32 1.1754944e-38, %v1039_v47  ;;  %vm1038_vm3 = vcmp.eq.f32.partialorder %v1037_v48, 8.507059e+37 }
 0x41e   : > { %v1768_v39 = vpop.eup %1767 }
 0x41f   : > { %v1029_v41 = vmul.f32 %v1768_v39, %v1027_v38  ;;  %v1770_v43 = vpop.eup %1769  ;;  %vm1034_vm14 = vweird.f32 %v1768_v39 }
 0x420   : > { %v990_v45 = vadd.f32 1.0, %v1770_v43  ;;  %vm1035_vm2 = vmor %vm1033_vm15, %vm1034_vm14 }
 0x421   : > { %v1030_v42 = vsub.f32 1.0, %v1029_v41 }
 0x422   : > { %1771 = vrcp.f32 %v990_v45  ;;  %v1002_v62 = vand.u32 2147483648, %v990_v45  ;;  %vm996_vm6 = vweird.f32 %v990_v45  ;;  %v1000_v63 = vand.u32 2147483647, %v990_v45 }
 0x423   : > { %v1031_v44 = vmul.f32 %v1768_v39, %v1030_v42 }
 0x424   : > { %v1003_v3 = vor.u32 1.1754944e-38, %v1002_v62  ;;  %vm1001_vm8 = vcmp.eq.f32.partialorder %v1000_v63, 8.507059e+37 }
 0x425   : > { %v1032_v46 = vadd.f32 %v1768_v39, %v1031_v44 }
 0x427   : > { %v1036_v49 = vsel %vm1035_vm2, %v1768_v39, %v1032_v46 }
 0x428   : > { %v1041_v53 = vsel %vm1038_vm3, %v1040_v50, %v1036_v49  ;;  %v1772_v54 = vpop.eup %1771 }
 0x429   : > { %v992_v57 = vmul.f32 %v1772_v54, %v990_v45  ;;  %vm997_vm5 = vweird.f32 %v1772_v54  ;;  %v1044_v10 = vmul.f32 %v1041_v53, %v2092_v8 }
 0x42a   : > { %vm998_vm7 = vmor %vm996_vm6, %vm997_vm5 }
 0x42b   : > { %v993_v59 = vsub.f32 1.0, %v992_v57 }
 0x42d   : > { %v994_v60 = vmul.f32 %v1772_v54, %v993_v59 }
 0x42f   : > { %v995_v61 = vadd.f32 %v1772_v54, %v994_v60 }
 0x431   : > { %v999_v0 = vsel %vm998_vm7, %v1772_v54, %v995_v61 }
 0x432   : > { %v1004_v6 = vsel %vm1001_vm8, %v1003_v3, %v999_v0 }
 0x433   : > { %v1007_v11 = vmul.f32 %v1004_v6, %v2103_v16 }
 0x46f   : > { %v1047_v52 = vpop.permute.xlu2 %1046 }
 0x470   : > { %v1049_v55 = vmul.f32 %v1047_v52, %v1041_v53 }
 0x472   : > { %1051 = vrot.lane.b32.xlu1 %v1049_v55, %s1823_s18 }
 0x47a   : > { %1067 = vperm.xlu1 %1743, %v1065_v58  }
 0x486   : > { %v1010_v4 = vpop.permute.xlu1 %1009 }
 0x487   : > { %v1012_v7 = vmul.f32 %v1010_v4, %v1004_v6 }
 0x489   : > { %1014 = vrot.lane.b32.xlu0 %v1012_v7, %s1823_s18 }
 0x4e4   : > { %v1052_v12 = vpop.permute.xlu1 %1051 }
 0x4e5   : > { %v2095_v14 = vadd.f32 %v1052_v12, %v1044_v10 }
 0x4e7   : > { %1773 = vtanh.f32 %v2095_v14 }
 0x4ec   : > { %v2113_v15 = vpop.permute.xlu1 %1067 }
 0x4ed   : > { %v1774_v51 = vpop.eup %1773  ;;  %vm1069_vm10 = vcmp.eq.s32.totalorder %v2113_v15, 1 }
 0x4ee   : > { %1057 = vrot.lane.b32.xlu0 %v1774_v51, %s1824_s19  ;;  %v1200_v51 = vstv %s1079_s27 }
 0x4ef   : > { %vm1201_vm6 = vcmp.lt.s32.totalorder %v1200_v51, %v2030_v34 }
 0x4fb   : > { %v1015_v1 = vpop.permute.xlu0 %1014 }
 0x4fc   : > { %v2106_v9 = vadd.f32 %v1015_v1, %v1007_v11  ;;  %v1204_v11 = vsel %vm1201_vm6, 1, %v1825_v36 }
 0x4fe   : > { %1775 = vtanh.f32 %v2106_v9  ;;  %v2147_v1 = vsel %vm1069_vm10, %v2106_v9, %v2103_v16  ;;  %v1202_v9 = vstv %s1080_s28 }
 0x4ff   : > { %vm1203_vm7 = vcmp.lt.s32.totalorder %v1202_v9, %v2030_v34 }
 0x504   : > { %v1776_v17 = vpop.eup %1775 }
 0x505   : > { %1020 = vrot.lane.b32.xlu2 %v1776_v17, %s1824_s19 }
 0x50d   : > { %1074 = vperm.xlu2 %1744, %v1072_v20  }
 0x55f   : > { %v1021_v2 = vpop.permute.xlu2 %1020 }
 0x560   : > { %v1023_v5 = vmul.f32 %v1021_v2, %v1004_v6  ;;  %v1058_v22 = vpop.permute.xlu0 %1057 }
 0x561   : > { %v1060_v23 = vmul.f32 %v1058_v22, %v1041_v53 }
 0x562   : > { %v2119_v21 = vsel %vm1069_vm10, %v1023_v5, %v2074_v13 }
 0x563   : > { %1082 = vrot.lane.b32.xlu0 %v2119_v21, %s1823_s18 }
 0x567   : > { %v2123_v24 = vpop.permute.xlu2 %1074 }
 0x568   : > { %vm1076_vm11 = vcmp.eq.s32.totalorder %v2123_v24, 1 }
 0x569   : > { %v2129_v25 = vsel %vm1076_vm11, %v1060_v23, %v2068_v19  ;;  %v2153_v17 = vsel %vm1076_vm11, %v2095_v14, %v2092_v8  ;;  %v1211_v8 = vsel %vm1203_vm7, 1, %v1825_v36 }
 0x56a   : > { %1086 = vrot.lane.b32.xlu1 %v2129_v25, %s1824_s19 }
 0x5d5   : > { %v1083_v26 = vpop.permute.xlu0 %1082 }
 0x5dc   : > { %v1087_v13 = vpop.permute.xlu1 %1086 }
 0x5dd   : > { %v1089_v27 = vsel %vm520_vm0, %v1083_v26, %v1087_v13 }
 0x5de   : > { %v1090_v28 = vpack.c.bf16 %v1089_v27, %v1089_v27 }
 0x5e0   : > { %1668 = vmatmul.msk.bf16.vlgmr.msra.gmra.mxu0 %vm798_vm1, %v1090_v28  ;;  %1669 = vmatmul.msk.bf16.vlgmr.msra.gmra.mxu1 %vm798_vm1, %v1090_v28 }
 0x65d   : > { %v1103_v31 = vpop.f32.mrf.mxu0  ;;  %v1116_v32 = vpop.f32.mrf.mxu1 }
 0x65e   : > { %v1122_v33 = vadd.f32 %v1121_v29, %v1103_v31  ;;  %v1125_v35 = vadd.f32 %v1124_v30, %v1116_v32 }
 0x660   : > { %1777 = vtanh.f32 %v1122_v33  ;;  %v1670_v40 = vmul.f32 -1.442695, %v1122_v33  ;;  %v1671_v44 = vmul.f32 -1.442695, %v1125_v35 }
 0x661   : > { %1779 = vtanh.f32 %v1125_v35  ;;  %v1260_v35 = vld [vmem:[#allocation2 + $0x8] sm:$0xff] }
 0x662   : > { %1781 = vpow2.f32 %v1670_v40 }
 0x665   : > { %v1105_v19 = vpop.f32.mrf.mxu0  ;;  %v1118_v37 = vpop.f32.mrf.mxu1 }
 0x666   : > { %v1778_v38 = vpop.eup %1777  ;;  %v1262_v19 = vld [vmem:[#allocation3] sm:$0xff] }
 0x667   : > { %v1780_v39 = vpop.eup %1779  ;;  %1148 = vrot.lane.b32.xlu2 %v1778_v38, %s1824_s19 }
 0x668   : > { %1185 = vrot.lane.b32.xlu0 %v1780_v39, %s1824_s19  ;;  %v1782_v41 = vpop.eup %1781 }
 0x669   : > { %v1129_v42 = vadd.f32 1.0, %v1782_v41 }
 0x66b   : > { %1783 = vrcp.f32 %v1129_v42  ;;  %v1141_v52 = vand.u32 2147483648, %v1129_v42  ;;  %vm1135_vm13 = vweird.f32 %v1129_v42  ;;  %v1139_v53 = vand.u32 2147483647, %v1129_v42 }
 0x66c   : > { %1785 = vpow2.f32 %v1671_v44 }
 0x66d   : > { %v1142_v55 = vor.u32 1.1754944e-38, %v1141_v52  ;;  %vm1140_vm15 = vcmp.eq.f32.partialorder %v1139_v53, 8.507059e+37 }
 0x671   : > { %v1784_v43 = vpop.eup %1783 }
 0x672   : > { %v1131_v45 = vmul.f32 %v1784_v43, %v1129_v42  ;;  %v1786_v48 = vpop.eup %1785  ;;  %vm1136_vm12 = vweird.f32 %v1784_v43 }
 0x673   : > { %v1166_v49 = vadd.f32 1.0, %v1786_v48  ;;  %vm1137_vm14 = vmor %vm1135_vm13, %vm1136_vm12 }
 0x674   : > { %v1132_v46 = vsub.f32 1.0, %v1131_v45 }
 0x675   : > { %1787 = vrcp.f32 %v1166_v49  ;;  %v1178_v0 = vand.u32 2147483648, %v1166_v49  ;;  %vm1172_vm3 = vweird.f32 %v1166_v49  ;;  %v1176_v3 = vand.u32 2147483647, %v1166_v49 }
 0x676   : > { %v1133_v47 = vmul.f32 %v1784_v43, %v1132_v46 }
 0x677   : > { %v1179_v6 = vor.u32 1.1754944e-38, %v1178_v0  ;;  %vm1177_vm5 = vcmp.eq.f32.partialorder %v1176_v3, 8.507059e+37 }
 0x678   : > { %v1134_v50 = vadd.f32 %v1784_v43, %v1133_v47 }
 0x67a   : > { %v1138_v54 = vsel %vm1137_vm14, %v1784_v43, %v1134_v50 }
 0x67b   : > { %v1143_v57 = vsel %vm1140_vm15, %v1142_v55, %v1138_v54  ;;  %v1788_v59 = vpop.eup %1787 }
 0x67c   : > { %v1168_v60 = vmul.f32 %v1788_v59, %v1166_v49  ;;  %vm1173_vm2 = vweird.f32 %v1788_v59  ;;  %v1146_v18 = vmul.f32 %v1143_v57, %v2147_v1 }
 0x67d   : > { %vm1174_vm4 = vmor %vm1172_vm3, %vm1173_vm2 }
 0x67e   : > { %v1169_v61 = vsub.f32 1.0, %v1168_v60 }
 0x680   : > { %v1170_v62 = vmul.f32 %v1788_v59, %v1169_v61 }
 0x682   : > { %v1171_v63 = vadd.f32 %v1788_v59, %v1170_v62 }
 0x684   : > { %v1175_v4 = vsel %vm1174_vm4, %v1788_v59, %v1171_v63 }
 0x685   : > { %v1180_v10 = vsel %vm1177_vm5, %v1179_v6, %v1175_v4 }
 0x686   : > { %v1183_v20 = vmul.f32 %v1180_v10, %v2153_v17 }
 0x6c1   : > { %v1149_v56 = vpop.permute.xlu2 %1148 }
 0x6c2   : > { %v1151_v58 = vmul.f32 %v1149_v56, %v1143_v57 }
 0x6c4   : > { %1153 = vrot.lane.b32.xlu1 %v1151_v58, %s1823_s18 }
 0x6da   : > { %v1186_v7 = vpop.permute.xlu0 %1185 }
 0x6db   : > { %v1188_v12 = vmul.f32 %v1186_v7, %v1180_v10 }
 0x6dd   : > { %1190 = vrot.lane.b32.xlu2 %v1188_v12, %s1823_s18 }
 0x6e5   : > { %1206 = vperm.xlu2 %1744, %v1204_v11  }
 0x736   : > { %v1154_v2 = vpop.permute.xlu1 %1153 }
 0x737   : > { %v1191_v5 = vpop.permute.xlu2 %1190  ;;  %v2157_v22 = vadd.f32 %v1154_v2, %v1146_v18  ;;  %v1338_v2 = vstv %s1218_s30 }
 0x738   : > { %v2159_v23 = vadd.f32 %v1191_v5, %v1183_v20  ;;  %vm1339_vm3 = vcmp.lt.s32.totalorder %v1338_v2, %v2030_v34 }
 0x739   : > { %1789 = vtanh.f32 %v2157_v22  ;;  %v1342_v5 = vsel %vm1339_vm3, 1, %v1825_v36 }
 0x73a   : > { %1791 = vtanh.f32 %v2159_v23 }
 0x73f   : > { %v1790_v16 = vpop.eup %1789  ;;  %v2168_v14 = vpop.permute.xlu2 %1206 }
 0x740   : > { %v1792_v15 = vpop.eup %1791  ;;  %1159 = vrot.lane.b32.xlu0 %v1790_v16, %s1824_s19  ;;  %vm1208_vm8 = vcmp.eq.s32.totalorder %v2168_v14, 1 }
 0x741   : > { %1196 = vrot.lane.b32.xlu1 %v1792_v15, %s1824_s19  ;;  %v1210_v16 = vsel %vm1208_vm8, %v2157_v22, %v2147_v1 }
 0x748   : > { %1213 = vperm.xlu0 %1742, %v1211_v8  }
 0x7b2   : > { %v1160_v24 = vpop.permute.xlu0 %1159 }
 0x7b3   : > { %v1162_v26 = vmul.f32 %v1160_v24, %v1143_v57  ;;  %v1197_v27 = vpop.permute.xlu1 %1196 }
 0x7b4   : > { %v1199_v28 = vmul.f32 %v1197_v27, %v1180_v10 }
 0x7b5   : > { %v2174_v13 = vsel %vm1208_vm8, %v1162_v26, %v2119_v21  ;;  %v1340_v26 = vstv %s1219_s13 }
 0x7b6   : > { %1221 = vrot.lane.b32.xlu1 %v2174_v13, %s1823_s18  ;;  %vm1341_vm4 = vcmp.lt.s32.totalorder %v1340_v26, %v2030_v34 }
 0x7b7   : > { %v1349_v27 = vsel %vm1341_vm4, 1, %v1825_v36 }
 0x7ba   : > { %v2178_v29 = vpop.permute.xlu0 %1213 }
 0x7bb   : > { %vm1215_vm9 = vcmp.eq.s32.totalorder %v2178_v29, 1 }
 0x7bc   : > { %v2184_v30 = vsel %vm1215_vm9, %v1199_v28, %v2129_v25  ;;  %v1217_v14 = vsel %vm1215_vm9, %v2159_v23, %v2153_v17 }
 0x7bd   : > { %1225 = vrot.lane.b32.xlu2 %v2184_v30, %s1824_s19 }
 0x817   : > { %v1226_v31 = vpop.permute.xlu2 %1225 }
 0x828   : > { %v1222_v21 = vpop.permute.xlu1 %1221 }
 0x829   : > { %v1228_v32 = vsel %vm520_vm0, %v1222_v21, %v1226_v31 }
 0x82a   : > { %v1229_v33 = vpack.c.bf16 %v1228_v32, %v1228_v32 }
 0x82c   : > { %1672 = vmatmul.msk.bf16.vlgmr.msra.gmra.mxu2 %vm798_vm1, %v1229_v33  ;;  %1673 = vmatmul.msk.bf16.vlgmr.msra.gmra.mxu3 %vm798_vm1, %v1229_v33 }
 0x8af   : > { %v1242_v37 = vpop.f32.mrf.mxu2  ;;  %v1255_v38 = vpop.f32.mrf.mxu3 }
 0x8b0   : > { %v1261_v39 = vadd.f32 %v1260_v35, %v1242_v37  ;;  %v1263_v40 = vadd.f32 %v1262_v19, %v1255_v38 }
 0x8b2   : > { %1793 = vtanh.f32 %v1261_v39  ;;  %v1674_v44 = vmul.f32 -1.442695, %v1261_v39  ;;  %v1675_v45 = vmul.f32 -1.442695, %v1263_v40 }
 0x8b3   : > { %1795 = vtanh.f32 %v1263_v40 }
 0x8b4   : > { %1797 = vpow2.f32 %v1674_v44 }
 0x8b5   : > { %1799 = vpow2.f32 %v1675_v45 }
 0x8b7   : > { %v1244_v25 = vpop.f32.mrf.mxu2  ;;  %v1257_v41 = vpop.f32.mrf.mxu3 }
 0x8b8   : > { %v1794_v42 = vpop.eup %1793 }
 0x8b9   : > { %v1796_v43 = vpop.eup %1795  ;;  %1286 = vrot.lane.b32.xlu0 %v1794_v42, %s1824_s19 }
 0x8ba   : > { %1323 = vrot.lane.b32.xlu1 %v1796_v43, %s1824_s19  ;;  %v1798_v46 = vpop.eup %1797 }
 0x8bb   : > { %v1800_v47 = vpop.eup %1799  ;;  %v1267_v48 = vadd.f32 1.0, %v1798_v46 }
 0x8bc   : > { %v1304_v49 = vadd.f32 1.0, %v1800_v47 }
 0x8bd   : > { %1801 = vrcp.f32 %v1267_v48  ;;  %v1279_v61 = vand.u32 2147483648, %v1267_v48  ;;  %vm1273_vm11 = vweird.f32 %v1267_v48  ;;  %v1277_v63 = vand.u32 2147483647, %v1267_v48 }
 0x8be   : > { %1803 = vrcp.f32 %v1304_v49  ;;  %v1316_v62 = vand.u32 2147483648, %v1304_v49  ;;  %vm1310_vm12 = vweird.f32 %v1304_v49  ;;  %v1314_v0 = vand.u32 2147483647, %v1304_v49 }
 0x8bf   : > { %v1280_v6 = vor.u32 1.1754944e-38, %v1279_v61  ;;  %vm1278_vm15 = vcmp.eq.f32.partialorder %v1277_v63, 8.507059e+37 }
 0x8c0   : > { %v1317_v7 = vor.u32 1.1754944e-38, %v1316_v62  ;;  %vm1315_vm2 = vcmp.eq.f32.partialorder %v1314_v0, 8.507059e+37 }
 0x8c3   : > { %v1802_v50 = vpop.eup %1801 }
 0x8c4   : > { %v1804_v52 = vpop.eup %1803  ;;  %v1269_v53 = vmul.f32 %v1802_v50, %v1267_v48  ;;  %vm1274_vm1 = vweird.f32 %v1802_v50 }
 0x8c5   : > { %v1306_v54 = vmul.f32 %v1804_v52, %v1304_v49  ;;  %vm1311_vm10 = vweird.f32 %v1804_v52  ;;  %vm1275_vm13 = vmor %vm1273_vm11, %vm1274_vm1 }
 0x8c6   : > { %v1270_v55 = vsub.f32 1.0, %v1269_v53  ;;  %vm1312_vm14 = vmor %vm1310_vm12, %vm1311_vm10 }
 0x8c7   : > { %v1307_v56 = vsub.f32 1.0, %v1306_v54 }
 0x8c8   : > { %v1271_v57 = vmul.f32 %v1802_v50, %v1270_v55 }
 0x8c9   : > { %v1308_v58 = vmul.f32 %v1804_v52, %v1307_v56 }
 0x8ca   : > { %v1272_v59 = vadd.f32 %v1802_v50, %v1271_v57 }
 0x8cb   : > { %v1309_v60 = vadd.f32 %v1804_v52, %v1308_v58 }
 0x8cc   : > { %v1276_v3 = vsel %vm1275_vm13, %v1802_v50, %v1272_v59 }
 0x8cd   : > { %v1313_v4 = vsel %vm1312_vm14, %v1804_v52, %v1309_v60  ;;  %v1281_v12 = vsel %vm1278_vm15, %v1280_v6, %v1276_v3 }
 0x8ce   : > { %v1318_v11 = vsel %vm1315_vm2, %v1317_v7, %v1313_v4  ;;  %v1284_v9 = vmul.f32 %v1281_v12, %v1210_v16 }
 0x8cf   : > { %v1321_v1 = vmul.f32 %v1318_v11, %v1217_v14 }
 0x92b   : > { %v1287_v10 = vpop.permute.xlu0 %1286 }
 0x92c   : > { %v1324_v51 = vpop.permute.xlu1 %1323  ;;  %v1289_v18 = vmul.f32 %v1287_v10, %v1281_v12 }
 0x92d   : > { %v1326_v20 = vmul.f32 %v1324_v51, %v1318_v11 }
 0x92e   : > { %1291 = vrot.lane.b32.xlu2 %v1289_v18, %s1823_s18 }
 0x92f   : > { %1328 = vrot.lane.b32.xlu0 %v1326_v20, %s1823_s18 }
 0x937   : > { %1344 = vperm.xlu0 %1742, %v1342_v5  }
 0x988   : > { %v1292_v15 = vpop.permute.xlu2 %1291 }
 0x989   : > { %v1294_v8 = vadd.f32 %v1292_v15, %v1284_v9 }
 0x98b   : > { %1805 = vtanh.f32 %v1294_v8 }
 0x991   : > { %v1806_v24 = vpop.eup %1805 }
 0x992   : > { %1297 = vrot.lane.b32.xlu1 %v1806_v24, %s1824_s19 }
 0x99a   : > { %1351 = vperm.xlu1 %1743, %v1349_v27  }
 0x9a1   : > { %v1329_v22 = vpop.permute.xlu0 %1328 }
 0x9a2   : > { %v1331_v28 = vadd.f32 %v1329_v22, %v1321_v1 }
 0x9a4   : > { %1807 = vtanh.f32 %v1331_v28 }
 0x9a9   : > { %v1345_v31 = vpop.permute.xlu0 %1344 }
 0x9aa   : > { %v1808_v21 = vpop.eup %1807  ;;  %vm1346_vm5 = vcmp.eq.s32.totalorder %v1345_v31, 1 }
 0x9ab   : > { %1334 = vrot.lane.b32.xlu2 %v1808_v21, %s1824_s19  ;;  %v1348_v32 = vsel %vm1346_vm5, %v1294_v8, %v1210_v16 }
 0x9ac   : > { %1362 = vrot.lane.b32.xlu0 %v1348_v32, %s1826_s25 }
 0xa04   : > { %v1298_v34 = vpop.permute.xlu1 %1297 }
 0xa05   : > { %v1300_v36 = vmul.f32 %v1298_v34, %v1281_v12  ;;  %v1335_v29 = vpop.permute.xlu2 %1334 }
 0xa06   : > { %v1337_v17 = vmul.f32 %v1335_v29, %v1318_v11 }
 0xa07   : > { %v1347_v33 = vsel %vm1346_vm5, %v1300_v36, %v2174_v13 }
 0xa08   : > { %1357 = vrot.lane.b32.xlu2 %v1347_v33, %s1823_s18 }
 0xa0c   : > { %v1352_v23 = vpop.permute.xlu1 %1351 }
 0xa0d   : > { %vm1353_vm6 = vcmp.eq.s32.totalorder %v1352_v23, 1 }
 0xa0e   : > { %v1354_v35 = vsel %vm1353_vm6, %v1337_v17, %v2184_v30  ;;  %v1355_v19 = vsel %vm1353_vm6, %v1331_v28, %v1217_v14 }
 0xa0f   : > { %1367 = vrot.lane.b32.xlu1 %v1354_v35, %s1823_s18 }
 0xa10   : > { %1372 = vrot.lane.b32.xlu2 %v1355_v19, %s1826_s25 }
 0xa1e   : > { %v1363_v37 = vpop.permute.xlu0 %1362 }
 0xa1f   : > { %1365 = vst.msk [vmem:[#allocation5] sm:$0xff] %vm520_vm0, %v1363_v37 }
 0xa62   : > { %v1358_v38 = vpop.permute.xlu2 %1357 }
 0xa63   : > { %1360 = vst.msk [vmem:[#allocation4] sm:$0xff] %vm520_vm0, %v1358_v38 }
 0xa6a   : > { %v1373_v13 = vpop.permute.xlu2 %1372 }
 0xa6b   : > { %1375 = vst.msk [vmem:[#allocation5 + $0x8] sm:$0xff] %vm520_vm0, %v1373_v13 }
 0xa7e   : > { %1379 = sbr.rel (%p1676_p6) target bundleno = 2975 (0xb9f), region = 76 }
 0xa81   : > { %v1368_v39 = vpop.permute.xlu1 %1367 }
 0xa82   : > { %1370 = vst.msk [vmem:[#allocation4 + $0x8] sm:$0xff] %vm520_vm0, %v1368_v39 }
 0xa83   : > { %v1389_v30 = vpack.c.bf16 %v1354_v35, %v1354_v35  ;;  %v1725_v40 = vld [vmem:[%s2255_s10 + $0x18] sm:$0xff]  ;;  %v1724_v25 = vld [vmem:[%s2255_s10 + $0x10] sm:$0xff]  ;;  %v1388_v41 = vpack.c.bf16 %v1347_v33, %v1347_v33  ;;  %v1723_v42 = vld [vmem:[%s2255_s10 + $0x8] sm:$0xff]  ;;  %vm1476_vm9 = vcmask 31744  }
 0xa84   : > { %1414 = vmatpush.bf16.msra.mxu0 %v1725_v40  ;;  %1445 = vmatpush.bf16.msra.mxu1 %v1723_v42  ;;  %v1722_v43 = vld [vmem:[%s2255_s10] sm:$0xff] }
 0xa85   : > { %1391 = vrot.lane.b32.xlu0 %v1389_v30, %s1827_s14  ;;  %v1809_v47 = vld [vmem:[%s2256_s11] ss:$0 sm:$0xff] }
 0xa88   : > { %1415 = vmatpush.bf16.msra.mxu0 %v1724_v25  ;;  %1446 = vmatpush.bf16.msra.mxu1 %v1722_v43 }
 0xa8d   : > { %1422 = vrot.lane.b32.xlu0 %v1388_v41, %s1827_s14 }
 0xaf7   : > { %v1392_v44 = vpop.permute.xlu0 %1391 }
 0xaf8   : > { %1685 = vmatmul.msk.bf16.vlgmr.msra.gmra.mxu0 %vm520_vm0, %v1392_v44 }
 0xaff   : > { %v1423_v45 = vpop.permute.xlu0 %1422 }
 0xb00   : > { %1694 = vmatmul.msk.bf16.vlgmr.msra.gmra.mxu1 %vm520_vm0, %v1423_v45 }
 0xb75   : > { %v1417_v46 = vpop.f32.mrf.mxu0 }
 0xb7d   : > { %v1419_v48 = vpop.f32.mrf.mxu0  ;;  %v1448_v49 = vpop.f32.mrf.mxu1 }
 0xb7e   : > { %v1449_v50 = vadd.f32 %v1448_v49, %v1417_v46 }
 0xb80   : > { %v1456_v52 = vadd.f32 %v1809_v47, %v1449_v50 }
 0xb82   : > { %v1695_v53 = vmul.f32 -1.442695, %v1456_v52 }
 0xb84   : > { %1810 = vpow2.f32 %v1695_v53 }
 0xb85   : > { %v1450_v54 = vpop.f32.mrf.mxu1 }
 0xb8a   : > { %v1811_v55 = vpop.eup %1810 }
 0xb8b   : > { %v1460_v56 = vadd.f32 1.0, %v1811_v55 }
 0xb8d   : > { %1812 = vrcp.f32 %v1460_v56  ;;  %v1472_v60 = vand.u32 2147483648, %v1460_v56  ;;  %v1470_v62 = vand.u32 2147483647, %v1460_v56  ;;  %vm1466_vm7 = vweird.f32 %v1460_v56 }
 0xb8f   : > { %v1473_v0 = vor.u32 1.1754944e-38, %v1472_v60  ;;  %vm1471_vm1 = vcmp.eq.f32.partialorder %v1470_v62, 8.507059e+37 }
 0xb93   : > { %v1813_v57 = vpop.eup %1812 }
 0xb94   : > { %v1462_v58 = vmul.f32 %v1813_v57, %v1460_v56  ;;  %vm1467_vm0 = vweird.f32 %v1813_v57 }
 0xb95   : > { %vm1468_vm8 = vmor %vm1466_vm7, %vm1467_vm0 }
 0xb96   : > { %v1463_v59 = vsub.f32 1.0, %v1462_v58 }
 0xb98   : > { %v1464_v61 = vmul.f32 %v1813_v57, %v1463_v59 }
 0xb9a   : > { %v1465_v63 = vadd.f32 %v1813_v57, %v1464_v61 }
 0xb9c   : > { %v1469_v3 = vsel %vm1468_vm8, %v1813_v57, %v1465_v63 }
 0xb9d   : > { %v1474_v4 = vsel %vm1471_vm1, %v1473_v0, %v1469_v3 }
 0xb9e   : > { %1477 = vst.msk [vmem:[%s2257_s12] sm:$0xff] %vm1476_vm9, %v1474_v4 }
 0xb9f PF: > { %s22_s21 = sadd.s32 1, %s1820_s21  }
 0xba0   : > { %p19_p7 = scmp.ge.s32.totalorder %s22_s21, 4  }
 0xba2   :  { %21 = sbr.rel (!%p19_p7) target bundleno = 1 (0x1), region = 119 }

</bundles_post_ra>
